<compile_context>
chip_gen: v7x
topology: tpu7x:2x2x1
jax: 0.10.0
libtpu: 0.0.40
codegen_flags: <defaults>
</compile_context>

<pallas_src>
import functools

import jax
import jax.numpy as jnp
from jax.experimental import pallas as pl
from jax.experimental.pallas import tpu as pltpu


# ----------------------------------------------------------------------------
# Wrapper-side input prep (plain XLA, raw-sized data, once per forward).
# Produces conv1's "combined 3x3/stride-2" im2col rows in grid-major,
# batch-minor order so the kernel only needs unit-stride 2-D slices.
# ----------------------------------------------------------------------------
def _make_conv1_rows(x_nchw_bf16, Bt):
    B, C, H, W = x_nchw_bf16.shape
    assert H == 84 and W == 84, "CNNBase expects 84x84 observations (32*7*7 FC)."
    hs = H // 4                                               # 21 super rows
    # space-to-depth by 4: (B, 21, 21, 16*C), channel order (hp, wp, ci)
    x = x_nchw_bf16.reshape(B, C, hs, 4, hs, 4)
    x = jnp.transpose(x, (0, 2, 4, 3, 5, 1)).reshape(B, hs, hs, 16 * C)
    # conv1 fused with s2d(2)  ==  3x3 / stride-2 conv on super-pixels.
    # Materialize the 10x10 window rows (window-major channel order).
    n = 10
    pieces = [x[:, wy::2, wx::2, :][:, :n, :n, :]
              for wy in range(3) for wx in range(3)]
    xw = jnp.concatenate(pieces, axis=-1)                     # (B, 10, 10, 9*16*C)
    K1 = 9 * 16 * C
    nblk = B // Bt
    xw = xw.reshape(nblk, Bt, n * n, K1)
    xw = jnp.transpose(xw, (0, 2, 1, 3))                      # grid-major, batch-minor
    return xw.reshape(nblk, n * n * Bt, K1)


def _pick_bt(batch):
    """Images per grid block: big enough to feed the MXU (M >= ~200), capped
    so the streamed input block stays small, and >=2 grid blocks when the
    batch allows it (keeps both v7x TensorCores busy; harmless on v5e/v6e)."""
    if batch <= 1:
        return 1
    return min(4, -(-batch // 2))


# ----------------------------------------------------------------------------
# The fused kernel.  One grid step == one block of Bt images.
# Activation rows are indexed  r = g*Bt + b  with g a position on the 10x10
# super grid; conv taps are constant row shifts; border/garbage rows are
# computed but never consumed by later stages.
# ----------------------------------------------------------------------------
def _fused_kernel(x_ref, w1_ref, b1_ref, w2_ref, b2_ref, w3_ref, b3_ref,
                  wfc_ref, bfc_ref, wc_ref, cb_ref,
                  feat_ref, val_ref, fcin_ref, *, Bt):
    f32 = jnp.float32
    bf16 = jnp.bfloat16

    # conv1 (+ fused space-to-depth): one matmul, every 10x10 grid row valid.
    y1 = jnp.dot(x_ref[0], w1_ref[...], preferred_element_type=f32)
    y1 = jnp.maximum(y1 + b1_ref[...], 0.0).astype(bf16)          # (100*Bt, 128)

    # conv2 (4x4/stride-2) == 2x2/stride-1 on the super grid: 4 matmuls, K=128.
    n2 = 89 * Bt
    acc2 = None
    for t, (dy, dx) in enumerate(((0, 0), (0, 1), (1, 0), (1, 1))):
        s = (dy * 10 + dx) * Bt
        part = jnp.dot(y1[s:s + n2, :], w2_ref[t], preferred_element_type=f32)
        acc2 = part if acc2 is None else acc2 + part
    y2 = jnp.maximum(acc2 + b2_ref[...], 0.0).astype(bf16)        # (89*Bt, 64)

    # conv3 (3x3/stride-1): 9 matmuls, K=64.
    n3 = 67 * Bt
    acc3 = None
    for dy in range(3):
        for dx in range(3):
            s = (dy * 10 + dx) * Bt
            part = jnp.dot(y2[s:s + n3, :], w3_ref[dy * 3 + dx],
                           preferred_element_type=f32)
            acc3 = part if acc3 is None else acc3 + part
    y3 = jnp.maximum(acc3 + b3_ref[...], 0.0)                     # (67*Bt, 32) f32

    # Flatten the valid 7x7 conv3 outputs (grid rows/cols 0..6) into the
    # per-image (h, w, c)-ordered FC input via a tiny VMEM scratch.
    for oy in range(7):
        for ox in range(7):
            g = oy * 10 + ox
            p = oy * 7 + ox
            fcin_ref[:, p * 32:(p + 1) * 32] = y3[g * Bt:(g + 1) * Bt, :]

    # FC + critic head (critic as a reduction - no N=1 MXU matmul).
    h = jnp.dot(fcin_ref[...].astype(bf16), wfc_ref[...],
                preferred_element_type=f32)
    h = jnp.maximum(h + bfc_ref[...], 0.0)                        # (Bt, hidden)
    feat_ref[0] = h.astype(feat_ref.dtype)
    v = jnp.sum(h * wc_ref[...], axis=-1, keepdims=True) + cb_ref[...]
    val_ref[0] = v.astype(val_ref.dtype)


def _fused_forward_pallas(xin, kp, *, Bt, nblk, hidden):
    _, R, K1 = xin.shape
    return pl.pallas_call(
        functools.partial(_fused_kernel, Bt=Bt),
        out_shape=(jax.ShapeDtypeStruct((nblk, Bt, hidden), jnp.float32),
                   jax.ShapeDtypeStruct((nblk, Bt, 1), jnp.float32)),
        grid_spec=pltpu.PrefetchScalarGridSpec(
            num_scalar_prefetch=0,
            grid=(nblk,),
            in_specs=[
                pl.BlockSpec((1, R, K1), lambda i: (i, 0, 0)),
                pl.BlockSpec((K1, 128), lambda i: (0, 0)),
                pl.BlockSpec((1, 128), lambda i: (0, 0)),
                pl.BlockSpec((4, 128, 64), lambda i: (0, 0, 0)),
                pl.BlockSpec((1, 64), lambda i: (0, 0)),
                pl.BlockSpec((9, 64, 32), lambda i: (0, 0, 0)),
                pl.BlockSpec((1, 32), lambda i: (0, 0)),
                pl.BlockSpec((7 * 7 * 32, hidden), lambda i: (0, 0)),
                pl.BlockSpec((1, hidden), lambda i: (0, 0)),
                pl.BlockSpec((1, hidden), lambda i: (0, 0)),
                pl.BlockSpec((1, 1), lambda i: (0, 0)),
            ],
            out_specs=(pl.BlockSpec((1, Bt, hidden), lambda i: (i, 0, 0)),
                       pl.BlockSpec((1, Bt, 1), lambda i: (i, 0, 0))),
            scratch_shapes=[pltpu.VMEM((Bt, 7 * 7 * 32), jnp.float32)],
        ),
        compiler_params=pltpu.CompilerParams(
            dimension_semantics=("parallel",)),
    )(xin, kp["conv1_w"], kp["conv1_b"], kp["conv2_w"], kp["conv2_b"],
      kp["conv3_w"], kp["conv3_b"], kp["fc_w"], kp["fc_b"],
      kp["critic_w"], kp["critic_b"])


# ----------------------------------------------------------------------------
# Parameters: PyTorch-layout init + one-time conversion to kernel layouts.
# ----------------------------------------------------------------------------
def init_cnnbase_params(key, num_inputs, hidden_size):
    ks = jax.random.split(key, 5)

    def winit(k, shape, fan_in, gain):
        # Gaussian stand-in for PyTorch's orthogonal init (same scale).
        return gain / jnp.sqrt(float(fan_in)) * jax.random.normal(
            k, shape, jnp.float32)

    relu_gain = float(jnp.sqrt(2.0))
    return {
        "conv1_w": winit(ks[0], (32, num_inputs, 8, 8), num_inputs * 64, relu_gain),
        "conv1_b": jnp.zeros((32,), jnp.float32),
        "conv2_w": winit(ks[1], (64, 32, 4, 4), 32 * 16, relu_gain),
        "conv2_b": jnp.zeros((64,), jnp.float32),
        "conv3_w": winit(ks[2], (32, 64, 3, 3), 64 * 9, relu_gain),
        "conv3_b": jnp.zeros((32,), jnp.float32),
        "fc_w": winit(ks[3], (hidden_size, 32 * 7 * 7), 32 * 7 * 7, relu_gain),
        "fc_b": jnp.zeros((hidden_size,), jnp.float32),
        "critic_w": winit(ks[4], (1, hidden_size), hidden_size, 1.0),
        "critic_b": jnp.zeros((1,), jnp.float32),
    }


def prepare_params(p, hidden_size):
    """One-time conversion from PyTorch-layout f32 params to kernel layouts."""
    C = p["conv1_w"].shape[1]

    # conv1: fold /255, express as 2x2 super-taps on the s2d-4 channel layout
    # (hp, wp, ci), then embed into the combined 3x3/stride-2 weight whose
    # 128 output channels are ordered (py, px, cout) == the s2d(2) layout.
    w1 = (p["conv1_w"] * (1.0 / 255.0)).reshape(32, C, 2, 4, 2, 4)
    w1 = jnp.transpose(w1, (2, 4, 3, 5, 1, 0))                # (dy, dx, hp, wp, ci, co)
    w1 = w1.reshape(2, 2, 16 * C, 32)
    wcomb = jnp.zeros((3, 3, 16 * C, 2, 2, 32), jnp.float32)
    for py in range(2):
        for px in range(2):
            for dy in range(2):
                for dx in range(2):
                    wcomb = wcomb.at[py + dy, px + dx, :, py, px, :].set(w1[dy, dx])
    conv1_w = wcomb.reshape(9 * 16 * C, 128).astype(jnp.bfloat16)
    conv1_b = jnp.tile(p["conv1_b"], 4).reshape(1, 128).astype(jnp.float32)

    # conv2: super-grid taps; input channel order matches conv1's (py, px, c1).
    w2 = p["conv2_w"].reshape(64, 32, 2, 2, 2, 2)             # (c2, c1, dyb, py, dxb, px)
    w2 = jnp.transpose(w2, (2, 4, 3, 5, 1, 0))                # (dyb, dxb, py, px, c1, c2)
    conv2_w = w2.reshape(4, 128, 64).astype(jnp.bfloat16)
    conv2_b = p["conv2_b"].reshape(1, 64).astype(jnp.float32)

    conv3_w = jnp.transpose(p["conv3_w"], (2, 3, 1, 0)).reshape(9, 64, 32)
    conv3_w = conv3_w.astype(jnp.bfloat16)
    conv3_b = p["conv3_b"].reshape(1, 32).astype(jnp.float32)

    # FC: fold the NCHW (c, h, w) flatten into (h, w, c) row order.
    fc_w = p["fc_w"].reshape(hidden_size, 32, 7, 7)
    fc_w = jnp.transpose(fc_w, (2, 3, 1, 0)).reshape(7 * 7 * 32, hidden_size)
    return {
        "conv1_w": conv1_w, "conv1_b": conv1_b,
        "conv2_w": conv2_w, "conv2_b": conv2_b,
        "conv3_w": conv3_w, "conv3_b": conv3_b,
        "fc_w": fc_w.astype(jnp.bfloat16),
        "fc_b": p["fc_b"].reshape(1, -1).astype(jnp.float32),
        "critic_w": p["critic_w"].reshape(1, hidden_size).astype(jnp.float32),
        "critic_b": p["critic_b"].reshape(1, 1).astype(jnp.float32),
    }


# ----------------------------------------------------------------------------
# CNNBase.forward (recurrent=False, the module default)
# ----------------------------------------------------------------------------
def cnnbase_forward(kparams, inputs_nchw, rnn_hxs, masks):
    del masks  # only used by the recurrent (GRU) path
    B = inputs_nchw.shape[0]
    hidden = kparams["fc_w"].shape[1]
    Bt = _pick_bt(B)
    nblk = -(-B // Bt)
    Bpad = nblk * Bt

    x = inputs_nchw.astype(jnp.bfloat16)
    if Bpad != B:
        x = jnp.concatenate(
            [x, jnp.zeros((Bpad - B,) + x.shape[1:], x.dtype)], axis=0)
    xin = _make_conv1_rows(x, Bt)                             # (nblk, 100*Bt, 9*16*C)
    feats, value = _fused_forward_pallas(xin, kparams, Bt=Bt, nblk=nblk,
                                         hidden=hidden)
    feats = feats.reshape(Bpad, hidden)[:B]
    value = value.reshape(Bpad, 1)[:B]
    # TODO(synk): recurrent GRU path (_forward_gru) not implemented; CNNBase
    # defaults to recurrent=False so rnn_hxs passes through unchanged.
    return value, feats, rnn_hxs


# ----------------------------------------------------------------------------
# Pure-JAX f32 reference (mirrors the PyTorch module) for a loose check.
# ----------------------------------------------------------------------------
def reference_forward(params, inputs_nchw):
    x = inputs_nchw / 255.0

    def conv(x, w, b, s):
        y = jax.lax.conv_general_dilated(
            x, w, window_strides=(s, s), padding="VALID",
            dimension_numbers=("NCHW", "OIHW", "NCHW"))
        return jax.nn.relu(y + b[None, :, None, None])

    x = conv(x, params["conv1_w"], params["conv1_b"], 4)
    x = conv(x, params["conv2_w"], params["conv2_b"], 2)
    x = conv(x, params["conv3_w"], params["conv3_b"], 1)
    x = x.reshape(x.shape[0], -1)                             # NCHW flatten
    feats = jax.nn.relu(x @ params["fc_w"].T + params["fc_b"])
    value = feats @ params["critic_w"].T + params["critic_b"]
    return value, feats


if __name__ == "__main__":
    key = jax.random.PRNGKey(0)
    B, C, H, W = 4, 4, 84, 84        # 84x84 spatial is implied by the 32*7*7 FC
    hidden = 256                     # small, lane-aligned hidden for the demo

    kp, kx = jax.random.split(key)
    params = init_cnnbase_params(kp, C, hidden)
    kparams = prepare_params(params, hidden)

    inputs = jax.random.uniform(kx, (B, C, H, W), jnp.float32, 0.0, 255.0)
    rnn_hxs = jnp.zeros((B, 1), jnp.float32)   # recurrent_hidden_state_size == 1
    masks = jnp.ones((B, 1), jnp.float32)

    fwd = jax.jit(cnnbase_forward)
    value, feats, rnn_out = fwd(kparams, inputs, rnn_hxs, masks)
    jax.block_until_ready((value, feats, rnn_out))

    assert value.shape == (B, 1)
    assert feats.shape == (B, hidden)
    assert rnn_out.shape == (B, 1)
    assert bool(jnp.all(feats >= 0.0))          # post-ReLU features

    # Loose check vs. the f32 XLA reference (kernel path uses bf16 operands).
    value_ref, feats_ref = jax.jit(reference_forward)(params, inputs)
    assert bool(jnp.allclose(feats, feats_ref, rtol=0.1, atol=0.2))
    assert bool(jnp.allclose(value, value_ref, rtol=0.1, atol=0.2))

    print("KERNEL_OK")
</pallas_src>

<mosaic_0001>
module attributes {stable_mosaic.version = 11 : i64} {
  func.func @_fused_kernel(%arg0: i32, %arg1: memref<1x200x576xbf16, #tpu.memory_space<vmem>>, %arg2: memref<576x128xbf16, #tpu.memory_space<vmem>>, %arg3: memref<1x128xf32, #tpu.memory_space<vmem>>, %arg4: memref<4x128x64xbf16, #tpu.memory_space<vmem>>, %arg5: memref<1x64xf32, #tpu.memory_space<vmem>>, %arg6: memref<9x64x32xbf16, #tpu.memory_space<vmem>>, %arg7: memref<1x32xf32, #tpu.memory_space<vmem>>, %arg8: memref<1568x256xbf16, #tpu.memory_space<vmem>>, %arg9: memref<1x256xf32, #tpu.memory_space<vmem>>, %arg10: memref<1x256xf32, #tpu.memory_space<vmem>>, %arg11: memref<1x1xf32, #tpu.memory_space<vmem>>, %arg12: memref<1x2x256xf32, #tpu.memory_space<vmem>>, %arg13: memref<1x2x1xf32, #tpu.memory_space<vmem>>, %arg14: memref<2x1568xf32, #tpu.memory_space<vmem>>) attributes {dimension_semantics = [#tpu.dimension_semantics<parallel>], iteration_bounds = array<i64: 2>, scalar_prefetch = 0 : i64, scratch_operands = 1 : i64, tpu.core_type = #tpu.core_type<tc>, window_params = [{transform_indices = @transform_0, window_bounds = array<i64: 1, 200, 576>}, {pipeline_mode = #tpu.pipeline_mode<synchronous>, transform_indices = @transform_1, window_bounds = array<i64: 576, 128>}, {pipeline_mode = #tpu.pipeline_mode<synchronous>, transform_indices = @transform_2, window_bounds = array<i64: 1, 128>}, {pipeline_mode = #tpu.pipeline_mode<synchronous>, transform_indices = @transform_3, window_bounds = array<i64: 4, 128, 64>}, {pipeline_mode = #tpu.pipeline_mode<synchronous>, transform_indices = @transform_4, window_bounds = array<i64: 1, 64>}, {pipeline_mode = #tpu.pipeline_mode<synchronous>, transform_indices = @transform_5, window_bounds = array<i64: 9, 64, 32>}, {pipeline_mode = #tpu.pipeline_mode<synchronous>, transform_indices = @transform_6, window_bounds = array<i64: 1, 32>}, {pipeline_mode = #tpu.pipeline_mode<synchronous>, transform_indices = @transform_7, window_bounds = array<i64: 1568, 256>}, {pipeline_mode = #tpu.pipeline_mode<synchronous>, transform_indices = @transform_8, window_bounds = array<i64: 1, 256>}, {pipeline_mode = #tpu.pipeline_mode<synchronous>, transform_indices = @transform_9, window_bounds = array<i64: 1, 256>}, {pipeline_mode = #tpu.pipeline_mode<synchronous>, transform_indices = @transform_10, window_bounds = array<i64: 1, 1>}, {transform_indices = @transform_11, window_bounds = array<i64: 1, 2, 256>}, {transform_indices = @transform_12, window_bounds = array<i64: 1, 2, 1>}]} {
    %c0 = arith.constant 0 : index
    %c0_0 = arith.constant 0 : index
    %c0_1 = arith.constant 0 : index
    %0 = vector.load %arg1[%c0, %c0_0, %c0_1] : memref<1x200x576xbf16, #tpu.memory_space<vmem>>, vector<1x200x576xbf16>
    %1 = vector.shape_cast %0 : vector<1x200x576xbf16> to vector<200x576xbf16>
    %c0_2 = arith.constant 0 : index
    %c0_3 = arith.constant 0 : index
    %2 = vector.load %arg2[%c0_2, %c0_3] : memref<576x128xbf16, #tpu.memory_space<vmem>>, vector<576x128xbf16>
    %cst = arith.constant dense<0.000000e+00> : vector<200x128xf32>
    %3 = tpu.matmul %1, %2, %cst {dimension_numbers = #tpu.dot_dimension_numbers<[1], [0], [0], [1], [0, 0, 1, 1], [], []>} : vector<200x576xbf16>, vector<576x128xbf16>, vector<200x128xf32> -> vector<200x128xf32>
    %c0_4 = arith.constant 0 : index
    %c0_5 = arith.constant 0 : index
    %4 = vector.load %arg3[%c0_4, %c0_5] : memref<1x128xf32, #tpu.memory_space<vmem>>, vector<1x128xf32>
    %5 = vector.broadcast %4 : vector<1x128xf32> to vector<200x128xf32>
    %6 = arith.addf %3, %5 : vector<200x128xf32>
    %cst_6 = arith.constant 0.000000e+00 : f32
    %7 = vector.broadcast %cst_6 : f32 to vector<200x128xf32>
    %8 = arith.maximumf %6, %7 : vector<200x128xf32>
    %9 = arith.truncf %8 : vector<200x128xf32> to vector<200x128xbf16>
    %10 = vector.extract_strided_slice %9 {offsets = [0, 0], sizes = [178, 128], strides = [1, 1]} : vector<200x128xbf16> to vector<178x128xbf16>
    %c0_7 = arith.constant 0 : index
    %c0_8 = arith.constant 0 : index
    %c0_9 = arith.constant 0 : index
    %11 = vector.load %arg4[%c0_7, %c0_8, %c0_9] : memref<4x128x64xbf16, #tpu.memory_space<vmem>>, vector<1x128x64xbf16>
    %12 = vector.shape_cast %11 : vector<1x128x64xbf16> to vector<128x64xbf16>
    %cst_10 = arith.constant dense<0.000000e+00> : vector<178x64xf32>
    %13 = tpu.matmul %10, %12, %cst_10 {dimension_numbers = #tpu.dot_dimension_numbers<[1], [0], [0], [1], [0, 0, 1, 1], [], []>} : vector<178x128xbf16>, vector<128x64xbf16>, vector<178x64xf32> -> vector<178x64xf32>
    %14 = vector.extract_strided_slice %9 {offsets = [2, 0], sizes = [178, 128], strides = [1, 1]} : vector<200x128xbf16> to vector<178x128xbf16>
    %c1 = arith.constant 1 : index
    %c0_11 = arith.constant 0 : index
    %c0_12 = arith.constant 0 : index
    %15 = vector.load %arg4[%c1, %c0_11, %c0_12] : memref<4x128x64xbf16, #tpu.memory_space<vmem>>, vector<1x128x64xbf16>
    %16 = vector.shape_cast %15 : vector<1x128x64xbf16> to vector<128x64xbf16>
    %cst_13 = arith.constant dense<0.000000e+00> : vector<178x64xf32>
    %17 = tpu.matmul %14, %16, %cst_13 {dimension_numbers = #tpu.dot_dimension_numbers<[1], [0], [0], [1], [0, 0, 1, 1], [], []>} : vector<178x128xbf16>, vector<128x64xbf16>, vector<178x64xf32> -> vector<178x64xf32>
    %18 = arith.addf %13, %17 : vector<178x64xf32>
    %19 = vector.extract_strided_slice %9 {offsets = [20, 0], sizes = [178, 128], strides = [1, 1]} : vector<200x128xbf16> to vector<178x128xbf16>
    %c2 = arith.constant 2 : index
    %c0_14 = arith.constant 0 : index
    %c0_15 = arith.constant 0 : index
    %20 = vector.load %arg4[%c2, %c0_14, %c0_15] : memref<4x128x64xbf16, #tpu.memory_space<vmem>>, vector<1x128x64xbf16>
    %21 = vector.shape_cast %20 : vector<1x128x64xbf16> to vector<128x64xbf16>
    %cst_16 = arith.constant dense<0.000000e+00> : vector<178x64xf32>
    %22 = tpu.matmul %19, %21, %cst_16 {dimension_numbers = #tpu.dot_dimension_numbers<[1], [0], [0], [1], [0, 0, 1, 1], [], []>} : vector<178x128xbf16>, vector<128x64xbf16>, vector<178x64xf32> -> vector<178x64xf32>
    %23 = arith.addf %18, %22 : vector<178x64xf32>
    %24 = vector.extract_strided_slice %9 {offsets = [22, 0], sizes = [178, 128], strides = [1, 1]} : vector<200x128xbf16> to vector<178x128xbf16>
    %c3 = arith.constant 3 : index
    %c0_17 = arith.constant 0 : index
    %c0_18 = arith.constant 0 : index
    %25 = vector.load %arg4[%c3, %c0_17, %c0_18] : memref<4x128x64xbf16, #tpu.memory_space<vmem>>, vector<1x128x64xbf16>
    %26 = vector.shape_cast %25 : vector<1x128x64xbf16> to vector<128x64xbf16>
    %cst_19 = arith.constant dense<0.000000e+00> : vector<178x64xf32>
    %27 = tpu.matmul %24, %26, %cst_19 {dimension_numbers = #tpu.dot_dimension_numbers<[1], [0], [0], [1], [0, 0, 1, 1], [], []>} : vector<178x128xbf16>, vector<128x64xbf16>, vector<178x64xf32> -> vector<178x64xf32>
    %28 = arith.addf %23, %27 : vector<178x64xf32>
    %c0_20 = arith.constant 0 : index
    %c0_21 = arith.constant 0 : index
    %29 = vector.load %arg5[%c0_20, %c0_21] : memref<1x64xf32, #tpu.memory_space<vmem>>, vector<1x64xf32>
    %30 = vector.broadcast %29 : vector<1x64xf32> to vector<178x64xf32>
    %31 = arith.addf %28, %30 : vector<178x64xf32>
    %cst_22 = arith.constant 0.000000e+00 : f32
    %32 = vector.broadcast %cst_22 : f32 to vector<178x64xf32>
    %33 = arith.maximumf %31, %32 : vector<178x64xf32>
    %34 = arith.truncf %33 : vector<178x64xf32> to vector<178x64xbf16>
    %35 = vector.extract_strided_slice %34 {offsets = [0, 0], sizes = [134, 64], strides = [1, 1]} : vector<178x64xbf16> to vector<134x64xbf16>
    %c0_23 = arith.constant 0 : index
    %c0_24 = arith.constant 0 : index
    %c0_25 = arith.constant 0 : index
    %36 = vector.load %arg6[%c0_23, %c0_24, %c0_25] : memref<9x64x32xbf16, #tpu.memory_space<vmem>>, vector<1x64x32xbf16>
    %37 = vector.shape_cast %36 : vector<1x64x32xbf16> to vector<64x32xbf16>
    %cst_26 = arith.constant dense<0.000000e+00> : vector<134x32xf32>
    %38 = tpu.matmul %35, %37, %cst_26 {dimension_numbers = #tpu.dot_dimension_numbers<[1], [0], [0], [1], [0, 0, 1, 1], [], []>} : vector<134x64xbf16>, vector<64x32xbf16>, vector<134x32xf32> -> vector<134x32xf32>
    %39 = vector.extract_strided_slice %34 {offsets = [2, 0], sizes = [134, 64], strides = [1, 1]} : vector<178x64xbf16> to vector<134x64xbf16>
    %c1_27 = arith.constant 1 : index
    %c0_28 = arith.constant 0 : index
    %c0_29 = arith.constant 0 : index
    %40 = vector.load %arg6[%c1_27, %c0_28, %c0_29] : memref<9x64x32xbf16, #tpu.memory_space<vmem>>, vector<1x64x32xbf16>
    %41 = vector.shape_cast %40 : vector<1x64x32xbf16> to vector<64x32xbf16>
    %cst_30 = arith.constant dense<0.000000e+00> : vector<134x32xf32>
    %42 = tpu.matmul %39, %41, %cst_30 {dimension_numbers = #tpu.dot_dimension_numbers<[1], [0], [0], [1], [0, 0, 1, 1], [], []>} : vector<134x64xbf16>, vector<64x32xbf16>, vector<134x32xf32> -> vector<134x32xf32>
    %43 = arith.addf %38, %42 : vector<134x32xf32>
    %44 = vector.extract_strided_slice %34 {offsets = [4, 0], sizes = [134, 64], strides = [1, 1]} : vector<178x64xbf16> to vector<134x64xbf16>
    %c2_31 = arith.constant 2 : index
    %c0_32 = arith.constant 0 : index
    %c0_33 = arith.constant 0 : index
    %45 = vector.load %arg6[%c2_31, %c0_32, %c0_33] : memref<9x64x32xbf16, #tpu.memory_space<vmem>>, vector<1x64x32xbf16>
    %46 = vector.shape_cast %45 : vector<1x64x32xbf16> to vector<64x32xbf16>
    %cst_34 = arith.constant dense<0.000000e+00> : vector<134x32xf32>
    %47 = tpu.matmul %44, %46, %cst_34 {dimension_numbers = #tpu.dot_dimension_numbers<[1], [0], [0], [1], [0, 0, 1, 1], [], []>} : vector<134x64xbf16>, vector<64x32xbf16>, vector<134x32xf32> -> vector<134x32xf32>
    %48 = arith.addf %43, %47 : vector<134x32xf32>
    %49 = vector.extract_strided_slice %34 {offsets = [20, 0], sizes = [134, 64], strides = [1, 1]} : vector<178x64xbf16> to vector<134x64xbf16>
    %c3_35 = arith.constant 3 : index
    %c0_36 = arith.constant 0 : index
    %c0_37 = arith.constant 0 : index
    %50 = vector.load %arg6[%c3_35, %c0_36, %c0_37] : memref<9x64x32xbf16, #tpu.memory_space<vmem>>, vector<1x64x32xbf16>
    %51 = vector.shape_cast %50 : vector<1x64x32xbf16> to vector<64x32xbf16>
    %cst_38 = arith.constant dense<0.000000e+00> : vector<134x32xf32>
    %52 = tpu.matmul %49, %51, %cst_38 {dimension_numbers = #tpu.dot_dimension_numbers<[1], [0], [0], [1], [0, 0, 1, 1], [], []>} : vector<134x64xbf16>, vector<64x32xbf16>, vector<134x32xf32> -> vector<134x32xf32>
    %53 = arith.addf %48, %52 : vector<134x32xf32>
    %54 = vector.extract_strided_slice %34 {offsets = [22, 0], sizes = [134, 64], strides = [1, 1]} : vector<178x64xbf16> to vector<134x64xbf16>
    %c4 = arith.constant 4 : index
    %c0_39 = arith.constant 0 : index
    %c0_40 = arith.constant 0 : index
    %55 = vector.load %arg6[%c4, %c0_39, %c0_40] : memref<9x64x32xbf16, #tpu.memory_space<vmem>>, vector<1x64x32xbf16>
    %56 = vector.shape_cast %55 : vector<1x64x32xbf16> to vector<64x32xbf16>
    %cst_41 = arith.constant dense<0.000000e+00> : vector<134x32xf32>
    %57 = tpu.matmul %54, %56, %cst_41 {dimension_numbers = #tpu.dot_dimension_numbers<[1], [0], [0], [1], [0, 0, 1, 1], [], []>} : vector<134x64xbf16>, vector<64x32xbf16>, vector<134x32xf32> -> vector<134x32xf32>
    %58 = arith.addf %53, %57 : vector<134x32xf32>
    %59 = vector.extract_strided_slice %34 {offsets = [24, 0], sizes = [134, 64], strides = [1, 1]} : vector<178x64xbf16> to vector<134x64xbf16>
    %c5 = arith.constant 5 : index
    %c0_42 = arith.constant 0 : index
    %c0_43 = arith.constant 0 : index
    %60 = vector.load %arg6[%c5, %c0_42, %c0_43] : memref<9x64x32xbf16, #tpu.memory_space<vmem>>, vector<1x64x32xbf16>
    %61 = vector.shape_cast %60 : vector<1x64x32xbf16> to vector<64x32xbf16>
    %cst_44 = arith.constant dense<0.000000e+00> : vector<134x32xf32>
    %62 = tpu.matmul %59, %61, %cst_44 {dimension_numbers = #tpu.dot_dimension_numbers<[1], [0], [0], [1], [0, 0, 1, 1], [], []>} : vector<134x64xbf16>, vector<64x32xbf16>, vector<134x32xf32> -> vector<134x32xf32>
    %63 = arith.addf %58, %62 : vector<134x32xf32>
    %64 = vector.extract_strided_slice %34 {offsets = [40, 0], sizes = [134, 64], strides = [1, 1]} : vector<178x64xbf16> to vector<134x64xbf16>
    %c6 = arith.constant 6 : index
    %c0_45 = arith.constant 0 : index
    %c0_46 = arith.constant 0 : index
    %65 = vector.load %arg6[%c6, %c0_45, %c0_46] : memref<9x64x32xbf16, #tpu.memory_space<vmem>>, vector<1x64x32xbf16>
    %66 = vector.shape_cast %65 : vector<1x64x32xbf16> to vector<64x32xbf16>
    %cst_47 = arith.constant dense<0.000000e+00> : vector<134x32xf32>
    %67 = tpu.matmul %64, %66, %cst_47 {dimension_numbers = #tpu.dot_dimension_numbers<[1], [0], [0], [1], [0, 0, 1, 1], [], []>} : vector<134x64xbf16>, vector<64x32xbf16>, vector<134x32xf32> -> vector<134x32xf32>
    %68 = arith.addf %63, %67 : vector<134x32xf32>
    %69 = vector.extract_strided_slice %34 {offsets = [42, 0], sizes = [134, 64], strides = [1, 1]} : vector<178x64xbf16> to vector<134x64xbf16>
    %c7 = arith.constant 7 : index
    %c0_48 = arith.constant 0 : index
    %c0_49 = arith.constant 0 : index
    %70 = vector.load %arg6[%c7, %c0_48, %c0_49] : memref<9x64x32xbf16, #tpu.memory_space<vmem>>, vector<1x64x32xbf16>
    %71 = vector.shape_cast %70 : vector<1x64x32xbf16> to vector<64x32xbf16>
    %cst_50 = arith.constant dense<0.000000e+00> : vector<134x32xf32>
    %72 = tpu.matmul %69, %71, %cst_50 {dimension_numbers = #tpu.dot_dimension_numbers<[1], [0], [0], [1], [0, 0, 1, 1], [], []>} : vector<134x64xbf16>, vector<64x32xbf16>, vector<134x32xf32> -> vector<134x32xf32>
    %73 = arith.addf %68, %72 : vector<134x32xf32>
    %74 = vector.extract_strided_slice %34 {offsets = [44, 0], sizes = [134, 64], strides = [1, 1]} : vector<178x64xbf16> to vector<134x64xbf16>
    %c8 = arith.constant 8 : index
    %c0_51 = arith.constant 0 : index
    %c0_52 = arith.constant 0 : index
    %75 = vector.load %arg6[%c8, %c0_51, %c0_52] : memref<9x64x32xbf16, #tpu.memory_space<vmem>>, vector<1x64x32xbf16>
    %76 = vector.shape_cast %75 : vector<1x64x32xbf16> to vector<64x32xbf16>
    %cst_53 = arith.constant dense<0.000000e+00> : vector<134x32xf32>
    %77 = tpu.matmul %74, %76, %cst_53 {dimension_numbers = #tpu.dot_dimension_numbers<[1], [0], [0], [1], [0, 0, 1, 1], [], []>} : vector<134x64xbf16>, vector<64x32xbf16>, vector<134x32xf32> -> vector<134x32xf32>
    %78 = arith.addf %73, %77 : vector<134x32xf32>
    %c0_54 = arith.constant 0 : index
    %c0_55 = arith.constant 0 : index
    %79 = vector.load %arg7[%c0_54, %c0_55] : memref<1x32xf32, #tpu.memory_space<vmem>>, vector<1x32xf32>
    %80 = vector.broadcast %79 : vector<1x32xf32> to vector<134x32xf32>
    %81 = arith.addf %78, %80 : vector<134x32xf32>
    %cst_56 = arith.constant 0.000000e+00 : f32
    %82 = vector.broadcast %cst_56 : f32 to vector<134x32xf32>
    %83 = arith.maximumf %81, %82 : vector<134x32xf32>
    %84 = vector.extract_strided_slice %83 {offsets = [0, 0], sizes = [2, 32], strides = [1, 1]} : vector<134x32xf32> to vector<2x32xf32>
    %c0_57 = arith.constant 0 : index
    %c0_58 = arith.constant 0 : index
    %85 = vector.load %arg14[%c0_57, %c0_58] : memref<2x1568xf32, #tpu.memory_space<vmem>>, vector<2x32xf32>
    tpu.vector_store %arg14[%c0_57, %c0_58], %84 {strides = array<i32>} : memref<2x1568xf32, #tpu.memory_space<vmem>>, vector<2x32xf32>,
    %86 = vector.extract_strided_slice %83 {offsets = [2, 0], sizes = [2, 32], strides = [1, 1]} : vector<134x32xf32> to vector<2x32xf32>
    %c0_59 = arith.constant 0 : index
    %c32 = arith.constant 32 : index
    %87 = vector.load %arg14[%c0_59, %c32] : memref<2x1568xf32, #tpu.memory_space<vmem>>, vector<2x32xf32>
    tpu.vector_store %arg14[%c0_59, %c32], %86 {strides = array<i32>} : memref<2x1568xf32, #tpu.memory_space<vmem>>, vector<2x32xf32>,
    %88 = vector.extract_strided_slice %83 {offsets = [4, 0], sizes = [2, 32], strides = [1, 1]} : vector<134x32xf32> to vector<2x32xf32>
    %c0_60 = arith.constant 0 : index
    %c64 = arith.constant 64 : index
    %89 = vector.load %arg14[%c0_60, %c64] : memref<2x1568xf32, #tpu.memory_space<vmem>>, vector<2x32xf32>
    tpu.vector_store %arg14[%c0_60, %c64], %88 {strides = array<i32>} : memref<2x1568xf32, #tpu.memory_space<vmem>>, vector<2x32xf32>,
    %90 = vector.extract_strided_slice %83 {offsets = [6, 0], sizes = [2, 32], strides = [1, 1]} : vector<134x32xf32> to vector<2x32xf32>
    %c0_61 = arith.constant 0 : index
    %c96 = arith.constant 96 : index
    %91 = vector.load %arg14[%c0_61, %c96] : memref<2x1568xf32, #tpu.memory_space<vmem>>, vector<2x32xf32>
    tpu.vector_store %arg14[%c0_61, %c96], %90 {strides = array<i32>} : memref<2x1568xf32, #tpu.memory_space<vmem>>, vector<2x32xf32>,
    %92 = vector.extract_strided_slice %83 {offsets = [8, 0], sizes = [2, 32], strides = [1, 1]} : vector<134x32xf32> to vector<2x32xf32>
    %c0_62 = arith.constant 0 : index
    %c128 = arith.constant 128 : index
    %93 = vector.load %arg14[%c0_62, %c128] : memref<2x1568xf32, #tpu.memory_space<vmem>>, vector<2x32xf32>
    tpu.vector_store %arg14[%c0_62, %c128], %92 {strides = array<i32>} : memref<2x1568xf32, #tpu.memory_space<vmem>>, vector<2x32xf32>,
    %94 = vector.extract_strided_slice %83 {offsets = [10, 0], sizes = [2, 32], strides = [1, 1]} : vector<134x32xf32> to vector<2x32xf32>
    %c0_63 = arith.constant 0 : index
    %c160 = arith.constant 160 : index
    %95 = vector.load %arg14[%c0_63, %c160] : memref<2x1568xf32, #tpu.memory_space<vmem>>, vector<2x32xf32>
    tpu.vector_store %arg14[%c0_63, %c160], %94 {strides = array<i32>} : memref<2x1568xf32, #tpu.memory_space<vmem>>, vector<2x32xf32>,
    %96 = vector.extract_strided_slice %83 {offsets = [12, 0], sizes = [2, 32], strides = [1, 1]} : vector<134x32xf32> to vector<2x32xf32>
    %c0_64 = arith.constant 0 : index
    %c192 = arith.constant 192 : index
    %97 = vector.load %arg14[%c0_64, %c192] : memref<2x1568xf32, #tpu.memory_space<vmem>>, vector<2x32xf32>
    tpu.vector_store %arg14[%c0_64, %c192], %96 {strides = array<i32>} : memref<2x1568xf32, #tpu.memory_space<vmem>>, vector<2x32xf32>,
    %98 = vector.extract_strided_slice %83 {offsets = [20, 0], sizes = [2, 32], strides = [1, 1]} : vector<134x32xf32> to vector<2x32xf32>
    %c0_65 = arith.constant 0 : index
    %c224 = arith.constant 224 : index
    %99 = vector.load %arg14[%c0_65, %c224] : memref<2x1568xf32, #tpu.memory_space<vmem>>, vector<2x32xf32>
    tpu.vector_store %arg14[%c0_65, %c224], %98 {strides = array<i32>} : memref<2x1568xf32, #tpu.memory_space<vmem>>, vector<2x32xf32>,
    %100 = vector.extract_strided_slice %83 {offsets = [22, 0], sizes = [2, 32], strides = [1, 1]} : vector<134x32xf32> to vector<2x32xf32>
    %c0_66 = arith.constant 0 : index
    %c256 = arith.constant 256 : index
    %101 = vector.load %arg14[%c0_66, %c256] : memref<2x1568xf32, #tpu.memory_space<vmem>>, vector<2x32xf32>
    tpu.vector_store %arg14[%c0_66, %c256], %100 {strides = array<i32>} : memref<2x1568xf32, #tpu.memory_space<vmem>>, vector<2x32xf32>,
    %102 = vector.extract_strided_slice %83 {offsets = [24, 0], sizes = [2, 32], strides = [1, 1]} : vector<134x32xf32> to vector<2x32xf32>
    %c0_67 = arith.constant 0 : index
    %c288 = arith.constant 288 : index
    %103 = vector.load %arg14[%c0_67, %c288] : memref<2x1568xf32, #tpu.memory_space<vmem>>, vector<2x32xf32>
    tpu.vector_store %arg14[%c0_67, %c288], %102 {strides = array<i32>} : memref<2x1568xf32, #tpu.memory_space<vmem>>, vector<2x32xf32>,
    %104 = vector.extract_strided_slice %83 {offsets = [26, 0], sizes = [2, 32], strides = [1, 1]} : vector<134x32xf32> to vector<2x32xf32>
    %c0_68 = arith.constant 0 : index
    %c320 = arith.constant 320 : index
    %105 = vector.load %arg14[%c0_68, %c320] : memref<2x1568xf32, #tpu.memory_space<vmem>>, vector<2x32xf32>
    tpu.vector_store %arg14[%c0_68, %c320], %104 {strides = array<i32>} : memref<2x1568xf32, #tpu.memory_space<vmem>>, vector<2x32xf32>,
    %106 = vector.extract_strided_slice %83 {offsets = [28, 0], sizes = [2, 32], strides = [1, 1]} : vector<134x32xf32> to vector<2x32xf32>
    %c0_69 = arith.constant 0 : index
    %c352 = arith.constant 352 : index
    %107 = vector.load %arg14[%c0_69, %c352] : memref<2x1568xf32, #tpu.memory_space<vmem>>, vector<2x32xf32>
    tpu.vector_store %arg14[%c0_69, %c352], %106 {strides = array<i32>} : memref<2x1568xf32, #tpu.memory_space<vmem>>, vector<2x32xf32>,
    %108 = vector.extract_strided_slice %83 {offsets = [30, 0], sizes = [2, 32], strides = [1, 1]} : vector<134x32xf32> to vector<2x32xf32>
    %c0_70 = arith.constant 0 : index
    %c384 = arith.constant 384 : index
    %109 = vector.load %arg14[%c0_70, %c384] : memref<2x1568xf32, #tpu.memory_space<vmem>>, vector<2x32xf32>
    tpu.vector_store %arg14[%c0_70, %c384], %108 {strides = array<i32>} : memref<2x1568xf32, #tpu.memory_space<vmem>>, vector<2x32xf32>,
    %110 = vector.extract_strided_slice %83 {offsets = [32, 0], sizes = [2, 32], strides = [1, 1]} : vector<134x32xf32> to vector<2x32xf32>
    %c0_71 = arith.constant 0 : index
    %c416 = arith.constant 416 : index
    %111 = vector.load %arg14[%c0_71, %c416] : memref<2x1568xf32, #tpu.memory_space<vmem>>, vector<2x32xf32>
    tpu.vector_store %arg14[%c0_71, %c416], %110 {strides = array<i32>} : memref<2x1568xf32, #tpu.memory_space<vmem>>, vector<2x32xf32>,
    %112 = vector.extract_strided_slice %83 {offsets = [40, 0], sizes = [2, 32], strides = [1, 1]} : vector<134x32xf32> to vector<2x32xf32>
    %c0_72 = arith.constant 0 : index
    %c448 = arith.constant 448 : index
    %113 = vector.load %arg14[%c0_72, %c448] : memref<2x1568xf32, #tpu.memory_space<vmem>>, vector<2x32xf32>
    tpu.vector_store %arg14[%c0_72, %c448], %112 {strides = array<i32>} : memref<2x1568xf32, #tpu.memory_space<vmem>>, vector<2x32xf32>,
    %114 = vector.extract_strided_slice %83 {offsets = [42, 0], sizes = [2, 32], strides = [1, 1]} : vector<134x32xf32> to vector<2x32xf32>
    %c0_73 = arith.constant 0 : index
    %c480 = arith.constant 480 : index
    %115 = vector.load %arg14[%c0_73, %c480] : memref<2x1568xf32, #tpu.memory_space<vmem>>, vector<2x32xf32>
    tpu.vector_store %arg14[%c0_73, %c480], %114 {strides = array<i32>} : memref<2x1568xf32, #tpu.memory_space<vmem>>, vector<2x32xf32>,
    %116 = vector.extract_strided_slice %83 {offsets = [44, 0], sizes = [2, 32], strides = [1, 1]} : vector<134x32xf32> to vector<2x32xf32>
    %c0_74 = arith.constant 0 : index
    %c512 = arith.constant 512 : index
    %117 = vector.load %arg14[%c0_74, %c512] : memref<2x1568xf32, #tpu.memory_space<vmem>>, vector<2x32xf32>
    tpu.vector_store %arg14[%c0_74, %c512], %116 {strides = array<i32>} : memref<2x1568xf32, #tpu.memory_space<vmem>>, vector<2x32xf32>,
    %118 = vector.extract_strided_slice %83 {offsets = [46, 0], sizes = [2, 32], strides = [1, 1]} : vector<134x32xf32> to vector<2x32xf32>
    %c0_75 = arith.constant 0 : index
    %c544 = arith.constant 544 : index
    %119 = vector.load %arg14[%c0_75, %c544] : memref<2x1568xf32, #tpu.memory_space<vmem>>, vector<2x32xf32>
    tpu.vector_store %arg14[%c0_75, %c544], %118 {strides = array<i32>} : memref<2x1568xf32, #tpu.memory_space<vmem>>, vector<2x32xf32>,
    %120 = vector.extract_strided_slice %83 {offsets = [48, 0], sizes = [2, 32], strides = [1, 1]} : vector<134x32xf32> to vector<2x32xf32>
    %c0_76 = arith.constant 0 : index
    %c576 = arith.constant 576 : index
    %121 = vector.load %arg14[%c0_76, %c576] : memref<2x1568xf32, #tpu.memory_space<vmem>>, vector<2x32xf32>
    tpu.vector_store %arg14[%c0_76, %c576], %120 {strides = array<i32>} : memref<2x1568xf32, #tpu.memory_space<vmem>>, vector<2x32xf32>,
    %122 = vector.extract_strided_slice %83 {offsets = [50, 0], sizes = [2, 32], strides = [1, 1]} : vector<134x32xf32> to vector<2x32xf32>
    %c0_77 = arith.constant 0 : index
    %c608 = arith.constant 608 : index
    %123 = vector.load %arg14[%c0_77, %c608] : memref<2x1568xf32, #tpu.memory_space<vmem>>, vector<2x32xf32>
    tpu.vector_store %arg14[%c0_77, %c608], %122 {strides = array<i32>} : memref<2x1568xf32, #tpu.memory_space<vmem>>, vector<2x32xf32>,
    %124 = vector.extract_strided_slice %83 {offsets = [52, 0], sizes = [2, 32], strides = [1, 1]} : vector<134x32xf32> to vector<2x32xf32>
    %c0_78 = arith.constant 0 : index
    %c640 = arith.constant 640 : index
    %125 = vector.load %arg14[%c0_78, %c640] : memref<2x1568xf32, #tpu.memory_space<vmem>>, vector<2x32xf32>
    tpu.vector_store %arg14[%c0_78, %c640], %124 {strides = array<i32>} : memref<2x1568xf32, #tpu.memory_space<vmem>>, vector<2x32xf32>,
    %126 = vector.extract_strided_slice %83 {offsets = [60, 0], sizes = [2, 32], strides = [1, 1]} : vector<134x32xf32> to vector<2x32xf32>
    %c0_79 = arith.constant 0 : index
    %c672 = arith.constant 672 : index
    %127 = vector.load %arg14[%c0_79, %c672] : memref<2x1568xf32, #tpu.memory_space<vmem>>, vector<2x32xf32>
    tpu.vector_store %arg14[%c0_79, %c672], %126 {strides = array<i32>} : memref<2x1568xf32, #tpu.memory_space<vmem>>, vector<2x32xf32>,
    %128 = vector.extract_strided_slice %83 {offsets = [62, 0], sizes = [2, 32], strides = [1, 1]} : vector<134x32xf32> to vector<2x32xf32>
    %c0_80 = arith.constant 0 : index
    %c704 = arith.constant 704 : index
    %129 = vector.load %arg14[%c0_80, %c704] : memref<2x1568xf32, #tpu.memory_space<vmem>>, vector<2x32xf32>
    tpu.vector_store %arg14[%c0_80, %c704], %128 {strides = array<i32>} : memref<2x1568xf32, #tpu.memory_space<vmem>>, vector<2x32xf32>,
    %130 = vector.extract_strided_slice %83 {offsets = [64, 0], sizes = [2, 32], strides = [1, 1]} : vector<134x32xf32> to vector<2x32xf32>
    %c0_81 = arith.constant 0 : index
    %c736 = arith.constant 736 : index
    %131 = vector.load %arg14[%c0_81, %c736] : memref<2x1568xf32, #tpu.memory_space<vmem>>, vector<2x32xf32>
    tpu.vector_store %arg14[%c0_81, %c736], %130 {strides = array<i32>} : memref<2x1568xf32, #tpu.memory_space<vmem>>, vector<2x32xf32>,
    %132 = vector.extract_strided_slice %83 {offsets = [66, 0], sizes = [2, 32], strides = [1, 1]} : vector<134x32xf32> to vector<2x32xf32>
    %c0_82 = arith.constant 0 : index
    %c768 = arith.constant 768 : index
    %133 = vector.load %arg14[%c0_82, %c768] : memref<2x1568xf32, #tpu.memory_space<vmem>>, vector<2x32xf32>
    tpu.vector_store %arg14[%c0_82, %c768], %132 {strides = array<i32>} : memref<2x1568xf32, #tpu.memory_space<vmem>>, vector<2x32xf32>,
    %134 = vector.extract_strided_slice %83 {offsets = [68, 0], sizes = [2, 32], strides = [1, 1]} : vector<134x32xf32> to vector<2x32xf32>
    %c0_83 = arith.constant 0 : index
    %c800 = arith.constant 800 : index
    %135 = vector.load %arg14[%c0_83, %c800] : memref<2x1568xf32, #tpu.memory_space<vmem>>, vector<2x32xf32>
    tpu.vector_store %arg14[%c0_83, %c800], %134 {strides = array<i32>} : memref<2x1568xf32, #tpu.memory_space<vmem>>, vector<2x32xf32>,
    %136 = vector.extract_strided_slice %83 {offsets = [70, 0], sizes = [2, 32], strides = [1, 1]} : vector<134x32xf32> to vector<2x32xf32>
    %c0_84 = arith.constant 0 : index
    %c832 = arith.constant 832 : index
    %137 = vector.load %arg14[%c0_84, %c832] : memref<2x1568xf32, #tpu.memory_space<vmem>>, vector<2x32xf32>
    tpu.vector_store %arg14[%c0_84, %c832], %136 {strides = array<i32>} : memref<2x1568xf32, #tpu.memory_space<vmem>>, vector<2x32xf32>,
    %138 = vector.extract_strided_slice %83 {offsets = [72, 0], sizes = [2, 32], strides = [1, 1]} : vector<134x32xf32> to vector<2x32xf32>
    %c0_85 = arith.constant 0 : index
    %c864 = arith.constant 864 : index
    %139 = vector.load %arg14[%c0_85, %c864] : memref<2x1568xf32, #tpu.memory_space<vmem>>, vector<2x32xf32>
    tpu.vector_store %arg14[%c0_85, %c864], %138 {strides = array<i32>} : memref<2x1568xf32, #tpu.memory_space<vmem>>, vector<2x32xf32>,
    %140 = vector.extract_strided_slice %83 {offsets = [80, 0], sizes = [2, 32], strides = [1, 1]} : vector<134x32xf32> to vector<2x32xf32>
    %c0_86 = arith.constant 0 : index
    %c896 = arith.constant 896 : index
    %141 = vector.load %arg14[%c0_86, %c896] : memref<2x1568xf32, #tpu.memory_space<vmem>>, vector<2x32xf32>
    tpu.vector_store %arg14[%c0_86, %c896], %140 {strides = array<i32>} : memref<2x1568xf32, #tpu.memory_space<vmem>>, vector<2x32xf32>,
    %142 = vector.extract_strided_slice %83 {offsets = [82, 0], sizes = [2, 32], strides = [1, 1]} : vector<134x32xf32> to vector<2x32xf32>
    %c0_87 = arith.constant 0 : index
    %c928 = arith.constant 928 : index
    %143 = vector.load %arg14[%c0_87, %c928] : memref<2x1568xf32, #tpu.memory_space<vmem>>, vector<2x32xf32>
    tpu.vector_store %arg14[%c0_87, %c928], %142 {strides = array<i32>} : memref<2x1568xf32, #tpu.memory_space<vmem>>, vector<2x32xf32>,
    %144 = vector.extract_strided_slice %83 {offsets = [84, 0], sizes = [2, 32], strides = [1, 1]} : vector<134x32xf32> to vector<2x32xf32>
    %c0_88 = arith.constant 0 : index
    %c960 = arith.constant 960 : index
    %145 = vector.load %arg14[%c0_88, %c960] : memref<2x1568xf32, #tpu.memory_space<vmem>>, vector<2x32xf32>
    tpu.vector_store %arg14[%c0_88, %c960], %144 {strides = array<i32>} : memref<2x1568xf32, #tpu.memory_space<vmem>>, vector<2x32xf32>,
    %146 = vector.extract_strided_slice %83 {offsets = [86, 0], sizes = [2, 32], strides = [1, 1]} : vector<134x32xf32> to vector<2x32xf32>
    %c0_89 = arith.constant 0 : index
    %c992 = arith.constant 992 : index
    %147 = vector.load %arg14[%c0_89, %c992] : memref<2x1568xf32, #tpu.memory_space<vmem>>, vector<2x32xf32>
    tpu.vector_store %arg14[%c0_89, %c992], %146 {strides = array<i32>} : memref<2x1568xf32, #tpu.memory_space<vmem>>, vector<2x32xf32>,
    %148 = vector.extract_strided_slice %83 {offsets = [88, 0], sizes = [2, 32], strides = [1, 1]} : vector<134x32xf32> to vector<2x32xf32>
    %c0_90 = arith.constant 0 : index
    %c1024 = arith.constant 1024 : index
    %149 = vector.load %arg14[%c0_90, %c1024] : memref<2x1568xf32, #tpu.memory_space<vmem>>, vector<2x32xf32>
    tpu.vector_store %arg14[%c0_90, %c1024], %148 {strides = array<i32>} : memref<2x1568xf32, #tpu.memory_space<vmem>>, vector<2x32xf32>,
    %150 = vector.extract_strided_slice %83 {offsets = [90, 0], sizes = [2, 32], strides = [1, 1]} : vector<134x32xf32> to vector<2x32xf32>
    %c0_91 = arith.constant 0 : index
    %c1056 = arith.constant 1056 : index
    %151 = vector.load %arg14[%c0_91, %c1056] : memref<2x1568xf32, #tpu.memory_space<vmem>>, vector<2x32xf32>
    tpu.vector_store %arg14[%c0_91, %c1056], %150 {strides = array<i32>} : memref<2x1568xf32, #tpu.memory_space<vmem>>, vector<2x32xf32>,
    %152 = vector.extract_strided_slice %83 {offsets = [92, 0], sizes = [2, 32], strides = [1, 1]} : vector<134x32xf32> to vector<2x32xf32>
    %c0_92 = arith.constant 0 : index
    %c1088 = arith.constant 1088 : index
    %153 = vector.load %arg14[%c0_92, %c1088] : memref<2x1568xf32, #tpu.memory_space<vmem>>, vector<2x32xf32>
    tpu.vector_store %arg14[%c0_92, %c1088], %152 {strides = array<i32>} : memref<2x1568xf32, #tpu.memory_space<vmem>>, vector<2x32xf32>,
    %154 = vector.extract_strided_slice %83 {offsets = [100, 0], sizes = [2, 32], strides = [1, 1]} : vector<134x32xf32> to vector<2x32xf32>
    %c0_93 = arith.constant 0 : index
    %c1120 = arith.constant 1120 : index
    %155 = vector.load %arg14[%c0_93, %c1120] : memref<2x1568xf32, #tpu.memory_space<vmem>>, vector<2x32xf32>
    tpu.vector_store %arg14[%c0_93, %c1120], %154 {strides = array<i32>} : memref<2x1568xf32, #tpu.memory_space<vmem>>, vector<2x32xf32>,
    %156 = vector.extract_strided_slice %83 {offsets = [102, 0], sizes = [2, 32], strides = [1, 1]} : vector<134x32xf32> to vector<2x32xf32>
    %c0_94 = arith.constant 0 : index
    %c1152 = arith.constant 1152 : index
    %157 = vector.load %arg14[%c0_94, %c1152] : memref<2x1568xf32, #tpu.memory_space<vmem>>, vector<2x32xf32>
    tpu.vector_store %arg14[%c0_94, %c1152], %156 {strides = array<i32>} : memref<2x1568xf32, #tpu.memory_space<vmem>>, vector<2x32xf32>,
    %158 = vector.extract_strided_slice %83 {offsets = [104, 0], sizes = [2, 32], strides = [1, 1]} : vector<134x32xf32> to vector<2x32xf32>
    %c0_95 = arith.constant 0 : index
    %c1184 = arith.constant 1184 : index
    %159 = vector.load %arg14[%c0_95, %c1184] : memref<2x1568xf32, #tpu.memory_space<vmem>>, vector<2x32xf32>
    tpu.vector_store %arg14[%c0_95, %c1184], %158 {strides = array<i32>} : memref<2x1568xf32, #tpu.memory_space<vmem>>, vector<2x32xf32>,
    %160 = vector.extract_strided_slice %83 {offsets = [106, 0], sizes = [2, 32], strides = [1, 1]} : vector<134x32xf32> to vector<2x32xf32>
    %c0_96 = arith.constant 0 : index
    %c1216 = arith.constant 1216 : index
    %161 = vector.load %arg14[%c0_96, %c1216] : memref<2x1568xf32, #tpu.memory_space<vmem>>, vector<2x32xf32>
    tpu.vector_store %arg14[%c0_96, %c1216], %160 {strides = array<i32>} : memref<2x1568xf32, #tpu.memory_space<vmem>>, vector<2x32xf32>,
    %162 = vector.extract_strided_slice %83 {offsets = [108, 0], sizes = [2, 32], strides = [1, 1]} : vector<134x32xf32> to vector<2x32xf32>
    %c0_97 = arith.constant 0 : index
    %c1248 = arith.constant 1248 : index
    %163 = vector.load %arg14[%c0_97, %c1248] : memref<2x1568xf32, #tpu.memory_space<vmem>>, vector<2x32xf32>
    tpu.vector_store %arg14[%c0_97, %c1248], %162 {strides = array<i32>} : memref<2x1568xf32, #tpu.memory_space<vmem>>, vector<2x32xf32>,
    %164 = vector.extract_strided_slice %83 {offsets = [110, 0], sizes = [2, 32], strides = [1, 1]} : vector<134x32xf32> to vector<2x32xf32>
    %c0_98 = arith.constant 0 : index
    %c1280 = arith.constant 1280 : index
    %165 = vector.load %arg14[%c0_98, %c1280] : memref<2x1568xf32, #tpu.memory_space<vmem>>, vector<2x32xf32>
    tpu.vector_store %arg14[%c0_98, %c1280], %164 {strides = array<i32>} : memref<2x1568xf32, #tpu.memory_space<vmem>>, vector<2x32xf32>,
    %166 = vector.extract_strided_slice %83 {offsets = [112, 0], sizes = [2, 32], strides = [1, 1]} : vector<134x32xf32> to vector<2x32xf32>
    %c0_99 = arith.constant 0 : index
    %c1312 = arith.constant 1312 : index
    %167 = vector.load %arg14[%c0_99, %c1312] : memref<2x1568xf32, #tpu.memory_space<vmem>>, vector<2x32xf32>
    tpu.vector_store %arg14[%c0_99, %c1312], %166 {strides = array<i32>} : memref<2x1568xf32, #tpu.memory_space<vmem>>, vector<2x32xf32>,
    %168 = vector.extract_strided_slice %83 {offsets = [120, 0], sizes = [2, 32], strides = [1, 1]} : vector<134x32xf32> to vector<2x32xf32>
    %c0_100 = arith.constant 0 : index
    %c1344 = arith.constant 1344 : index
    %169 = vector.load %arg14[%c0_100, %c1344] : memref<2x1568xf32, #tpu.memory_space<vmem>>, vector<2x32xf32>
    tpu.vector_store %arg14[%c0_100, %c1344], %168 {strides = array<i32>} : memref<2x1568xf32, #tpu.memory_space<vmem>>, vector<2x32xf32>,
    %170 = vector.extract_strided_slice %83 {offsets = [122, 0], sizes = [2, 32], strides = [1, 1]} : vector<134x32xf32> to vector<2x32xf32>
    %c0_101 = arith.constant 0 : index
    %c1376 = arith.constant 1376 : index
    %171 = vector.load %arg14[%c0_101, %c1376] : memref<2x1568xf32, #tpu.memory_space<vmem>>, vector<2x32xf32>
    tpu.vector_store %arg14[%c0_101, %c1376], %170 {strides = array<i32>} : memref<2x1568xf32, #tpu.memory_space<vmem>>, vector<2x32xf32>,
    %172 = vector.extract_strided_slice %83 {offsets = [124, 0], sizes = [2, 32], strides = [1, 1]} : vector<134x32xf32> to vector<2x32xf32>
    %c0_102 = arith.constant 0 : index
    %c1408 = arith.constant 1408 : index
    %173 = vector.load %arg14[%c0_102, %c1408] : memref<2x1568xf32, #tpu.memory_space<vmem>>, vector<2x32xf32>
    tpu.vector_store %arg14[%c0_102, %c1408], %172 {strides = array<i32>} : memref<2x1568xf32, #tpu.memory_space<vmem>>, vector<2x32xf32>,
    %174 = vector.extract_strided_slice %83 {offsets = [126, 0], sizes = [2, 32], strides = [1, 1]} : vector<134x32xf32> to vector<2x32xf32>
    %c0_103 = arith.constant 0 : index
    %c1440 = arith.constant 1440 : index
    %175 = vector.load %arg14[%c0_103, %c1440] : memref<2x1568xf32, #tpu.memory_space<vmem>>, vector<2x32xf32>
    tpu.vector_store %arg14[%c0_103, %c1440], %174 {strides = array<i32>} : memref<2x1568xf32, #tpu.memory_space<vmem>>, vector<2x32xf32>,
    %176 = vector.extract_strided_slice %83 {offsets = [128, 0], sizes = [2, 32], strides = [1, 1]} : vector<134x32xf32> to vector<2x32xf32>
    %c0_104 = arith.constant 0 : index
    %c1472 = arith.constant 1472 : index
    %177 = vector.load %arg14[%c0_104, %c1472] : memref<2x1568xf32, #tpu.memory_space<vmem>>, vector<2x32xf32>
    tpu.vector_store %arg14[%c0_104, %c1472], %176 {strides = array<i32>} : memref<2x1568xf32, #tpu.memory_space<vmem>>, vector<2x32xf32>,
    %178 = vector.extract_strided_slice %83 {offsets = [130, 0], sizes = [2, 32], strides = [1, 1]} : vector<134x32xf32> to vector<2x32xf32>
    %c0_105 = arith.constant 0 : index
    %c1504 = arith.constant 1504 : index
    %179 = vector.load %arg14[%c0_105, %c1504] : memref<2x1568xf32, #tpu.memory_space<vmem>>, vector<2x32xf32>
    tpu.vector_store %arg14[%c0_105, %c1504], %178 {strides = array<i32>} : memref<2x1568xf32, #tpu.memory_space<vmem>>, vector<2x32xf32>,
    %180 = vector.extract_strided_slice %83 {offsets = [132, 0], sizes = [2, 32], strides = [1, 1]} : vector<134x32xf32> to vector<2x32xf32>
    %c0_106 = arith.constant 0 : index
    %c1536 = arith.constant 1536 : index
    %181 = vector.load %arg14[%c0_106, %c1536] : memref<2x1568xf32, #tpu.memory_space<vmem>>, vector<2x32xf32>
    tpu.vector_store %arg14[%c0_106, %c1536], %180 {strides = array<i32>} : memref<2x1568xf32, #tpu.memory_space<vmem>>, vector<2x32xf32>,
    %c0_107 = arith.constant 0 : index
    %c0_108 = arith.constant 0 : index
    %182 = vector.load %arg14[%c0_107, %c0_108] : memref<2x1568xf32, #tpu.memory_space<vmem>>, vector<2x1568xf32>
    %183 = arith.truncf %182 : vector<2x1568xf32> to vector<2x1568xbf16>
    %c0_109 = arith.constant 0 : index
    %c0_110 = arith.constant 0 : index
    %184 = vector.load %arg8[%c0_109, %c0_110] : memref<1568x256xbf16, #tpu.memory_space<vmem>>, vector<1568x256xbf16>
    %cst_111 = arith.constant dense<0.000000e+00> : vector<2x256xf32>
    %185 = tpu.matmul %183, %184, %cst_111 {dimension_numbers = #tpu.dot_dimension_numbers<[1], [0], [0], [1], [0, 0, 1, 1], [], []>} : vector<2x1568xbf16>, vector<1568x256xbf16>, vector<2x256xf32> -> vector<2x256xf32>
    %c0_112 = arith.constant 0 : index
    %c0_113 = arith.constant 0 : index
    %186 = vector.load %arg9[%c0_112, %c0_113] : memref<1x256xf32, #tpu.memory_space<vmem>>, vector<1x256xf32>
    %187 = vector.broadcast %186 : vector<1x256xf32> to vector<2x256xf32>
    %188 = arith.addf %185, %187 : vector<2x256xf32>
    %cst_114 = arith.constant 0.000000e+00 : f32
    %189 = vector.broadcast %cst_114 : f32 to vector<2x256xf32>
    %190 = arith.maximumf %188, %189 : vector<2x256xf32>
    %c0_115 = arith.constant 0 : index
    %c0_116 = arith.constant 0 : index
    %c0_117 = arith.constant 0 : index
    %191 = vector.load %arg12[%c0_115, %c0_116, %c0_117] : memref<1x2x256xf32, #tpu.memory_space<vmem>>, vector<1x2x256xf32>
    %192 = vector.shape_cast %191 : vector<1x2x256xf32> to vector<2x256xf32>
    %193 = vector.shape_cast %190 : vector<2x256xf32> to vector<1x2x256xf32>
    tpu.vector_store %arg12[%c0_115, %c0_116, %c0_117], %193 {strides = array<i32>} : memref<1x2x256xf32, #tpu.memory_space<vmem>>, vector<1x2x256xf32>,
    %c0_118 = arith.constant 0 : index
    %c0_119 = arith.constant 0 : index
    %194 = vector.load %arg10[%c0_118, %c0_119] : memref<1x256xf32, #tpu.memory_space<vmem>>, vector<1x256xf32>
    %195 = vector.broadcast %194 : vector<1x256xf32> to vector<2x256xf32>
    %196 = arith.mulf %190, %195 : vector<2x256xf32>
    %cst_120 = arith.constant dense<0.000000e+00> : vector<2xf32>
    %197 = vector.multi_reduction <add>, %196, %cst_120 [1] : vector<2x256xf32> to vector<2xf32>
    %198 = vector.shape_cast %197 : vector<2xf32> to vector<2x1xf32>
    %c0_121 = arith.constant 0 : index
    %c0_122 = arith.constant 0 : index
    %199 = vector.load %arg11[%c0_121, %c0_122] : memref<1x1xf32, #tpu.memory_space<vmem>>, vector<1x1xf32>
    %200 = vector.broadcast %199 : vector<1x1xf32> to vector<2x1xf32>
    %201 = arith.addf %198, %200 : vector<2x1xf32>
    %c0_123 = arith.constant 0 : index
    %c0_124 = arith.constant 0 : index
    %c0_125 = arith.constant 0 : index
    %202 = vector.load %arg13[%c0_123, %c0_124, %c0_125] : memref<1x2x1xf32, #tpu.memory_space<vmem>>, vector<1x2x1xf32>
    %203 = vector.shape_cast %202 : vector<1x2x1xf32> to vector<2x1xf32>
    %204 = vector.shape_cast %201 : vector<2x1xf32> to vector<1x2x1xf32>
    tpu.vector_store %arg13[%c0_123, %c0_124, %c0_125], %204 {strides = array<i32>} : memref<1x2x1xf32, #tpu.memory_space<vmem>>, vector<1x2x1xf32>,
    return
  }
  func.func @transform_0(%arg0: i32) -> (i32, i32, i32) {
    %c0_i32 = arith.constant 0 : i32
    %c0_i32_0 = arith.constant 0 : i32
    %c0_i32_1 = arith.constant 0 : i32
    return %arg0, %c0_i32, %c0_i32_0 : i32, i32, i32
  }
  func.func @transform_1(%arg0: i32) -> (i32, i32) {
    %c0_i32 = arith.constant 0 : i32
    %c0_i32_0 = arith.constant 0 : i32
    %c0_i32_1 = arith.constant 0 : i32
    return %c0_i32, %c0_i32_0 : i32, i32
  }
  func.func @transform_2(%arg0: i32) -> (i32, i32) {
    %c0_i32 = arith.constant 0 : i32
    %c0_i32_0 = arith.constant 0 : i32
    %c0_i32_1 = arith.constant 0 : i32
    return %c0_i32, %c0_i32_0 : i32, i32
  }
  func.func @transform_3(%arg0: i32) -> (i32, i32, i32) {
    %c0_i32 = arith.constant 0 : i32
    %c0_i32_0 = arith.constant 0 : i32
    %c0_i32_1 = arith.constant 0 : i32
    %c0_i32_2 = arith.constant 0 : i32
    return %c0_i32, %c0_i32_0, %c0_i32_1 : i32, i32, i32
  }
  func.func @transform_4(%arg0: i32) -> (i32, i32) {
    %c0_i32 = arith.constant 0 : i32
    %c0_i32_0 = arith.constant 0 : i32
    %c0_i32_1 = arith.constant 0 : i32
    return %c0_i32, %c0_i32_0 : i32, i32
  }
  func.func @transform_5(%arg0: i32) -> (i32, i32, i32) {
    %c0_i32 = arith.constant 0 : i32
    %c0_i32_0 = arith.constant 0 : i32
    %c0_i32_1 = arith.constant 0 : i32
    %c0_i32_2 = arith.constant 0 : i32
    return %c0_i32, %c0_i32_0, %c0_i32_1 : i32, i32, i32
  }
  func.func @transform_6(%arg0: i32) -> (i32, i32) {
    %c0_i32 = arith.constant 0 : i32
    %c0_i32_0 = arith.constant 0 : i32
    %c0_i32_1 = arith.constant 0 : i32
    return %c0_i32, %c0_i32_0 : i32, i32
  }
  func.func @transform_7(%arg0: i32) -> (i32, i32) {
    %c0_i32 = arith.constant 0 : i32
    %c0_i32_0 = arith.constant 0 : i32
    %c0_i32_1 = arith.constant 0 : i32
    return %c0_i32, %c0_i32_0 : i32, i32
  }
  func.func @transform_8(%arg0: i32) -> (i32, i32) {
    %c0_i32 = arith.constant 0 : i32
    %c0_i32_0 = arith.constant 0 : i32
    %c0_i32_1 = arith.constant 0 : i32
    return %c0_i32, %c0_i32_0 : i32, i32
  }
  func.func @transform_9(%arg0: i32) -> (i32, i32) {
    %c0_i32 = arith.constant 0 : i32
    %c0_i32_0 = arith.constant 0 : i32
    %c0_i32_1 = arith.constant 0 : i32
    return %c0_i32, %c0_i32_0 : i32, i32
  }
  func.func @transform_10(%arg0: i32) -> (i32, i32) {
    %c0_i32 = arith.constant 0 : i32
    %c0_i32_0 = arith.constant 0 : i32
    %c0_i32_1 = arith.constant 0 : i32
    return %c0_i32, %c0_i32_0 : i32, i32
  }
  func.func @transform_11(%arg0: i32) -> (i32, i32, i32) {
    %c0_i32 = arith.constant 0 : i32
    %c0_i32_0 = arith.constant 0 : i32
    %c0_i32_1 = arith.constant 0 : i32
    return %arg0, %c0_i32, %c0_i32_0 : i32, i32, i32
  }
  func.func @transform_12(%arg0: i32) -> (i32, i32, i32) {
    %c0_i32 = arith.constant 0 : i32
    %c0_i32_0 = arith.constant 0 : i32
    %c0_i32_1 = arith.constant 0 : i32
    return %arg0, %c0_i32, %c0_i32_0 : i32, i32, i32
  }
}

</mosaic_0001>

<bundles_post_ra>
// kernel: cnnbase_forward.1
= control target key start
LH: loop header
LB: loop body
LE: loop exit
PB: predicated region body
PF: predicated region fallthrough
CT: control target
= control target key end

     0   :  { %s8726_s23 = smov 0   ;;  %s11257_s0 = inlined_call_operand.vmem [shape: bf16[2,200,576], index: 0, kind: input, shape index: {}]   ;;  %s11258_s1 = inlined_call_operand.vmem [shape: bf16[576,128], index: 1, kind: input, shape index: {}]   ;;  %s11259_s2 = inlined_call_operand.vmem [shape: f32[1,128], index: 2, kind: input, shape index: {}]   ;;  %s11260_s3 = inlined_call_operand.vmem [shape: bf16[4,128,64], index: 3, kind: input, shape index: {}]   ;;  %s11261_s4 = inlined_call_operand.vmem [shape: f32[1,64], index: 4, kind: input, shape index: {}]   ;;  %s11262_s5 = inlined_call_operand.vmem [shape: bf16[9,64,32], index: 5, kind: input, shape index: {}]   ;;  %s11263_s6 = inlined_call_operand.vmem [shape: f32[1,32], index: 6, kind: input, shape index: {}]   ;;  %s11264_s7 = inlined_call_operand.vmem [shape: bf16[1568,256], index: 7, kind: input, shape index: {}]   ;;  %s11265_s8 = inlined_call_operand.vmem [shape: f32[1,256], index: 8, kind: input, shape index: {}]   ;;  %s11266_s9 = inlined_call_operand.vmem [shape: f32[1,256], index: 9, kind: input, shape index: {}]   ;;  %s11267_s10 = inlined_call_operand.<no memory space> [shape: f32[1,1], index: 10, kind: input, shape index: {}]   ;;  %s11268_s11 = inlined_call_operand.vmem [shape: f32[2,2,256], index: 11, kind: output, shape index: {0}]   ;;  %s11269_s12 = inlined_call_operand.vmem [shape: f32[2,2,1], index: 12, kind: output, shape index: {1}]  }
   0x1   :  { %v18_v0 = vstv %s11267_s10 }
   0x2   :  { %19 = vst [vmem:[#allocation3] sm:$0x1] %v18_v0 }
   0x3 LB: > { %s6439_s24 = sadd.s32 4294967295, %s8649_s23   ;;  %p6443_p0 = scmp.ge.s32.totalorder %s8649_s23, 1  ;;  %s8649_s23 = sphi %s8726_s23, %s25_s23  }
   0x4   : > { %p367_p1 = scmp.lt.s32.totalorder %s8649_s23, 3 }
   0x6   : > { %p368_p2 = pnand %p6443_p0, %p367_p1 }
   0x7   : > { %v8155_v1 = vld [vmem:[%s11258_s1 + $0x40] sm:$0xff] (!%p368_p2)   ;;  %v8157_v3 = vld [vmem:[%s11258_s1 + $0x48] sm:$0xff] (!%p368_p2)   ;;  %p413_p3 = scmp.lt.s32.totalorder (!%p368_p2), %s6439_s24, 1  ;;  %v11270_v4 = vmov (!%p368_p2), 0.0   ;;  %v8159_v6 = vld [vmem:[%s11258_s1 + $0x50] sm:$0xff] (!%p368_p2)   ;;  %vm8652_vm0 = vmmov (!%p368_p2), 0  }
   0x8   : > { %371 = sbr.rel (%p368_p2) target bundleno = 2093 (0x82d), region = 64  ;;  %v8156_v2 = vld [vmem:[%s11258_s1] sm:$0xff] (!%p368_p2)   ;;  %7029 = vmatprep.subr.bf16.mxu1 (!%p368_p2), %v8155_v1  ;;  %7431 = vmatprep.subr.bf16.mxu0 (!%p368_p2), %v11270_v4  ;;  %v8158_v5 = vld [vmem:[%s11258_s1 + $0x8] sm:$0xff] (!%p368_p2)   ;;  %v8160_v7 = vld [vmem:[%s11258_s1 + $0x10] sm:$0xff] (!%p368_p2)   ;;  %vm1115_vm1 = vcmask (!%p368_p2), 523264   ;;  %vm1646_vm2 = vcmask (!%p368_p2), 1046528  }
   0x9   : > { %7030 = vmatpush3.bf16.msra.mxu1 (!%p368_p2), %v8156_v2  ;;  %v8161_v8 = vld [vmem:[%s11258_s1 + $0x58] sm:$0xff] (!%p368_p2)   ;;  %7439 = vmatprep.mubr.msk.bf16.mxu0 (!%p368_p2), %vm8652_vm0, %v11270_v4  ;;  %v8163_v10 = vld [vmem:[%s11258_s1 + $0x60] sm:$0xff] (!%p368_p2)   ;;  %v8165_v12 = vld [vmem:[%s11258_s1 + $0x68] sm:$0xff] (!%p368_p2)   ;;  %vm2052_vm3 = vcmask (!%p368_p2), 1045504   ;;  %vm2304_vm4 = vcmask (!%p368_p2), 1044480   ;;  %vm3525_vm5 = vcmask (!%p368_p2), 1043456  }
   0xa   : > { %7031 = vmatprep.subr.bf16.mxu1 (!%p368_p2), %v8157_v3  ;;  %v8162_v9 = vld [vmem:[%s11258_s1 + $0x18] sm:$0xff] (!%p368_p2)   ;;  %v8164_v11 = vld [vmem:[%s11258_s1 + $0x20] sm:$0xff] (!%p368_p2)   ;;  %v8166_v14 = vld [vmem:[%s11258_s1 + $0x28] sm:$0xff] (!%p368_p2)   ;;  %vm4087_vm6 = vcmask (!%p368_p2), 1041408   ;;  %vm3887_vm7 = vcmask (!%p368_p2), 1042432   ;;  %vm4320_vm8 = vcmask (!%p368_p2), 254976  }
   0xb   : > { %v8167_v15 = vld [vmem:[%s11258_s1 + $0x70] sm:$0xff] (!%p368_p2)   ;;  %v8169_v17 = vld [vmem:[%s11258_s1 + $0x78] sm:$0xff] (!%p368_p2)   ;;  %v8174_v19 = vld [vmem:[%s11258_s1 + $0xc0] sm:$0xff] (!%p368_p2)   ;;  %s8654_s16 = smov (!%p368_p2), 32   ;;  %s8655_s25 = smov (!%p368_p2), 64   ;;  %vm4334_vm9 = vcmask (!%p368_p2), 517376  }
   0xc   : > { %v8168_v16 = vld [vmem:[%s11258_s1 + $0x30] sm:$0xff] (!%p368_p2)   ;;  %v8170_v18 = vld [vmem:[%s11258_s1 + $0x38] sm:$0xff] (!%p368_p2)   ;;  %v8175_v21 = vld [vmem:[%s11258_s1 + $0x80] sm:$0xff] (!%p368_p2)   ;;  %s8656_s29 = smov (!%p368_p2), 96   ;;  %vm4347_vm10 = vcmask (!%p368_p2), 779776   ;;  %vm4353_vm11 = vcmask (!%p368_p2), 1042176  }
   0xd   : > { %7032 = vmatpush3.bf16.msra.mxu1 (!%p368_p2), %v8158_v5  ;;  %v8179_v23 = vld [vmem:[%s11258_s1 + $0xc8] sm:$0xff] (!%p368_p2)   ;;  %v8187_v25 = vld [vmem:[%s11258_s1 + $0xd0] sm:$0xff] (!%p368_p2)   ;;  %v8194_v29 = vld [vmem:[%s11258_s1 + $0xd8] sm:$0xff] (!%p368_p2)   ;;  %vm6018_vm12 = vcmask (!%p368_p2), 261120   ;;  %vm6351_vm13 = vcmask (!%p368_p2), 1024  }
   0xe   : > { %7033 = vmatprep.subr.bf16.mxu1 (!%p368_p2), %v8159_v6  ;;  %v8180_v24 = vld [vmem:[%s11258_s1 + $0x88] sm:$0xff] (!%p368_p2)   ;;  %v8188_v28 = vld [vmem:[%s11258_s1 + $0x90] sm:$0xff] (!%p368_p2)   ;;  %v8196_v30 = vld [vmem:[%s11258_s1 + $0x98] sm:$0xff] (!%p368_p2)  }
   0xf   : > { %s11274_s24 = smov (!%p413_p3, %s6439_s24), 1  ;;  %v8200_v31 = vld [vmem:[%s11258_s1 + $0xe0] sm:$0xff]   ;;  %v8208_v36 = vld [vmem:[%s11258_s1 + $0xe8] sm:$0xff]   ;;  %v8213_v39 = vld [vmem:[%s11258_s1 + $0xf0] sm:$0xff]  }
  0x10   : > { %s8139_s20 = smul.u32 500, %s11274_s24  ;;  %v8201_v34 = vld [vmem:[%s11258_s1 + $0xa0] sm:$0xff]   ;;  %v8225_v37 = vld [vmem:[%s11258_s1 + $0x108] sm:$0xff]   ;;  %v8227_v40 = vld [vmem:[%s11258_s1 + $0x110] sm:$0xff]   ;;  %s6447_s10 = sshll.u32 %s11274_s24, 1 }
  0x11   : > { %7034 = vmatpush3.bf16.msra.mxu1 %v8160_v7  ;;  %v8222_v35 = vld [vmem:[%s11258_s1 + $0x100] sm:$0xff]   ;;  %v8209_v38 = vld [vmem:[%s11258_s1 + $0xa8] sm:$0xff]   ;;  %v8216_v43 = vld [vmem:[%s11258_s1 + $0xb0] sm:$0xff]  }
  0x12   : > { %7035 = vmatprep.subr.bf16.mxu1 %v8161_v8  ;;  %s8770_s28 = scalar_lea.vmem %s11257_s0, %s8139_s20  ;;  %7432 = vmatpush3.bf16.msra.mxu0 %v8222_v35  ;;  %v8221_v44 = vld [vmem:[%s11258_s1 + $0xf8] sm:$0xff]   ;;  %s7028_s20 = sshll.u32 %s11274_s24, 2 }
  0x13   : > { %v8173_v13 = vld [vmem:[%s8770_s28 + $0x4] ss:$20 sps:$4 sm:$0xff]   ;;  %v8171_v20 = vld [vmem:[%s8770_s28] ss:$20 sps:$4 sm:$0xff]   ;;  %v8178_v26 = vld [vmem:[%s8770_s28 + $0x28] ss:$20 sps:$4 sm:$0xff]   ;;  %7433 = vmatprep.subr.bf16.mxu0 %v11270_v4  ;;  %s422_s26 = scalar_lea.vmem %s11268_s11, %s7028_s20 }
  0x14   : > { %1187 = vmatprep.mubr.bf16.mxu1 %v8173_v13  ;;  %v8176_v22 = vld [vmem:[%s8770_s28 + $0x2c] ss:$20 sps:$4 sm:$0xff]   ;;  %v8181_v27 = vld [vmem:[%s8770_s28 + $0x54] ss:$20 sps:$4 sm:$0xff]   ;;  %v8183_v32 = vld [vmem:[%s8770_s28 + $0x50] ss:$20 sps:$4 sm:$0xff]  }
  0x15   : > { %7036 = vmatpush3.bf16.msra.mxu1 %v8162_v9  ;;  %v8184_v33 = vld [vmem:[%s8770_s28 + $0x7c] ss:$20 sps:$4 sm:$0xff]   ;;  %v8186_v41 = vld [vmem:[%s8770_s28 + $0x78] ss:$20 sps:$4 sm:$0xff]   ;;  %v8191_v48 = vld [vmem:[%s8770_s28 + $0xa0] ss:$20 sps:$4 sm:$0xff]  }
  0x16   : > { %7037 = vmatprep.subr.bf16.mxu1 %v8163_v10  ;;  %7434 = vmatpush3.bf16.msra.mxu0 %v8225_v37  ;;  %v8189_v42 = vld [vmem:[%s8770_s28 + $0xa4] ss:$20 sps:$4 sm:$0xff]   ;;  %v8192_v49 = vld [vmem:[%s8770_s28 + $0xcc] ss:$20 sps:$4 sm:$0xff]   ;;  %v8195_v51 = vld [vmem:[%s8770_s28 + $0xc8] ss:$20 sps:$4 sm:$0xff]  }
  0x17   : > { %7435 = vmatprep.subr.bf16.mxu0 %v11270_v4  ;;  %v8231_v45 = vld [vmem:[%s11258_s1 + $0x118] sm:$0xff]   ;;  %v8232_v47 = vld [vmem:[%s8770_s28 + $0x10] ss:$20 sps:$4 sm:$0xff]   ;;  %v8197_v52 = vld [vmem:[%s8770_s28 + $0xf4] ss:$20 sps:$4 sm:$0xff]  }
  0x18   : > { %v8223_v46 = vld [vmem:[%s11258_s1 + $0xb8] sm:$0xff]   ;;  %v8240_v53 = vld [vmem:[%s8770_s28 + $0x60] ss:$20 sps:$4 sm:$0xff]   ;;  %v8199_v54 = vld [vmem:[%s8770_s28 + $0xf0] ss:$20 sps:$4 sm:$0xff]  }
  0x19   : > { %7038 = vmatpush3.bf16.msra.mxu1 %v8164_v11  ;;  %v8236_v50 = vld [vmem:[%s8770_s28 + $0x38] ss:$20 sps:$4 sm:$0xff]   ;;  %v8202_v55 = vld [vmem:[%s8770_s28 + $0x11c] ss:$20 sps:$4 sm:$0xff]   ;;  %v8207_v60 = vld [vmem:[%s8770_s28 + $0x140] ss:$20 sps:$4 sm:$0xff]  }
  0x1a   : > { %7039 = vmatprep.subr.bf16.mxu1 %v8165_v12  ;;  %7436 = vmatpush3.bf16.msra.mxu0 %v8227_v40  ;;  %v8244_v56 = vld [vmem:[%s8770_s28 + $0x88] ss:$20 sps:$4 sm:$0xff]   ;;  %v8204_v57 = vld [vmem:[%s8770_s28 + $0x118] ss:$20 sps:$4 sm:$0xff]   ;;  %v8248_v59 = vld [vmem:[%s8770_s28 + $0xb0] ss:$20 sps:$4 sm:$0xff]  }
  0x1b   : > { %7437 = vmatprep.subr.bf16.mxu0 %v11270_v4  ;;  %v8205_v58 = vld [vmem:[%s8770_s28 + $0x144] ss:$20 sps:$4 sm:$0xff]   ;;  %v8210_v61 = vld [vmem:[%s8770_s28 + $0x16c] ss:$20 sps:$4 sm:$0xff]   ;;  %v8212_v63 = vld [vmem:[%s8770_s28 + $0x168] ss:$20 sps:$4 sm:$0xff]  }
  0x1c   : > { %v8252_v62 = vld [vmem:[%s8770_s28 + $0xd8] ss:$20 sps:$4 sm:$0xff]   ;;  %v8214_v0 = vld [vmem:[%s8770_s28 + $0x194] ss:$20 sps:$4 sm:$0xff]   ;;  %v8217_v2 = vld [vmem:[%s8770_s28 + $0x190] ss:$20 sps:$4 sm:$0xff]  }
  0x1d   : > { %7040 = vmatpush3.bf16.msra.mxu1 %v8166_v14  ;;  %v8256_v1 = vld [vmem:[%s8770_s28 + $0x100] ss:$20 sps:$4 sm:$0xff]   ;;  %v8218_v3 = vld [vmem:[%s8770_s28 + $0x1bc] ss:$20 sps:$4 sm:$0xff]   ;;  %v8220_v7 = vld [vmem:[%s8770_s28 + $0x1b8] ss:$20 sps:$4 sm:$0xff]  }
  0x1e   : > { %7041 = vmatprep.subr.bf16.mxu1 %v8167_v15  ;;  %7438 = vmatpush3.bf16.msra.mxu0 %v8231_v45  ;;  %v500_v5 = vld [vmem:[%s8770_s28 + $0x1e0] sm:$0xff]  ;;  %v8260_v6 = vld [vmem:[%s8770_s28 + $0x128] ss:$20 sps:$4 sm:$0xff]   ;;  %v8268_v12 = vld [vmem:[%s8770_s28 + $0x178] ss:$20 sps:$4 sm:$0xff]  }
  0x1f   : > { %7651 = vmatprep.subr.bf16.mxu0 %v11270_v4  ;;  %v6510_v8 = vcombine.high %v500_v5, %v500_v5  ;;  %v8264_v9 = vld [vmem:[%s8770_s28 + $0x150] ss:$20 sps:$4 sm:$0xff]   ;;  %v8230_v10 = vld [vmem:[%s8770_s28 + $0xc] ss:$20 sps:$4 sm:$0xff]   ;;  %v6509_v11 = vcombine.low %v500_v5, %v500_v5  ;;  %v8228_v13 = vld [vmem:[%s8770_s28 + $0x8] ss:$20 sps:$4 sm:$0xff]  }
  0x20   : > { %v8233_v14 = vld [vmem:[%s8770_s28 + $0x34] ss:$20 sps:$4 sm:$0xff]   ;;  %v8269_v37 = vld [vmem:[%s8770_s28 + $0x19c] ss:$20 sps:$4 sm:$0xff]   ;;  %v8273_v40 = vld [vmem:[%s8770_s28 + $0x1c4] ss:$20 sps:$4 sm:$0xff]  }
  0x21   : > { %7042 = vmatpush3.bf16.msra.mxu1 %v8168_v16  ;;  %7440 = vmatmul.mubr.msk.bf16.vlgmr.msra.gmra.mrb[0].mxu0 %vm1115_vm1, %v8232_v47  ;;  %v8272_v15 = vld [vmem:[%s8770_s28 + $0x1a0] ss:$20 sps:$4 sm:$0xff]   ;;  %v8235_v16 = vld [vmem:[%s8770_s28 + $0x30] ss:$20 sps:$4 sm:$0xff]   ;;  %v8285_v47 = vld [vmem:[%s11260_s3 + $0x68] sm:$0xff]  }
  0x22   : > { %7043 = vmatprep.subr.bf16.mxu1 %v8169_v17  ;;  %7443 = vmatprep.mubr.msk.bf16.mxu0 %vm8652_vm0, %v11270_v4  ;;  %v8237_v17 = vld [vmem:[%s8770_s28 + $0x5c] ss:$20 sps:$4 sm:$0xff]   ;;  %v8265_v35 = vld [vmem:[%s8770_s28 + $0x174] ss:$20 sps:$4 sm:$0xff]  }
  0x25   : > { %7044 = vmatpush3.bf16.msra.mxu1 %v8170_v18  ;;  %v8276_v18 = vld [vmem:[%s8770_s28 + $0x1c8] ss:$20 sps:$4 sm:$0xff]  }
  0x26   : > { %7123 = vmatprep.subr.bf16.mxu1 %v8174_v19  ;;  %v8239_v19 = vld [vmem:[%s8770_s28 + $0x58] ss:$20 sps:$4 sm:$0xff]  }
  0x28   : > { %1188 = vmatmul.mubr.bf16.vlgmr.msra.gmra.mrb[0].mxu1 %v8171_v20  ;;  %v8241_v20 = vld [vmem:[%s8770_s28 + $0x84] ss:$20 sps:$4 sm:$0xff]  }
  0x29   : > { %7124 = vmatpush3.bf16.msra.mxu1 %v8175_v21  ;;  %1195 = vmatprep.mubr.bf16.mxu1 %v8176_v22  ;;  %v8279_v21 = vld [vmem:[%s8770_s28 + $0x1f0] ss:$0 sps:$4 sm:$0xff]   ;;  %v8243_v22 = vld [vmem:[%s8770_s28 + $0x80] ss:$20 sps:$4 sm:$0xff]  }
  0x2a   : > { %7125 = vmatprep.subr.bf16.mxu1 %v8179_v23  ;;  %7444 = vmatmul.mubr.msk.bf16.gmra.mrb[4].mxu0 %vm1115_vm1, %v8236_v50  ;;  %v8245_v23 = vld [vmem:[%s8770_s28 + $0xac] ss:$20 sps:$4 sm:$0xff]  }
  0x2b   : > { %7447 = vmatprep.mubr.msk.bf16.mxu0 %vm8652_vm0, %v11270_v4 }
  0x2d   : > { %7126 = vmatpush3.bf16.msra.mxu1 %v8180_v24  ;;  %v8247_v24 = vld [vmem:[%s8770_s28 + $0xa8] ss:$20 sps:$4 sm:$0xff]  }
  0x2e   : > { %7127 = vmatprep.subr.bf16.mxu1 %v8187_v25  ;;  %v8249_v25 = vld [vmem:[%s8770_s28 + $0xd4] ss:$20 sps:$4 sm:$0xff]  }
  0x30   : > { %1196 = vmatmul.mubr.bf16.gmra.mrb[4].mxu1 %v8178_v26  ;;  %v8251_v26 = vld [vmem:[%s8770_s28 + $0xd0] ss:$20 sps:$4 sm:$0xff]  }
  0x31   : > { %1203 = vmatprep.mubr.bf16.mxu1 %v8181_v27  ;;  %7128 = vmatpush3.bf16.msra.mxu1 %v8188_v28  ;;  %v8253_v27 = vld [vmem:[%s8770_s28 + $0xfc] ss:$20 sps:$4 sm:$0xff]   ;;  %v8255_v28 = vld [vmem:[%s8770_s28 + $0xf8] ss:$20 sps:$4 sm:$0xff]  }
  0x32   : > { %7129 = vmatprep.subr.bf16.mxu1 %v8194_v29  ;;  %7448 = vmatmul.mubr.msk.bf16.gmra.mrb[8].mxu0 %vm1115_vm1, %v8240_v53  ;;  %v8257_v29 = vld [vmem:[%s8770_s28 + $0x124] ss:$20 sps:$4 sm:$0xff]  }
  0x33   : > { %7451 = vmatprep.mubr.msk.bf16.mxu0 %vm8652_vm0, %v11270_v4 }
  0x35   : > { %7130 = vmatpush3.bf16.msra.mxu1 %v8196_v30  ;;  %v8280_v30 = vld [vmem:[%s11260_s3 + $0x40] sm:$0xff]  }
  0x36   : > { %7131 = vmatprep.subr.bf16.mxu1 %v8200_v31  ;;  %v8259_v31 = vld [vmem:[%s8770_s28 + $0x120] ss:$20 sps:$4 sm:$0xff]  }
  0x38   : > { %1204 = vmatmul.mubr.bf16.gmra.mrb[8].mxu1 %v8183_v32  ;;  %v8261_v32 = vld [vmem:[%s8770_s28 + $0x14c] ss:$20 sps:$4 sm:$0xff]  }
  0x39   : > { %1211 = vmatprep.mubr.bf16.mxu1 %v8184_v33  ;;  %7132 = vmatpush3.bf16.msra.mxu1 %v8201_v34  ;;  %v8281_v33 = vld [vmem:[%s11260_s3 + $0x48] sm:$0xff]  }
  0x3a   : > { %7133 = vmatprep.subr.bf16.mxu1 %v8208_v36  ;;  %7452 = vmatmul.mubr.msk.bf16.gmra.mrb[12].mxu0 %vm1115_vm1, %v8244_v56  ;;  %v8263_v34 = vld [vmem:[%s8770_s28 + $0x148] ss:$20 sps:$4 sm:$0xff]   ;;  %v8267_v36 = vld [vmem:[%s8770_s28 + $0x170] ss:$20 sps:$4 sm:$0xff]  }
  0x3b   : > { %7455 = vmatprep.mubr.msk.bf16.mxu0 %vm8652_vm0, %v11270_v4 }
  0x3d   : > { %7134 = vmatpush3.bf16.msra.mxu1 %v8209_v38  ;;  %v8282_v38 = vld [vmem:[%s11260_s3 + $0x50] sm:$0xff]  }
  0x3e   : > { %7135 = vmatprep.subr.bf16.mxu1 %v8213_v39  ;;  %v8271_v39 = vld [vmem:[%s8770_s28 + $0x198] ss:$20 sps:$4 sm:$0xff]  }
  0x40   : > { %1212 = vmatmul.mubr.bf16.gmra.mrb[12].mxu1 %v8186_v41  ;;  %v501_v41 = vld [vmem:[%s8770_s28 + $0x1e8] sm:$0xff] }
  0x41   : > { %1219 = vmatprep.mubr.bf16.mxu1 %v8189_v42  ;;  %7136 = vmatpush3.bf16.msra.mxu1 %v8216_v43  ;;  %v8275_v42 = vld [vmem:[%s8770_s28 + $0x1c0] ss:$20 sps:$4 sm:$0xff]   ;;  %v6512_v43 = vcombine.high %v501_v41, %v501_v41  ;;  %v6511_v45 = vcombine.low %v501_v41, %v501_v41 }
  0x42   : > { %7137 = vmatprep.subr.bf16.mxu1 %v8221_v44  ;;  %7456 = vmatmul.mubr.msk.bf16.gmra.mrb[16].mxu0 %vm1115_vm1, %v8248_v59  ;;  %v8283_v44 = vld [vmem:[%s11260_s3 + $0x58] sm:$0xff]  }
  0x43   : > { %7459 = vmatprep.mubr.msk.bf16.mxu0 %vm8652_vm0, %v11270_v4 }
  0x45   : > { %7138 = vmatpush3.bf16.msra.mxu1 %v8223_v46  ;;  %v8284_v46 = vld [vmem:[%s11260_s3 + $0x60] sm:$0xff]  }
  0x46   : > { %7491 = vmatprep.subr.bf16.mxu1 %v8280_v30 }
  0x48   : > { %1220 = vmatmul.mubr.bf16.gmra.mrb[16].mxu1 %v8191_v48  ;;  %v8286_v48 = vld [vmem:[%s11260_s3 + $0x70] sm:$0xff]  }
  0x49   : > { %1227 = vmatprep.mubr.bf16.mxu1 %v8192_v49 }
  0x4a   : > { %7460 = vmatmul.mubr.msk.bf16.gmra.mrb[20].mxu0 %vm1115_vm1, %v8252_v62 }
  0x4b   : > { %7463 = vmatprep.mubr.msk.bf16.mxu0 %vm8652_vm0, %v11270_v4 }
  0x50   : > { %1228 = vmatmul.mubr.bf16.gmra.mrb[20].mxu1 %v8195_v51 }
  0x51   : > { %1235 = vmatprep.mubr.bf16.mxu1 %v8197_v52 }
  0x52   : > { %7464 = vmatmul.mubr.msk.bf16.gmra.mrb[24].mxu0 %vm1115_vm1, %v8256_v1 }
  0x53   : > { %7467 = vmatprep.mubr.msk.bf16.mxu0 %vm8652_vm0, %v11270_v4 }
  0x58   : > { %1236 = vmatmul.mubr.bf16.gmra.mrb[24].mxu1 %v8199_v54  ;;  %v8287_v54 = vld [vmem:[%s11260_s3 + $0x78] sm:$0xff]  }
  0x59   : > { %1243 = vmatprep.mubr.bf16.mxu1 %v8202_v55 }
  0x5a   : > { %7468 = vmatmul.mubr.msk.bf16.gmra.mrb[28].mxu0 %vm1115_vm1, %v8260_v6 }
  0x5b   : > { %7471 = vmatprep.mubr.msk.bf16.mxu0 %vm8652_vm0, %v11270_v4 }
  0x60   : > { %1244 = vmatmul.mubr.bf16.gmra.mrb[28].mxu1 %v8204_v57 }
  0x61   : > { %1251 = vmatprep.mubr.bf16.mxu1 %v8205_v58 }
  0x62   : > { %7472 = vmatmul.mubr.msk.bf16.gmra.mrb[32].mxu0 %vm1115_vm1, %v8264_v9 }
  0x63   : > { %7475 = vmatprep.mubr.msk.bf16.mxu0 %vm8652_vm0, %v11270_v4 }
  0x68   : > { %1252 = vmatmul.mubr.bf16.gmra.mrb[32].mxu1 %v8207_v60 }
  0x69   : > { %1259 = vmatprep.mubr.bf16.mxu1 %v8210_v61 }
  0x6a   : > { %7476 = vmatmul.mubr.msk.bf16.gmra.mrb[36].mxu0 %vm1115_vm1, %v8268_v12 }
  0x6b   : > { %7479 = vmatprep.mubr.msk.bf16.mxu0 %vm8652_vm0, %v11270_v4 }
  0x70   : > { %1260 = vmatmul.mubr.bf16.gmra.mrb[36].mxu1 %v8212_v63 }
  0x71   : > { %1267 = vmatprep.mubr.bf16.mxu1 %v8214_v0 }
  0x72   : > { %7480 = vmatmul.mubr.msk.bf16.gmra.mrb[40].mxu0 %vm1115_vm1, %v8272_v15 }
  0x73   : > { %7483 = vmatprep.mubr.msk.bf16.mxu0 %vm8652_vm0, %v11270_v4 }
  0x78   : > { %1268 = vmatmul.mubr.bf16.gmra.mrb[40].mxu1 %v8217_v2 }
  0x79   : > { %1275 = vmatprep.mubr.bf16.mxu1 %v8218_v3 }
  0x7a   : > { %7484 = vmatmul.mubr.msk.bf16.gmra.mrb[44].mxu0 %vm1115_vm1, %v8276_v18 }
  0x7b   : > { %7487 = vmatprep.mubr.msk.bf16.mxu0 %vm8652_vm0, %v11270_v4 }
  0x80   : > { %1276 = vmatmul.mubr.bf16.gmra.mrb[44].mxu1 %v8220_v7 }
  0x81   : > { %1283 = vmatprep.mubr.bf16.mxu1 %v6510_v8 }
  0x82   : > { %7488 = vmatmul.mubr.msk.bf16.gmra.mrb[48].mxu0 %vm1115_vm1, %v8279_v21 }
  0x83   : > { %7659 = vmatprep.mubr.msk.bf16.mxu0 %vm8652_vm0, %v11270_v4 }
  0x88   : > { %1284 = vmatmul.mubr.bf16.gmra.mrb[48].mxu1 %v6509_v11 }
  0x89   : > { %1323 = vmatprep.mubr.bf16.mxu1 %v8230_v10 }
  0x90   : > { %1324 = vmatmul.mubr.bf16.vlgmr.msra.gmra.mrb[52].mxu1 %v8228_v13 }
  0x91   : > { %1331 = vmatprep.mubr.bf16.mxu1 %v8233_v14  ;;  %7492 = vmatpush3.bf16.msra.mxu1 %v8280_v30 }
  0x92   : > { %7493 = vmatprep.subr.bf16.mxu1 %v8281_v33 }
  0x95   : > { %7494 = vmatpush3.bf16.msra.mxu1 %v8281_v33 }
  0x96   : > { %7495 = vmatprep.subr.bf16.mxu1 %v8282_v38 }
  0x98   : > { %1332 = vmatmul.mubr.bf16.gmra.mrb[56].mxu1 %v8235_v16 }
  0x99   : > { %1339 = vmatprep.mubr.bf16.mxu1 %v8237_v17  ;;  %7496 = vmatpush3.bf16.msra.mxu1 %v8282_v38 }
  0x9a   : > { %7497 = vmatprep.subr.bf16.mxu1 %v8283_v44 }
  0x9d   : > { %7498 = vmatpush3.bf16.msra.mxu1 %v8283_v44 }
  0x9e   : > { %7499 = vmatprep.subr.bf16.mxu1 %v8284_v46 }
  0xa0   : > { %1340 = vmatmul.mubr.bf16.gmra.mrb[60].mxu1 %v8239_v19 }
  0xa1   : > { %1347 = vmatprep.mubr.bf16.mxu1 %v8241_v20  ;;  %7500 = vmatpush3.bf16.msra.mxu1 %v8284_v46 }
  0xa2   : > { %7501 = vmatprep.subr.bf16.mxu1 %v8285_v47 }
  0xa5   : > { %7502 = vmatpush3.bf16.msra.mxu1 %v8285_v47 }
  0xa6   : > { %7503 = vmatprep.subr.bf16.mxu1 %v8286_v48 }
  0xa8   : > { %1348 = vmatmul.mubr.bf16.gmra.mrb[64].mxu1 %v8243_v22 }
  0xa9   : > { %1355 = vmatprep.mubr.bf16.mxu1 %v8245_v23  ;;  %7504 = vmatpush3.bf16.msra.mxu1 %v8286_v48 }
  0xaa   : > { %7505 = vmatprep.subr.bf16.mxu1 %v8287_v54 }
  0xad   : > { %7506 = vmatpush3.bf16.msra.mxu1 %v8287_v54 }
  0xb0   : > { %1356 = vmatmul.mubr.bf16.gmra.mrb[68].mxu1 %v8247_v24 }
  0xb1   : > { %1363 = vmatprep.mubr.bf16.mxu1 %v8249_v25 }
  0xb8   : > { %1364 = vmatmul.mubr.bf16.gmra.mrb[72].mxu1 %v8251_v26 }
  0xb9   : > { %1371 = vmatprep.mubr.bf16.mxu1 %v8253_v27 }
  0xc0   : > { %1372 = vmatmul.mubr.bf16.gmra.mrb[76].mxu1 %v8255_v28 }
  0xc1   : > { %1379 = vmatprep.mubr.bf16.mxu1 %v8257_v29 }
  0xc8   : > { %1380 = vmatmul.mubr.bf16.gmra.mrb[80].mxu1 %v8259_v31 }
  0xc9   : > { %1387 = vmatprep.mubr.bf16.mxu1 %v8261_v32 }
  0xd0   : > { %1388 = vmatmul.mubr.bf16.gmra.mrb[84].mxu1 %v8263_v34 }
  0xd1   : > { %1395 = vmatprep.mubr.bf16.mxu1 %v8265_v35  ;;  %v9022_v35 = vld [vmem:[%s11260_s3] sm:$0xff]  }
  0xd2   : > { %7531 = vmatprep.subr.bf16.mxu1 %v9022_v35 }
  0xd8   : > { %1396 = vmatmul.mubr.bf16.gmra.mrb[88].mxu1 %v8267_v36 }
  0xd9   : > { %1403 = vmatprep.mubr.bf16.mxu1 %v8269_v37 }
  0xe0   : > { %1404 = vmatmul.mubr.bf16.gmra.mrb[92].mxu1 %v8271_v39 }
  0xe1   : > { %1411 = vmatprep.mubr.bf16.mxu1 %v8273_v40 }
  0xe8   : > { %1412 = vmatmul.mubr.bf16.gmra.mrb[96].mxu1 %v8275_v42 }
  0xe9   : > { %1419 = vmatprep.mubr.bf16.mxu1 %v6512_v43 }
  0xf0   : > { %1420 = vmatmul.mubr.bf16.gmra.mrb[100].mxu1 %v6511_v45 }
  0xf4   : > { %v8999_v11 = vpop.f32.mrb[0].mxu0 }
  0xf5   : > { %v7441_v12 = vpop.f32.mrb[1].mxu0 }
  0xf6   : > { %v9001_v14 = vpop.f32.mrb[2].mxu0 }
  0xf7   : > { %v7442_v16 = vpop.f32.mrb[3].mxu0 }
  0xfb   : > { %v7045_v49 = vpop.f32.mrb[0].mxu1 }
  0xfc   : > { %v7046_v50 = vpop.f32.mrb[1].mxu1 }
  0xfd   : > { %v8980_v51 = vadd.f32 %v7046_v50, %v7045_v49  ;;  %v7048_v52 = vpop.f32.mrb[2].mxu1  ;;  %v9007_v21 = vpop.f32.mrb[4].mxu0 }
  0xfe   : > { %v7049_v53 = vpop.f32.mrb[3].mxu1  ;;  %v7445_v22 = vpop.f32.mrb[5].mxu0 }
  0xff   : > { %v8985_v55 = vadd.f32 %v7049_v53, %v7048_v52  ;;  %v9009_v24 = vpop.f32.mrb[6].mxu0 }
 0x100   : > { %v7446_v26 = vpop.f32.mrb[7].mxu0 }
 0x103   : > { %v7051_v56 = vpop.f32.mrb[4].mxu1 }
 0x104   : > { %v7052_v57 = vpop.f32.mrb[5].mxu1 }
 0x105   : > { %v8987_v58 = vadd.f32 %v7052_v57, %v7051_v56  ;;  %v7054_v59 = vpop.f32.mrb[6].mxu1  ;;  %v9015_v31 = vpop.f32.mrb[8].mxu0 }
 0x106   : > { %v7055_v60 = vpop.f32.mrb[7].mxu1  ;;  %v7449_v32 = vpop.f32.mrb[9].mxu0 }
 0x107   : > { %v8989_v61 = vadd.f32 %v7055_v60, %v7054_v59  ;;  %v9017_v34 = vpop.f32.mrb[10].mxu0 }
 0x108   : > { %v7450_v37 = vpop.f32.mrb[11].mxu0 }
 0x10b   : > { %v7057_v62 = vpop.f32.mrb[8].mxu1 }
 0x10c   : > { %v7058_v63 = vpop.f32.mrb[9].mxu1 }
 0x10d   : > { %v8991_v0 = vadd.f32 %v7058_v63, %v7057_v62  ;;  %v7060_v1 = vpop.f32.mrb[10].mxu1  ;;  %v9029_v42 = vpop.f32.mrb[12].mxu0 }
 0x10e   : > { %v7061_v2 = vpop.f32.mrb[11].mxu1  ;;  %v7453_v43 = vpop.f32.mrb[13].mxu0 }
 0x10f   : > { %v8993_v3 = vadd.f32 %v7061_v2, %v7060_v1  ;;  %v9031_v45 = vpop.f32.mrb[14].mxu0 }
 0x110   : > { %v7454_v47 = vpop.f32.mrb[15].mxu0 }
 0x113   : > { %v7063_v5 = vpop.f32.mrb[12].mxu1 }
 0x114   : > { %v7064_v6 = vpop.f32.mrb[13].mxu1 }
 0x115   : > { %v8995_v7 = vadd.f32 %v7064_v6, %v7063_v5  ;;  %v7066_v8 = vpop.f32.mrb[14].mxu1  ;;  %v9037_v53 = vpop.f32.mrb[16].mxu0 }
 0x116   : > { %v7067_v9 = vpop.f32.mrb[15].mxu1  ;;  %v7457_v54 = vpop.f32.mrb[17].mxu0 }
 0x117   : > { %v8997_v10 = vadd.f32 %v7067_v9, %v7066_v8  ;;  %v9039_v57 = vpop.f32.mrb[18].mxu0 }
 0x118   : > { %v7458_v60 = vpop.f32.mrb[19].mxu0 }
 0x11b   : > { %v7069_v13 = vpop.f32.mrb[16].mxu1 }
 0x11c   : > { %v7070_v15 = vpop.f32.mrb[17].mxu1 }
 0x11d   : > { %v9003_v17 = vadd.f32 %v7070_v15, %v7069_v13  ;;  %v7072_v18 = vpop.f32.mrb[18].mxu1  ;;  %v9045_v5 = vpop.f32.mrb[20].mxu0 }
 0x11e   : > { %v7073_v19 = vpop.f32.mrb[19].mxu1  ;;  %v7461_v6 = vpop.f32.mrb[21].mxu0 }
 0x11f   : > { %v9005_v20 = vadd.f32 %v7073_v19, %v7072_v18  ;;  %v9047_v9 = vpop.f32.mrb[22].mxu0 }
 0x120   : > { %v7462_v13 = vpop.f32.mrb[23].mxu0 }
 0x123   : > { %v7075_v23 = vpop.f32.mrb[20].mxu1 }
 0x124   : > { %v7076_v25 = vpop.f32.mrb[21].mxu1 }
 0x125   : > { %v9011_v27 = vadd.f32 %v7076_v25, %v7075_v23  ;;  %v7078_v28 = vpop.f32.mrb[22].mxu1  ;;  %v9053_v22 = vpop.f32.mrb[24].mxu0 }
 0x126   : > { %v7079_v29 = vpop.f32.mrb[23].mxu1  ;;  %v7465_v23 = vpop.f32.mrb[25].mxu0 }
 0x127   : > { %v9013_v30 = vadd.f32 %v7079_v29, %v7078_v28  ;;  %v9055_v26 = vpop.f32.mrb[26].mxu0  ;;  %v9080_v23 = vld [vmem:[%s11259_s2] ss:$0 sm:$0xff] }
 0x128   : > { %v7466_v29 = vpop.f32.mrb[27].mxu0 }
 0x12b   : > { %v7081_v33 = vpop.f32.mrb[24].mxu1 }
 0x12c   : > { %v7082_v36 = vpop.f32.mrb[25].mxu1 }
 0x12d   : > { %v9024_v38 = vadd.f32 %v7082_v36, %v7081_v33  ;;  %v7084_v39 = vpop.f32.mrb[26].mxu1 }
 0x12e   : > { %v7085_v40 = vpop.f32.mrb[27].mxu1 }
 0x12f   : > { %v9027_v41 = vadd.f32 %v7085_v40, %v7084_v39  ;;  %v9061_v39 = vpop.f32.mrb[28].mxu0 }
 0x130   : > { %v7469_v40 = vpop.f32.mrb[29].mxu0 }
 0x133   : > { %v7087_v44 = vpop.f32.mrb[28].mxu1 }
 0x134   : > { %v7088_v46 = vpop.f32.mrb[29].mxu1 }
 0x135   : > { %v9033_v48 = vadd.f32 %v7088_v46, %v7087_v44  ;;  %v7090_v49 = vpop.f32.mrb[30].mxu1  ;;  %v9063_v44 = vpop.f32.mrb[30].mxu0 }
 0x136   : > { %v7091_v50 = vpop.f32.mrb[31].mxu1  ;;  %v7470_v47 = vpop.f32.mrb[31].mxu0 }
 0x137   : > { %v9035_v52 = vadd.f32 %v7091_v50, %v7090_v49 }
 0x13b   : > { %v7093_v56 = vpop.f32.mrb[32].mxu1 }
 0x13c   : > { %v7094_v59 = vpop.f32.mrb[33].mxu1 }
 0x13d   : > { %v9041_v62 = vadd.f32 %v7094_v59, %v7093_v56  ;;  %v7096_v63 = vpop.f32.mrb[34].mxu1  ;;  %v9069_v59 = vpop.f32.mrb[32].mxu0 }
 0x13e   : > { %v7097_v1 = vpop.f32.mrb[35].mxu1  ;;  %v7473_v60 = vpop.f32.mrb[33].mxu0 }
 0x13f   : > { %v9043_v2 = vadd.f32 %v7097_v1, %v7096_v63  ;;  %v9071_v1 = vpop.f32.mrb[34].mxu0  ;;  %v1193_v60 = vadd.f32 %v8985_v55, %v9080_v23  ;;  %v1198_v55 = vadd.f32 %v8987_v58, %v9080_v23 }
 0x143   : > { %v7099_v8 = vpop.f32.mrb[36].mxu1 }
 0x144   : > { %v7100_v12 = vpop.f32.mrb[37].mxu1 }
 0x145   : > { %v9049_v15 = vadd.f32 %v7100_v12, %v7099_v8  ;;  %v7102_v16 = vpop.f32.mrb[38].mxu1  ;;  %v7474_v8 = vpop.f32.mrb[35].mxu0 }
 0x146   : > { %v7103_v18 = vpop.f32.mrb[39].mxu1 }
 0x147   : > { %v9051_v19 = vadd.f32 %v7103_v18, %v7102_v16  ;;  %v9075_v18 = vpop.f32.mrb[36].mxu0 }
 0x14b   : > { %v7105_v25 = vpop.f32.mrb[40].mxu1 }
 0x14c   : > { %v7106_v28 = vpop.f32.mrb[41].mxu1 }
 0x14d   : > { %v9057_v32 = vadd.f32 %v7106_v28, %v7105_v25  ;;  %v7108_v33 = vpop.f32.mrb[42].mxu1  ;;  %v7477_v25 = vpop.f32.mrb[37].mxu0 }
 0x14e   : > { %v7109_v36 = vpop.f32.mrb[43].mxu1  ;;  %v9082_v29 = vpop.f32.mrb[38].mxu0 }
 0x14f   : > { %v9059_v37 = vadd.f32 %v7109_v36, %v7108_v33  ;;  %v7478_v36 = vpop.f32.mrb[39].mxu0 }
 0x150   : > { %v9089_v8 = vpop.f32.mrb[40].mxu0 }
 0x153   : > { %v7111_v43 = vpop.f32.mrb[44].mxu1 }
 0x154   : > { %v7112_v46 = vpop.f32.mrb[45].mxu1 }
 0x155   : > { %v9065_v49 = vadd.f32 %v7112_v46, %v7111_v43  ;;  %v7114_v50 = vpop.f32.mrb[46].mxu1  ;;  %v1190_v46 = vadd.f32 %v8980_v51, %v9080_v23 }
 0x156   : > { %v7115_v54 = vpop.f32.mrb[47].mxu1 }
 0x157   : > { %v9067_v56 = vadd.f32 %v7115_v54, %v7114_v50 }
 0x15b   : > { %v7117_v63 = vpop.f32.mrb[48].mxu1 }
 0x15c   : > { %v7118_v6 = vpop.f32.mrb[49].mxu1 }
 0x15d   : > { %v9073_v12 = vadd.f32 %v7118_v6, %v7117_v63  ;;  %v7120_v13 = vpop.f32.mrb[50].mxu1 }
 0x15e   : > { %v7121_v16 = vpop.f32.mrb[51].mxu1  ;;  %v7481_v13 = vpop.f32.mrb[41].mxu0 }
 0x163   : > { %v7139_v28 = vpop.f32.mrb[52].mxu1 }
 0x164   : > { %v7140_v33 = vpop.f32.mrb[53].mxu1 }
 0x165   : > { %v7141_v40 = vadd.f32 %v7140_v33, %v7139_v28  ;;  %v7142_v43 = vpop.f32.mrb[54].mxu1  ;;  %v9092_v28 = vpop.f32.mrb[42].mxu0 }
 0x166   : > { %v7143_v47 = vpop.f32.mrb[55].mxu1  ;;  %v7482_v36 = vpop.f32.mrb[43].mxu0 }
 0x167   : > { %v1326_v50 = vadd.f32 %v7141_v40, %v1190_v46  ;;  %v7144_v54 = vadd.f32 %v7143_v47, %v7142_v43 }
 0x169   : > { %v1462_v63 = vadd.f32 %v8999_v11, %v1326_v50  ;;  %v1329_v6 = vadd.f32 %v7144_v54, %v1193_v60 }
 0x16b   : > { %v1465_v16 = vadd.f32 %v9001_v14, %v1329_v6  ;;  %v7145_v25 = vpop.f32.mrb[56].mxu1  ;;  %v1563_v51 = vmax.f32 %v1462_v63, 0.0  ;;  %v1201_v14 = vadd.f32 %v8989_v61, %v9080_v23  ;;  %v9101_v6 = vpop.f32.mrb[44].mxu0  ;;  %v1206_v61 = vadd.f32 %v8991_v0, %v9080_v23 }
 0x16c   : > { %v7146_v33 = vpop.f32.mrb[57].mxu1  ;;  %v7485_v63 = vpop.f32.mrb[45].mxu0 }
 0x16d   : > { %v1564_v4 = vmax.f32 %v1465_v16, 0.0  ;;  %v7147_v40 = vadd.f32 %v7146_v33, %v7145_v25  ;;  %v7148_v43 = vpop.f32.mrb[58].mxu1  ;;  %v9104_v25 = vpop.f32.mrb[46].mxu0 }
 0x16e   : > { %v7149_v46 = vpop.f32.mrb[59].mxu1  ;;  %v7486_v33 = vpop.f32.mrb[47].mxu0 }
 0x16f   : > { %v9096_v11 = vpack.c.bf16 %v1564_v4, %v1563_v51  ;;  %v1334_v47 = vadd.f32 %v7147_v40, %v1198_v55  ;;  %v7150_v50 = vadd.f32 %v7149_v46, %v7148_v43 }
 0x171   : > { %v1470_v54 = vadd.f32 %v9007_v21, %v1334_v47  ;;  %v1337_v60 = vadd.f32 %v7150_v50, %v1201_v14  ;;  %v1647_v47 = vrot.slane %v9096_v11, 1 }
 0x173   : > { %v1473_v13 = vadd.f32 %v9009_v24, %v1337_v60  ;;  %v7151_v16 = vpop.f32.mrb[60].mxu1  ;;  %v1565_v4 = vmax.f32 %v1470_v54, 0.0  ;;  %v1209_v24 = vadd.f32 %v8993_v3, %v9080_v23  ;;  %v9115_v60 = vpop.f32.mrb[48].mxu0 }
 0x174   : > { %v7152_v58 = vpop.f32.mrb[61].mxu1  ;;  %v7489_v63 = vpop.f32.mrb[49].mxu0 }
 0x175   : > { %v1566_v36 = vmax.f32 %v1473_v13, 0.0  ;;  %v7153_v51 = vadd.f32 %v7152_v58, %v7151_v16  ;;  %v7154_v40 = vpop.f32.mrb[62].mxu1  ;;  %v1560_v58 = vpop.f32.mrb[50].mxu0 }
 0x176   : > { %v7155_v43 = vpop.f32.mrb[63].mxu1  ;;  %v7490_v3 = vpop.f32.mrb[51].mxu0 }
 0x177   : > { %v9108_v21 = vpack.c.bf16 %v1566_v36, %v1565_v4  ;;  %v1342_v55 = vadd.f32 %v7153_v51, %v1206_v61  ;;  %v7156_v46 = vadd.f32 %v7155_v43, %v7154_v40 }
 0x179   : > { %v1478_v50 = vadd.f32 %v9015_v31, %v1342_v55  ;;  %v1345_v14 = vadd.f32 %v7156_v46, %v1209_v24  ;;  %v1648_v54 = vrot.slane %v9108_v21, 1  ;;  %v1214_v31 = vadd.f32 %v8995_v7, %v9080_v23 }
 0x17b   : > { %v1481_v0 = vadd.f32 %v9017_v34, %v1345_v14  ;;  %v7157_v13 = vpop.f32.mrb[64].mxu1  ;;  %v1649_v16 = vsel %vm1646_vm2, %v1647_v47, %v1648_v54  ;;  %v1567_v4 = vmax.f32 %v1478_v50, 0.0  ;;  %v1217_v34 = vadd.f32 %v8997_v10, %v9080_v23  ;;  %v8289_v50 = vld [vmem:[%s11260_s3 + $0x8] sm:$0xff]  }
 0x17c   : > { %v7158_v33 = vpop.f32.mrb[65].mxu1  ;;  %7507 = vmatprep.mubr.bf16.mxu1 %v1649_v16 }
 0x17d   : > { %v1568_v36 = vmax.f32 %v1481_v0, 0.0  ;;  %v7159_v51 = vadd.f32 %v7158_v33, %v7157_v13  ;;  %v7160_v40 = vpop.f32.mrb[66].mxu1 }
 0x17e   : > { %v7161_v61 = vpop.f32.mrb[67].mxu1 }
 0x17f   : > { %v9121_v43 = vpack.c.bf16 %v1568_v36, %v1567_v4  ;;  %v1350_v55 = vadd.f32 %v7159_v51, %v1214_v31  ;;  %v7162_v46 = vadd.f32 %v7161_v61, %v7160_v40  ;;  %v1225_v51 = vadd.f32 %v9005_v20, %v9080_v23 }
 0x181   : > { %v1486_v24 = vadd.f32 %v9029_v42, %v1350_v55  ;;  %v1353_v47 = vadd.f32 %v7162_v46, %v1217_v34  ;;  %v1650_v14 = vrot.slane %v9121_v43, 1  ;;  %v1222_v42 = vadd.f32 %v9003_v17, %v9080_v23 }
 0x183   : > { %v1489_v63 = vadd.f32 %v9031_v45, %v1353_v47  ;;  %v7163_v7 = vpop.f32.mrb[68].mxu1  ;;  %v1651_v0 = vsel %vm1646_vm2, %v1648_v54, %v1650_v14  ;;  %v1569_v16 = vmax.f32 %v1486_v24, 0.0  ;;  %v8290_v45 = vld [vmem:[%s11260_s3 + $0x10] sm:$0xff]  }
 0x184   : > { %v7164_v13 = vpop.f32.mrb[69].mxu1  ;;  %7508 = vmatmul.mubr.bf16.vlgmr.msra.gmra.mrb[104].mxu1 %v1651_v0 }
 0x185   : > { %v1570_v58 = vmax.f32 %v1489_v63, 0.0  ;;  %v7165_v33 = vadd.f32 %v7164_v13, %v7163_v7  ;;  %v7166_v10 = vpop.f32.mrb[70].mxu1  ;;  %7532 = vmatpush3.bf16.msra.mxu1 %v9022_v35  ;;  %v8291_v35 = vld [vmem:[%s11260_s3 + $0x18] sm:$0xff]   ;;  %v1230_v63 = vadd.f32 %v9011_v27, %v9080_v23  ;;  %v8292_v7 = vld [vmem:[%s11260_s3 + $0x20] sm:$0xff]   ;;  %v1233_v13 = vadd.f32 %v9013_v30, %v9080_v23  ;;  %v8293_v27 = vld [vmem:[%s11260_s3 + $0x28] sm:$0xff]  }
 0x186   : > { %v7167_v3 = vpop.f32.mrb[71].mxu1  ;;  %7533 = vmatprep.subr.bf16.mxu1 %v8289_v50 }
 0x187   : > { %v9138_v4 = vpack.c.bf16 %v1570_v58, %v1569_v16  ;;  %v1358_v54 = vadd.f32 %v7165_v33, %v1222_v42  ;;  %v7168_v36 = vadd.f32 %v7167_v3, %v7166_v10 }
 0x189   : > { %v1494_v40 = vadd.f32 %v9037_v53, %v1358_v54  ;;  %v1361_v31 = vadd.f32 %v7168_v36, %v1225_v51  ;;  %v1652_v17 = vrot.slane %v9138_v4, 1  ;;  %7534 = vmatpush3.bf16.msra.mxu1 %v8289_v50  ;;  %v1238_v51 = vadd.f32 %v9024_v38, %v9080_v23  ;;  %v8295_v38 = vld [vmem:[%s11260_s3 + $0x38] sm:$0xff]  }
 0x18a   : > { %7535 = vmatprep.subr.bf16.mxu1 %v8290_v45 }
 0x18b   : > { %v1497_v61 = vadd.f32 %v9039_v57, %v1361_v31  ;;  %v7169_v55 = vpop.f32.mrb[72].mxu1  ;;  %v1653_v46 = vsel %vm1646_vm2, %v1650_v14, %v1652_v17  ;;  %v1571_v24 = vmax.f32 %v1494_v40, 0.0  ;;  %v8294_v31 = vld [vmem:[%s11260_s3 + $0x30] sm:$0xff]  }
 0x18c   : > { %v7170_v34 = vpop.f32.mrb[73].mxu1  ;;  %7511 = vmatprep.mubr.bf16.mxu1 %v1653_v46 }
 0x18d   : > { %v1572_v20 = vmax.f32 %v1497_v61, 0.0  ;;  %v7171_v47 = vadd.f32 %v7170_v34, %v7169_v55  ;;  %v7172_v53 = vpop.f32.mrb[74].mxu1  ;;  %7536 = vmatpush3.bf16.msra.mxu1 %v8290_v45  ;;  %v1241_v61 = vadd.f32 %v9027_v41, %v9080_v23 }
 0x18e   : > { %v7173_v50 = vpop.f32.mrb[75].mxu1  ;;  %7537 = vmatprep.subr.bf16.mxu1 %v8291_v35 }
 0x18f   : > { %v9154_v57 = vpack.c.bf16 %v1572_v20, %v1571_v24  ;;  %v1366_v0 = vadd.f32 %v7171_v47, %v1230_v63  ;;  %v7174_v14 = vadd.f32 %v7173_v50, %v7172_v53 }
 0x191   : > { %v1502_v16 = vadd.f32 %v9045_v5, %v1366_v0  ;;  %v1369_v58 = vadd.f32 %v7174_v14, %v1233_v13  ;;  %v1654_v33 = vrot.slane %v9154_v57, 1  ;;  %7538 = vmatpush3.bf16.msra.mxu1 %v8291_v35  ;;  %v9186_v14 = vld [vmem:[%s11260_s3 + $0x80] sm:$0xff]  }
 0x192   : > { %7539 = vmatprep.subr.bf16.mxu1 %v8292_v7 }
 0x193   : > { %v1505_v10 = vadd.f32 %v9047_v9, %v1369_v58  ;;  %v7175_v42 = vpop.f32.mrb[76].mxu1  ;;  %v1655_v3 = vsel %vm1646_vm2, %v1652_v17, %v1654_v33  ;;  %v1573_v54 = vmax.f32 %v1502_v16, 0.0  ;;  %v1249_v58 = vadd.f32 %v9035_v52, %v9080_v23 }
 0x194   : > { %v7176_v45 = vpop.f32.mrb[77].mxu1  ;;  %7512 = vmatmul.mubr.bf16.gmra.mrb[108].mxu1 %v1655_v3  ;;  %v1254_v52 = vadd.f32 %v9041_v62, %v9080_v23  ;;  %v1262_v62 = vadd.f32 %v9049_v15, %v9080_v23 }
 0x195   : > { %v1574_v30 = vmax.f32 %v1505_v10, 0.0  ;;  %v7177_v36 = vadd.f32 %v7176_v45, %v7175_v42  ;;  %v7178_v5 = vpop.f32.mrb[78].mxu1  ;;  %7540 = vmatpush3.bf16.msra.mxu1 %v8292_v7  ;;  %v1246_v7 = vadd.f32 %v9033_v48, %v9080_v23 }
 0x196   : > { %v7179_v40 = vpop.f32.mrb[79].mxu1  ;;  %7541 = vmatprep.subr.bf16.mxu1 %v8293_v27 }
 0x197   : > { %v9170_v9 = vpack.c.bf16 %v1574_v30, %v1573_v54  ;;  %v1374_v35 = vadd.f32 %v7177_v36, %v1238_v51  ;;  %v7180_v17 = vadd.f32 %v7179_v40, %v7178_v5 }
 0x199   : > { %v1510_v55 = vadd.f32 %v9053_v22, %v1374_v35  ;;  %v1377_v46 = vadd.f32 %v7180_v17, %v1241_v61  ;;  %v1656_v34 = vrot.slane %v9170_v9, 1  ;;  %7542 = vmatpush3.bf16.msra.mxu1 %v8293_v27 }
 0x19a   : > { %7543 = vmatprep.subr.bf16.mxu1 %v8294_v31 }
 0x19b   : > { %v1513_v24 = vadd.f32 %v9055_v26, %v1377_v46  ;;  %v7181_v20 = vpop.f32.mrb[80].mxu1  ;;  %v1657_v47 = vsel %vm1646_vm2, %v1654_v33, %v1656_v34  ;;  %v1575_v63 = vmax.f32 %v1510_v55, 0.0 }
 0x19c   : > { %v7182_v53 = vpop.f32.mrb[81].mxu1  ;;  %7515 = vmatprep.mubr.bf16.mxu1 %v1657_v47 }
 0x19d   : > { %v1576_v41 = vmax.f32 %v1513_v24, 0.0  ;;  %v7183_v50 = vadd.f32 %v7182_v53, %v7181_v20  ;;  %v7184_v22 = vpop.f32.mrb[82].mxu1  ;;  %7544 = vmatpush3.bf16.msra.mxu1 %v8294_v31 }
 0x19e   : > { %v7185_v0 = vpop.f32.mrb[83].mxu1  ;;  %7545 = vmatprep.subr.bf16.mxu1 %v8295_v38 }
 0x19f   : > { %v9188_v26 = vpack.c.bf16 %v1576_v41, %v1575_v63  ;;  %v1382_v13 = vadd.f32 %v7183_v50, %v1246_v7  ;;  %v7186_v16 = vadd.f32 %v7185_v0, %v7184_v22 }
 0x1a1   : > { %v1518_v33 = vadd.f32 %v9061_v39, %v1382_v13  ;;  %v1385_v27 = vadd.f32 %v7186_v16, %v1249_v58  ;;  %v1658_v48 = vrot.slane %v9188_v26, 1  ;;  %7546 = vmatpush3.bf16.msra.mxu1 %v8295_v38  ;;  %v1270_v58 = vadd.f32 %v9057_v32, %v9080_v23 }
 0x1a2   : > { %7571 = vmatprep.subr.bf16.mxu1 %v9186_v14 }
 0x1a3   : > { %v1521_v10 = vadd.f32 %v9063_v44, %v1385_v27  ;;  %v7187_v42 = vpop.f32.mrb[84].mxu1  ;;  %v1659_v3 = vsel %vm1646_vm2, %v1656_v34, %v1658_v48  ;;  %v1577_v54 = vmax.f32 %v1518_v33, 0.0  ;;  %v1257_v44 = vadd.f32 %v9043_v2, %v9080_v23 }
 0x1a4   : > { %v7188_v45 = vpop.f32.mrb[85].mxu1  ;;  %7516 = vmatmul.mubr.bf16.gmra.mrb[112].mxu1 %v1659_v3 }
 0x1a5   : > { %v1578_v30 = vmax.f32 %v1521_v10, 0.0  ;;  %v7189_v36 = vadd.f32 %v7188_v45, %v7187_v42  ;;  %v7190_v5 = vpop.f32.mrb[86].mxu1 }
 0x1a6   : > { %v7191_v39 = vpop.f32.mrb[87].mxu1 }
 0x1a7   : > { %v9199_v51 = vpack.c.bf16 %v1578_v30, %v1577_v54  ;;  %v1390_v40 = vadd.f32 %v7189_v36, %v1254_v52  ;;  %v7192_v31 = vadd.f32 %v7191_v39, %v7190_v5 }
 0x1a9   : > { %v1526_v35 = vadd.f32 %v9069_v59, %v1390_v40  ;;  %v1393_v17 = vadd.f32 %v7192_v31, %v1257_v44  ;;  %v1660_v61 = vrot.slane %v9199_v51, 1  ;;  %v1265_v59 = vadd.f32 %v9051_v19, %v9080_v23 }
 0x1ab   : > { %v1529_v55 = vadd.f32 %v9071_v1, %v1393_v17  ;;  %v7193_v46 = vpop.f32.mrb[88].mxu1  ;;  %v1661_v34 = vsel %vm1646_vm2, %v1658_v48, %v1660_v61  ;;  %v1579_v24 = vmax.f32 %v1526_v35, 0.0  ;;  %v1278_v35 = vadd.f32 %v9065_v49, %v9080_v23 }
 0x1ac   : > { %v7194_v38 = vpop.f32.mrb[89].mxu1  ;;  %7519 = vmatprep.mubr.bf16.mxu1 %v1661_v34  ;;  %v1281_v34 = vadd.f32 %v9067_v56, %v9080_v23 }
 0x1ad   : > { %v1580_v20 = vmax.f32 %v1529_v55, 0.0  ;;  %v7195_v47 = vadd.f32 %v7194_v38, %v7193_v46  ;;  %v7196_v53 = vpop.f32.mrb[90].mxu1 }
 0x1ae   : > { %v7197_v2 = vpop.f32.mrb[91].mxu1 }
 0x1af   : > { %v9211_v63 = vpack.c.bf16 %v1580_v20, %v1579_v24  ;;  %v1398_v41 = vadd.f32 %v7195_v47, %v1262_v62  ;;  %v7198_v1 = vadd.f32 %v7197_v2, %v7196_v53 }
 0x1b1   : > { %v1534_v50 = vadd.f32 %v9075_v18, %v1398_v41  ;;  %v1401_v22 = vadd.f32 %v7198_v1, %v1265_v59  ;;  %v1662_v7 = vrot.slane %v9211_v63, 1  ;;  %v1273_v18 = vadd.f32 %v9059_v37, %v9080_v23 }
 0x1b2   : > { %v2066_v45 = vrot.slane %v9211_v63, 2  ;;  %v2318_v5 = vrot.slane %v9211_v63, 3 }
 0x1b3   : > { %v1537_v0 = vadd.f32 %v9082_v29, %v1401_v22  ;;  %v7199_v15 = vpop.f32.mrb[92].mxu1  ;;  %v1663_v13 = vsel %vm1646_vm2, %v1660_v61, %v1662_v7  ;;  %v1581_v19 = vmax.f32 %v1534_v50, 0.0 }
 0x1b4   : > { %v7200_v16 = vpop.f32.mrb[93].mxu1  ;;  %7520 = vmatmul.mubr.bf16.gmra.mrb[116].mxu1 %v1663_v13 }
 0x1b5   : > { %v1582_v33 = vmax.f32 %v1537_v0, 0.0  ;;  %v7201_v27 = vadd.f32 %v7200_v16, %v7199_v15  ;;  %v7202_v48 = vpop.f32.mrb[94].mxu1 }
 0x1b6   : > { %v7203_v10 = vpop.f32.mrb[95].mxu1 }
 0x1b7   : > { %v9221_v42 = vpack.c.bf16 %v1582_v33, %v1581_v19  ;;  %v1406_v3 = vadd.f32 %v7201_v27, %v1270_v58  ;;  %v7204_v29 = vadd.f32 %v7203_v10, %v7202_v48 }
 0x1b9   : > { %v1542_v54 = vadd.f32 %v9089_v8, %v1406_v3  ;;  %v1409_v30 = vadd.f32 %v7204_v29, %v1273_v18  ;;  %v1664_v36 = vrot.slane %v9221_v42, 1  ;;  %v2068_v32 = vrot.slane %v9221_v42, 2 }
 0x1ba   : > { %v2320_v52 = vrot.slane %v9221_v42, 3 }
 0x1bb   : > { %v1545_v37 = vadd.f32 %v9092_v28, %v1409_v30  ;;  %v7205_v39 = vpop.f32.mrb[96].mxu1  ;;  %v1665_v40 = vsel %vm1646_vm2, %v1662_v7, %v1664_v36  ;;  %v9234_v31 = vsel %vm2052_vm3, %v2066_v45, %v2068_v32  ;;  %v1583_v28 = vmax.f32 %v1542_v54, 0.0 }
 0x1bc   : > { %v7206_v8 = vpop.f32.mrb[97].mxu1  ;;  %7523 = vmatprep.mubr.bf16.mxu1 %v1665_v40  ;;  %v9239_v44 = vsel %vm2304_vm4, %v2318_v5, %v2320_v52  ;;  %v8304_v40 = vld [vmem:[%s11260_s3 + $0xc0] sm:$0xff]  }
 0x1bd   : > { %v1584_v17 = vmax.f32 %v1545_v37, 0.0  ;;  %v7207_v61 = vadd.f32 %v7206_v8, %v7205_v39  ;;  %v7208_v55 = vpop.f32.mrb[98].mxu1  ;;  %v8302_v37 = vld [vmem:[%s11260_s3 + $0xb0] sm:$0xff]   ;;  %v8303_v39 = vld [vmem:[%s11260_s3 + $0xb8] sm:$0xff]   ;;  %v2054_v8 = vrot.slane %v9121_v43, 2 }
 0x1be   : > { %v7209_v46 = vpop.f32.mrb[99].mxu1 }
 0x1bf   : > { %v9245_v38 = vpack.c.bf16 %v1584_v17, %v1583_v28  ;;  %v1414_v62 = vadd.f32 %v7207_v61, %v1278_v35  ;;  %v7210_v24 = vadd.f32 %v7209_v46, %v7208_v55  ;;  %v2053_v35 = vrot.slane %v9108_v21, 2  ;;  %v8305_v55 = vld [vmem:[%s11260_s3 + $0xc8] sm:$0xff]  }
 0x1c0   : > { %v2056_v17 = vrot.slane %v9138_v4, 2  ;;  %v2058_v61 = vrot.slane %v9154_v57, 2 }
 0x1c1   : > { %v1550_v20 = vadd.f32 %v9101_v6, %v1414_v62  ;;  %v1417_v47 = vadd.f32 %v7210_v24, %v1281_v34  ;;  %v1666_v53 = vrot.slane %v9245_v38, 1  ;;  %v2070_v2 = vrot.slane %v9245_v38, 2  ;;  %v8306_v34 = vld [vmem:[%s11260_s3 + $0xd0] sm:$0xff]   ;;  %v8307_v24 = vld [vmem:[%s11260_s3 + $0xd8] sm:$0xff]  }
 0x1c2   : > { %v2322_v49 = vrot.slane %v9245_v38, 3  ;;  %v1286_v6 = vadd.f32 %v9073_v12, %v9080_v23  ;;  %v2055_v28 = vsel %vm2052_vm3, %v2053_v35, %v2054_v8  ;;  %v2059_v46 = vsel %vm2052_vm3, %v2056_v17, %v2058_v61 }
 0x1c3   : > { %v1553_v59 = vadd.f32 %v9104_v25, %v1417_v47  ;;  %v7211_v41 = vpop.f32.mrb[100].mxu1  ;;  %v1667_v1 = vsel %vm1646_vm2, %v1664_v36, %v1666_v53  ;;  %v9254_v56 = vsel %vm2052_vm3, %v2068_v32, %v2070_v2  ;;  %v1585_v7 = vmax.f32 %v1550_v20, 0.0  ;;  %v8297_v36 = vld [vmem:[%s11260_s3 + $0x88] sm:$0xff]   ;;  %v8299_v32 = vld [vmem:[%s11260_s3 + $0x98] sm:$0xff]  }
 0x1c4   : > { %v7212_v50 = vpop.f32.mrb[101].mxu1  ;;  %7524 = vmatmul.mubr.bf16.gmra.mrb[120].mxu1 %v1667_v1  ;;  %v9257_v22 = vsel %vm2304_vm4, %v2320_v52, %v2322_v49  ;;  %v8301_v52 = vld [vmem:[%s11260_s3 + $0xa8] sm:$0xff]   ;;  %v2062_v62 = vrot.slane %v9188_v26, 2  ;;  %v8310_v1 = vld [vmem:[%s11260_s3 + $0xf0] sm:$0xff]  }
 0x1c5   : > { %v1586_v0 = vmax.f32 %v1553_v59, 0.0  ;;  %v7213_v15 = vadd.f32 %v7212_v50, %v7211_v41  ;;  %v7214_v13 = vpop.f32.mrb[102].mxu1  ;;  %v8311_v50 = vld [vmem:[%s11260_s3 + $0xf8] sm:$0xff]  }
 0x1c6   : > { %v7215_v16 = vpop.f32.mrb[103].mxu1  ;;  %v2310_v13 = vrot.slane %v9154_v57, 3 }
 0x1c7   : > { %v1599_v25 = vpack.c.bf16 %v1586_v0, %v1585_v7  ;;  %v1422_v58 = vadd.f32 %v7213_v15, %v1286_v6  ;;  %v11272_v6 = vmov 0.0   ;;  %v8313_v7 = vld [vmem:[%s11262_s5 + $0x28] sm:$0xff]   ;;  %v2308_v15 = vrot.slane %v9138_v4, 3 }
 0x1c9   : > { %v1558_v19 = vadd.f32 %v9115_v60, %v1422_v58  ;;  %v1668_v33 = vrot.slane %v1599_v25, 1  ;;  %v2072_v27 = vrot.slane %v1599_v25, 2  ;;  %v2324_v48 = vrot.slane %v1599_v25, 3 }
 0x1cb   : > { %v1587_v10 = vmax.f32 %v1558_v19, 0.0  ;;  %v1669_v18 = vsel %vm1646_vm2, %v1666_v53, %v1668_v33  ;;  %v9264_v3 = vsel %vm2052_vm3, %v2070_v2, %v2072_v27  ;;  %v9267_v12 = vsel %vm2304_vm4, %v2322_v49, %v2324_v48  ;;  %v8308_v53 = vld [vmem:[%s11260_s3 + $0xe0] sm:$0xff]   ;;  %v8309_v49 = vld [vmem:[%s11260_s3 + $0xe8] sm:$0xff]  }
 0x1cc   : > { %7527 = vmatprep.mubr.bf16.mxu1 %v1669_v18  ;;  %v2064_v2 = vrot.slane %v9199_v51, 2 }
 0x1cd   : > { %v9269_v23 = vpack.c.bf16 %v1587_v10, %v1587_v10  ;;  %7528 = vmatmul.mubr.bf16.gmra.mrb[124].mxu1 %v1668_v33 }
 0x1ce   : > { %7547 = vmatprep.mubr.bf16.mxu1 %v9096_v11  ;;  %v8298_v11 = vld [vmem:[%s11260_s3 + $0x90] sm:$0xff]   ;;  %v2065_v59 = vsel %vm2052_vm3, %v2062_v62, %v2064_v2  ;;  %v2067_v41 = vsel %vm2052_vm3, %v2064_v2, %v2066_v45  ;;  %v8312_v45 = vld [vmem:[%s11262_s5 + $0x20] sm:$0xff]  }
 0x1cf   : > { %v2074_v60 = vrot.slane %v9269_v23, 2  ;;  %v2326_v29 = vrot.slane %v9269_v23, 3  ;;  %7652 = vmatpush3.bf16.msra.mxu0 %v8312_v45 }
 0x1d0   : > { %7653 = vmatprep.subr.bf16.mxu0 %v11272_v6 }
 0x1d1   : > { %v9277_v54 = vsel %vm2052_vm3, %v2072_v27, %v2074_v60  ;;  %v9282_v30 = vsel %vm2304_vm4, %v2324_v48, %v2326_v29 }
 0x1d3   : > { %7654 = vmatpush3.bf16.msra.mxu0 %v8313_v7  ;;  %v8320_v7 = vld [vmem:[%s11262_s5] sm:$0xff]  }
 0x1d4   : > { %7655 = vmatprep.subr.bf16.mxu0 %v11272_v6 }
 0x1d5   : > { %7548 = vmatmul.mubr.bf16.vlgmr.msra.gmra.mrb[104].mxu1 %v9108_v21 }
 0x1d6   : > { %7551 = vmatprep.mubr.bf16.mxu1 %v9121_v43  ;;  %7572 = vmatpush3.bf16.msra.mxu1 %v9186_v14  ;;  %v8300_v14 = vld [vmem:[%s11260_s3 + $0xa0] sm:$0xff]  }
 0x1d7   : > { %7573 = vmatprep.subr.bf16.mxu1 %v8297_v36 }
 0x1da   : > { %7574 = vmatpush3.bf16.msra.mxu1 %v8297_v36 }
 0x1db   : > { %7575 = vmatprep.subr.bf16.mxu1 %v8298_v11 }
 0x1dd   : > { %7552 = vmatmul.mubr.bf16.gmra.mrb[108].mxu1 %v9138_v4  ;;  %v2316_v4 = vrot.slane %v9199_v51, 3 }
 0x1de   : > { %7555 = vmatprep.mubr.bf16.mxu1 %v9154_v57  ;;  %7576 = vmatpush3.bf16.msra.mxu1 %v8298_v11 }
 0x1df   : > { %7577 = vmatprep.subr.bf16.mxu1 %v8299_v32  ;;  %v2319_v33 = vsel %vm2304_vm4, %v2316_v4, %v2318_v5  ;;  %v8318_v5 = vld [vmem:[%s11262_s5 + $0x50] sm:$0xff]  }
 0x1e2   : > { %7578 = vmatpush3.bf16.msra.mxu1 %v8299_v32 }
 0x1e3   : > { %7579 = vmatprep.subr.bf16.mxu1 %v8300_v14 }
 0x1e5   : > { %7556 = vmatmul.mubr.bf16.gmra.mrb[112].mxu1 %v9170_v9 }
 0x1e6   : > { %7559 = vmatprep.mubr.bf16.mxu1 %v9188_v26  ;;  %7580 = vmatpush3.bf16.msra.mxu1 %v8300_v14 }
 0x1e7   : > { %7581 = vmatprep.subr.bf16.mxu1 %v8301_v52 }
 0x1ea   : > { %7582 = vmatpush3.bf16.msra.mxu1 %v8301_v52 }
 0x1eb   : > { %7583 = vmatprep.subr.bf16.mxu1 %v8302_v37 }
 0x1ed   : > { %7560 = vmatmul.mubr.bf16.gmra.mrb[116].mxu1 %v9199_v51  ;;  %v8316_v51 = vld [vmem:[%s11262_s5 + $0x40] sm:$0xff]  }
 0x1ee   : > { %7563 = vmatprep.mubr.bf16.mxu1 %v9211_v63  ;;  %7584 = vmatpush3.bf16.msra.mxu1 %v8302_v37  ;;  %v8317_v63 = vld [vmem:[%s11262_s5 + $0x48] sm:$0xff]  }
 0x1ef   : > { %7585 = vmatprep.subr.bf16.mxu1 %v8303_v39 }
 0x1f2   : > { %7586 = vmatpush3.bf16.msra.mxu1 %v8303_v39  ;;  %v9428_v39 = vld [vmem:[%s11261_s4] ss:$0 sm:$0xff] }
 0x1f3   : > { %7611 = vmatprep.subr.bf16.mxu1 %v8304_v40 }
 0x1f5   : > { %7564 = vmatmul.mubr.bf16.gmra.mrb[120].mxu1 %v9221_v42  ;;  %v2057_v42 = vsel %vm2052_vm3, %v2054_v8, %v2056_v17 }
 0x1f6   : > { %7567 = vmatprep.mubr.bf16.mxu1 %v9245_v38  ;;  %v2060_v38 = vrot.slane %v9170_v9, 2 }
 0x1f8   : > { %v2061_v20 = vsel %vm2052_vm3, %v2058_v61, %v2060_v38  ;;  %v2063_v47 = vsel %vm2052_vm3, %v2060_v38, %v2062_v62 }
 0x1fd   : > { %7568 = vmatmul.mubr.bf16.gmra.mrb[128].mxu1 %v1599_v25  ;;  %v2312_v25 = vrot.slane %v9170_v9, 3  ;;  %v8314_v9 = vld [vmem:[%s11262_s5 + $0x30] sm:$0xff]  }
 0x1fe   : > { %7587 = vmatprep.mubr.bf16.mxu1 %v2055_v28  ;;  %7656 = vmatpush3.bf16.msra.mxu0 %v8314_v9  ;;  %v8325_v9 = vld [vmem:[%s11262_s5 + $0x88] sm:$0xff]  }
 0x1ff   : > { %v2313_v58 = vsel %vm2304_vm4, %v2310_v13, %v2312_v25  ;;  %7657 = vmatprep.subr.bf16.mxu0 %v11272_v6 }
 0x205   : > { %7588 = vmatmul.mubr.bf16.vlgmr.msra.gmra.mrb[104].mxu1 %v2057_v42 }
 0x206   : > { %7591 = vmatprep.mubr.bf16.mxu1 %v2059_v46  ;;  %7612 = vmatpush3.bf16.msra.mxu1 %v8304_v40 }
 0x207   : > { %7613 = vmatprep.subr.bf16.mxu1 %v8305_v55 }
 0x20a   : > { %7614 = vmatpush3.bf16.msra.mxu1 %v8305_v55 }
 0x20b   : > { %7615 = vmatprep.subr.bf16.mxu1 %v8306_v34 }
 0x20d   : > { %7592 = vmatmul.mubr.bf16.gmra.mrb[108].mxu1 %v2061_v20 }
 0x20e   : > { %7595 = vmatprep.mubr.bf16.mxu1 %v2063_v47  ;;  %7616 = vmatpush3.bf16.msra.mxu1 %v8306_v34 }
 0x20f   : > { %7617 = vmatprep.subr.bf16.mxu1 %v8307_v24 }
 0x212   : > { %7618 = vmatpush3.bf16.msra.mxu1 %v8307_v24 }
 0x213   : > { %7619 = vmatprep.subr.bf16.mxu1 %v8308_v53 }
 0x215   : > { %7596 = vmatmul.mubr.bf16.gmra.mrb[112].mxu1 %v2065_v59 }
 0x216   : > { %7599 = vmatprep.mubr.bf16.mxu1 %v2067_v41  ;;  %7620 = vmatpush3.bf16.msra.mxu1 %v8308_v53 }
 0x217   : > { %7621 = vmatprep.subr.bf16.mxu1 %v8309_v49 }
 0x21a   : > { %7622 = vmatpush3.bf16.msra.mxu1 %v8309_v49 }
 0x21b   : > { %7623 = vmatprep.subr.bf16.mxu1 %v8310_v1 }
 0x21d   : > { %7600 = vmatmul.mubr.bf16.gmra.mrb[116].mxu1 %v9234_v31  ;;  %v2306_v31 = vrot.slane %v9121_v43, 3  ;;  %v2311_v43 = vsel %vm2304_vm4, %v2308_v15, %v2310_v13 }
 0x21e   : > { %7603 = vmatprep.mubr.bf16.mxu1 %v9254_v56  ;;  %7624 = vmatpush3.bf16.msra.mxu1 %v8310_v1  ;;  %v2305_v56 = vrot.slane %v9108_v21, 3  ;;  %v2314_v21 = vrot.slane %v9188_v26, 3  ;;  %v8315_v26 = vld [vmem:[%s11262_s5 + $0x38] sm:$0xff]  }
 0x21f   : > { %7625 = vmatprep.subr.bf16.mxu1 %v8311_v50  ;;  %v2309_v16 = vsel %vm2304_vm4, %v2306_v31, %v2308_v15  ;;  %7658 = vmatpush3.bf16.msra.mxu0 %v8315_v26 }
 0x220   : > { %v2307_v0 = vsel %vm2304_vm4, %v2305_v56, %v2306_v31  ;;  %v2315_v19 = vsel %vm2304_vm4, %v2312_v25, %v2314_v21  ;;  %v2317_v57 = vsel %vm2304_vm4, %v2314_v21, %v2316_v4  ;;  %7695 = vmatprep.subr.bf16.mxu0 %v11272_v6 }
 0x222   : > { %7626 = vmatpush3.bf16.msra.mxu1 %v8311_v50 }
 0x223   : > { %7739 = vmatprep.subr.bf16.mxu1 %v11272_v6 }
 0x225   : > { %7604 = vmatmul.mubr.bf16.gmra.mrb[120].mxu1 %v9264_v3 }
 0x226   : > { %7607 = vmatprep.mubr.bf16.mxu1 %v9277_v54 }
 0x22d   : > { %7608 = vmatmul.mubr.bf16.gmra.mrb[132].mxu1 %v2074_v60 }
 0x22e   : > { %7627 = vmatprep.mubr.bf16.mxu1 %v2307_v0 }
 0x235   : > { %7628 = vmatmul.mubr.bf16.vlgmr.msra.gmra.mrb[104].mxu1 %v2309_v16  ;;  %v8324_v16 = vld [vmem:[%s11262_s5 + $0x80] sm:$0xff]  }
 0x236   : > { %7631 = vmatprep.mubr.bf16.mxu1 %v2311_v43  ;;  %7740 = vmatpush3.bf16.msra.mxu1 %v8316_v51 }
 0x237   : > { %7741 = vmatprep.subr.bf16.mxu1 %v11272_v6 }
 0x23a   : > { %7742 = vmatpush3.bf16.msra.mxu1 %v8317_v63 }
 0x23b   : > { %7743 = vmatprep.subr.bf16.mxu1 %v11272_v6 }
 0x23d   : > { %7632 = vmatmul.mubr.bf16.gmra.mrb[108].mxu1 %v2313_v58 }
 0x23e   : > { %7635 = vmatprep.mubr.bf16.mxu1 %v2315_v19  ;;  %7744 = vmatpush3.bf16.msra.mxu1 %v8318_v5  ;;  %v8321_v19 = vld [vmem:[%s11262_s5 + $0x8] sm:$0xff]  }
 0x23f   : > { %7745 = vmatprep.subr.bf16.mxu1 %v11272_v6 }
 0x245   : > { %7636 = vmatmul.mubr.bf16.gmra.mrb[112].mxu1 %v2317_v57 }
 0x246   : > { %7639 = vmatprep.mubr.bf16.mxu1 %v2319_v33 }
 0x24d   : > { %7640 = vmatmul.mubr.bf16.gmra.mrb[116].mxu1 %v9239_v44  ;;  %v8319_v44 = vld [vmem:[%s11262_s5 + $0x58] sm:$0xff]  }
 0x24e   : > { %7643 = vmatprep.mubr.bf16.mxu1 %v9257_v22  ;;  %7746 = vmatpush3.bf16.msra.mxu1 %v8319_v44 }
 0x24f   : > { %7827 = vmatprep.subr.bf16.mxu1 %v11272_v6 }
 0x255   : > { %7644 = vmatmul.mubr.bf16.gmra.mrb[120].mxu1 %v9267_v12 }
 0x256   : > { %7647 = vmatprep.mubr.bf16.mxu1 %v9282_v30 }
 0x25d   : > { %7648 = vmatmul.mubr.bf16.gmra.mrb[136].mxu1 %v2326_v29 }
 0x25e   : > { %7747 = vmatprep.mubr.msk.bf16.mxu1 %vm8652_vm0, %v11272_v6 }
 0x2a0   : > { %v7529_v22 = vpop.f32.mrb[124].mxu1 }
 0x2a1   : > { %v1844_v27 = vpop.f32.mrb[125].mxu1 }
 0x2a2   : > { %v7530_v48 = vpop.f32.mrb[126].mxu1 }
 0x2a3   : > { %v1847_v10 = vpop.f32.mrb[127].mxu1 }
 0x2d0   : > { %v7569_v18 = vpop.f32.mrb[128].mxu1 }
 0x2d1   : > { %v2029_v3 = vadd.f32 %v7569_v18, %v7529_v22  ;;  %v2020_v12 = vpop.f32.mrb[129].mxu1 }
 0x2d2   : > { %v2021_v23 = vadd.f32 %v2020_v12, %v1844_v27  ;;  %v7570_v60 = vpop.f32.mrb[130].mxu1 }
 0x2d3   : > { %v2023_v29 = vpop.f32.mrb[131].mxu1  ;;  %v8326_v60 = vld [vmem:[%s11262_s5 + $0x90] sm:$0xff]  }
 0x2d4   : > { %v2024_v54 = vadd.f32 %v2023_v29, %v1847_v10  ;;  %v8322_v10 = vld [vmem:[%s11262_s5 + $0x10] sm:$0xff]  }
 0x300   : > { %v7609_v30 = vpop.f32.mrb[132].mxu1 }
 0x301   : > { %v9419_v36 = vadd.f32 %v7609_v30, %v2029_v3  ;;  %v2250_v11 = vpop.f32.mrb[133].mxu1 }
 0x302   : > { %v9421_v32 = vadd.f32 %v2250_v11, %v2021_v23  ;;  %v7610_v14 = vpop.f32.mrb[134].mxu1 }
 0x303   : > { %v2253_v52 = vpop.f32.mrb[135].mxu1 }
 0x304   : > { %v9423_v37 = vadd.f32 %v2253_v52, %v2024_v54 }
 0x308   : > { %v7629_v40 = vpop.f32.mrb[104].mxu1 }
 0x309   : > { %v2548_v8 = vadd.f32 %v7629_v40, %v9428_v39  ;;  %v2422_v35 = vpop.f32.mrb[105].mxu1 }
 0x30a   : > { %v2546_v28 = vadd.f32 %v9428_v39, %v2422_v35  ;;  %v7630_v17 = vpop.f32.mrb[106].mxu1 }
 0x30b   : > { %v2549_v61 = vadd.f32 %v7630_v17, %v9428_v39  ;;  %v2425_v55 = vpop.f32.mrb[107].mxu1  ;;  %v2571_v46 = vmax.f32 %v2548_v8, 0.0  ;;  %v8323_v8 = vld [vmem:[%s11262_s5 + $0x18] sm:$0xff]  }
 0x30c   : > { %v2547_v42 = vadd.f32 %v9428_v39, %v2425_v55  ;;  %v2569_v38 = vmax.f32 %v2546_v28, 0.0  ;;  %v8327_v55 = vld [vmem:[%s11262_s5 + $0x98] sm:$0xff]  }
 0x30d   : > { %v2572_v34 = vmax.f32 %v2549_v61, 0.0 }
 0x30e   : > { %v2570_v62 = vmax.f32 %v2547_v42, 0.0 }
 0x30f   : > { %v9434_v24 = vpack.c.bf16 %v2572_v34, %v2571_v46 }
 0x310   : > { %v9436_v20 = vpack.c.bf16 %v2570_v62, %v2569_v38  ;;  %v7633_v47 = vpop.f32.mrb[108].mxu1 }
 0x311   : > { %v2552_v53 = vadd.f32 %v7633_v47, %v9428_v39  ;;  %v2438_v2 = vpop.f32.mrb[109].mxu1  ;;  %v2631_v49 = vrot.slane %v9434_v24, 1  ;;  %v2967_v59 = vrot.slane %v9434_v24, 2  ;;  %v3526_v29 = vrot.slane %v9434_v24, 4 }
 0x312   : > { %v2630_v41 = vrot.slane %v9436_v20, 1  ;;  %v2966_v1 = vrot.slane %v9436_v20, 2  ;;  %v2550_v50 = vadd.f32 %v9428_v39, %v2438_v2  ;;  %v7634_v45 = vpop.f32.mrb[110].mxu1 }
 0x313   : > { %v2553_v31 = vadd.f32 %v7634_v45, %v9428_v39  ;;  %v2441_v56 = vpop.f32.mrb[111].mxu1  ;;  %v2575_v43 = vmax.f32 %v2552_v53, 0.0 }
 0x314   : > { %v2551_v0 = vadd.f32 %v9428_v39, %v2441_v56  ;;  %v2632_v15 = vsel %vm1646_vm2, %v2630_v41, %v2631_v49  ;;  %v2968_v13 = vsel %vm2052_vm3, %v2966_v1, %v2967_v59  ;;  %v2573_v21 = vmax.f32 %v2550_v50, 0.0 }
 0x315   : > { %v2576_v25 = vmax.f32 %v2553_v31, 0.0  ;;  %7660 = vmatmul.mubr.msk.bf16.vlgmr.msra.gmra.mrb[52].mxu0 %vm1115_vm1, %v2632_v15  ;;  %7748 = vmatmul.mubr.msk.bf16.vlgmr.msra.gmra.mrb[140].mxu1 %vm1115_vm1, %v2968_v13 }
 0x316   : > { %v2574_v58 = vmax.f32 %v2551_v0, 0.0  ;;  %7696 = vmatpush3.bf16.msra.mxu0 %v8320_v7  ;;  %7663 = vmatprep.mubr.msk.bf16.mxu0 %vm8652_vm0, %v11272_v6 }
 0x317   : > { %v9461_v4 = vpack.c.bf16 %v2576_v25, %v2575_v43  ;;  %7751 = vmatprep.mubr.msk.bf16.mxu1 %vm8652_vm0, %v11272_v6  ;;  %7697 = vmatprep.subr.bf16.mxu0 %v11272_v6 }
 0x318   : > { %v9466_v57 = vpack.c.bf16 %v2574_v58, %v2573_v21  ;;  %v7637_v33 = vpop.f32.mrb[112].mxu1  ;;  %7828 = vmatpush3.bf16.msra.mxu1 %v8324_v16 }
 0x319   : > { %v2556_v26 = vadd.f32 %v7637_v33, %v9428_v39  ;;  %v2454_v51 = vpop.f32.mrb[113].mxu1  ;;  %7829 = vmatprep.subr.bf16.mxu1 %v11272_v6  ;;  %v2635_v17 = vrot.slane %v9461_v4, 1  ;;  %v2971_v61 = vrot.slane %v9461_v4, 2 }
 0x31a   : > { %v2554_v63 = vadd.f32 %v9428_v39, %v2454_v51  ;;  %v7638_v5 = vpop.f32.mrb[114].mxu1  ;;  %v2633_v44 = vrot.slane %v9466_v57, 1  ;;  %v2969_v22 = vrot.slane %v9466_v57, 2  ;;  %7698 = vmatpush3.bf16.msra.mxu0 %v8321_v19  ;;  %v3527_v18 = vrot.slane %v9466_v57, 4 }
 0x31b   : > { %v2557_v27 = vadd.f32 %v7638_v5, %v9428_v39  ;;  %v2457_v48 = vpop.f32.mrb[115].mxu1  ;;  %7699 = vmatprep.subr.bf16.mxu0 %v11272_v6  ;;  %v2579_v54 = vmax.f32 %v2556_v26, 0.0 }
 0x31c   : > { %v2555_v3 = vadd.f32 %v9428_v39, %v2457_v48  ;;  %v2634_v12 = vsel %vm1646_vm2, %v2631_v49, %v2633_v44  ;;  %v9485_v23 = vsel %vm2052_vm3, %v2967_v59, %v2969_v22  ;;  %7830 = vmatpush3.bf16.msra.mxu1 %v8325_v9  ;;  %v2577_v11 = vmax.f32 %v2554_v63, 0.0 }
 0x31d   : > { %v2580_v30 = vmax.f32 %v2557_v27, 0.0  ;;  %7664 = vmatmul.mubr.msk.bf16.gmra.mrb[56].mxu0 %vm1115_vm1, %v2634_v12  ;;  %7752 = vmatmul.mubr.msk.bf16.gmra.mrb[144].mxu1 %vm1115_vm1, %v9485_v23  ;;  %v9501_v52 = vsel %vm3525_vm5, %v3526_v29, %v3527_v18  ;;  %v2636_v2 = vsel %vm1646_vm2, %v2633_v44, %v2635_v17  ;;  %v9524_v49 = vsel %vm2052_vm3, %v2969_v22, %v2971_v61 }
 0x31e   : > { %v2578_v14 = vmax.f32 %v2555_v3, 0.0  ;;  %7667 = vmatprep.mubr.msk.bf16.mxu0 %vm8652_vm0, %v11272_v6  ;;  %7755 = vmatprep.mubr.msk.bf16.mxu1 %vm8652_vm0, %v11272_v6 }
 0x31f   : > { %v9503_v40 = vpack.c.bf16 %v2580_v30, %v2579_v54  ;;  %7700 = vmatpush3.bf16.msra.mxu0 %v8322_v10  ;;  %7831 = vmatprep.subr.bf16.mxu1 %v11272_v6 }
 0x320   : > { %v9509_v35 = vpack.c.bf16 %v2578_v14, %v2577_v11  ;;  %v7641_v28 = vpop.f32.mrb[116].mxu1  ;;  %7701 = vmatprep.subr.bf16.mxu0 %v11272_v6  ;;  %7832 = vmatpush3.bf16.msra.mxu1 %v8326_v60 }
 0x321   : > { %v2560_v42 = vadd.f32 %v7641_v28, %v9428_v39  ;;  %v2470_v46 = vpop.f32.mrb[117].mxu1  ;;  %7833 = vmatprep.subr.bf16.mxu1 %v11272_v6  ;;  %v2639_v27 = vrot.slane %v9503_v40, 1  ;;  %v2975_v48 = vrot.slane %v9503_v40, 2 }
 0x322   : > { %v2558_v34 = vadd.f32 %v9428_v39, %v2470_v46  ;;  %v7642_v38 = vpop.f32.mrb[118].mxu1  ;;  %v2637_v56 = vrot.slane %v9509_v35, 1  ;;  %v2973_v0 = vrot.slane %v9509_v35, 2 }
 0x323   : > { %v2561_v62 = vadd.f32 %v7642_v38, %v9428_v39  ;;  %v2473_v47 = vpop.f32.mrb[119].mxu1  ;;  %7702 = vmatpush3.bf16.msra.mxu0 %v8323_v8  ;;  %v2583_v59 = vmax.f32 %v2560_v42, 0.0 }
 0x324   : > { %v2559_v53 = vadd.f32 %v9428_v39, %v2473_v47  ;;  %7834 = vmatpush3.bf16.msra.mxu1 %v8327_v55  ;;  %7783 = vmatprep.subr.bf16.mxu0 %v11272_v6  ;;  %v2581_v1 = vmax.f32 %v2558_v34, 0.0  ;;  %v2638_v19 = vsel %vm1646_vm2, %v2635_v17, %v2637_v56  ;;  %v9547_v33 = vsel %vm2052_vm3, %v2971_v61, %v2973_v0 }
 0x325   : > { %v2584_v41 = vmax.f32 %v2561_v62, 0.0  ;;  %7668 = vmatmul.mubr.msk.bf16.gmra.mrb[60].mxu0 %vm1115_vm1, %v2636_v2  ;;  %7756 = vmatmul.mubr.msk.bf16.gmra.mrb[148].mxu1 %vm1115_vm1, %v9524_v49  ;;  %v2640_v28 = vsel %vm1646_vm2, %v2637_v56, %v2639_v27  ;;  %v9571_v17 = vsel %vm2052_vm3, %v2973_v0, %v2975_v48 }
 0x326   : > { %v2582_v50 = vmax.f32 %v2559_v53, 0.0  ;;  %7671 = vmatprep.mubr.msk.bf16.mxu0 %vm8652_vm0, %v11272_v6  ;;  %7759 = vmatprep.mubr.msk.bf16.mxu1 %vm8652_vm0, %v11272_v6 }
 0x327   : > { %v9534_v45 = vpack.c.bf16 %v2584_v41, %v2583_v59  ;;  %7915 = vmatprep.subr.bf16.mxu1 %v11272_v6 }
 0x328   : > { %v9537_v7 = vpack.c.bf16 %v2582_v50, %v2581_v1  ;;  %v7645_v31 = vpop.f32.mrb[120].mxu1 }
 0x329   : > { %v2564_v15 = vadd.f32 %v7645_v31, %v9428_v39  ;;  %v2486_v13 = vpop.f32.mrb[121].mxu1  ;;  %v2643_v1 = vrot.slane %v9534_v45, 1  ;;  %v2979_v50 = vrot.slane %v9534_v45, 2 }
 0x32a   : > { %v2562_v16 = vadd.f32 %v9428_v39, %v2486_v13  ;;  %v7646_v43 = vpop.f32.mrb[122].mxu1  ;;  %v2641_v61 = vrot.slane %v9537_v7, 1  ;;  %v2977_v34 = vrot.slane %v9537_v7, 2 }
 0x32b   : > { %v2565_v25 = vadd.f32 %v7646_v43, %v9428_v39  ;;  %v2489_v21 = vpop.f32.mrb[123].mxu1  ;;  %v2587_v9 = vmax.f32 %v2564_v15, 0.0  ;;  %v3327_v43 = vrot.slane %v9434_v24, 3 }
 0x32c   : > { %v2563_v58 = vadd.f32 %v9428_v39, %v2489_v21  ;;  %v2585_v51 = vmax.f32 %v2562_v16, 0.0  ;;  %v9594_v2 = vsel %vm2052_vm3, %v2975_v48, %v2977_v34  ;;  %v2644_v31 = vsel %vm1646_vm2, %v2641_v61, %v2643_v1 }
 0x32d   : > { %v2588_v26 = vmax.f32 %v2565_v25, 0.0  ;;  %7672 = vmatmul.mubr.msk.bf16.gmra.mrb[64].mxu0 %vm1115_vm1, %v2638_v19  ;;  %7760 = vmatmul.mubr.msk.bf16.gmra.mrb[152].mxu1 %vm1115_vm1, %v9547_v33  ;;  %v9615_v56 = vsel %vm2052_vm3, %v2977_v34, %v2979_v50  ;;  %v3328_v16 = vrot.slane %v9466_v57, 3  ;;  %v8328_v25 = vld [vmem:[%s11262_s5 + $0x60] sm:$0xff]   ;;  %v8329_v19 = vld [vmem:[%s11262_s5 + $0x68] sm:$0xff]  }
 0x32e   : > { %v2586_v63 = vmax.f32 %v2563_v58, 0.0  ;;  %7675 = vmatprep.mubr.msk.bf16.mxu0 %vm8652_vm0, %v11272_v6  ;;  %7763 = vmatprep.mubr.msk.bf16.mxu1 %vm8652_vm0, %v11272_v6  ;;  %v8332_v58 = vld [vmem:[%s11262_s5 + $0xc0] sm:$0xff]  }
 0x32f   : > { %v9556_v5 = vpack.c.bf16 %v2588_v26, %v2587_v9  ;;  %v3329_v21 = vsel %vm2304_vm4, %v3327_v43, %v3328_v16  ;;  %v3330_v9 = vrot.slane %v9461_v4, 3  ;;  %v8330_v26 = vld [vmem:[%s11262_s5 + $0x70] sm:$0xff]  }
 0x330   : > { %v9558_v44 = vpack.c.bf16 %v2586_v63, %v2585_v51  ;;  %v7649_v22 = vpop.f32.mrb[136].mxu1  ;;  %v8334_v63 = vld [vmem:[%s11262_s5 + $0xd0] sm:$0xff]  }
 0x331   : > { %v2538_v10 = vadd.f32 %v7649_v22, %v9419_v36  ;;  %v2502_v3 = vpop.f32.mrb[137].mxu1  ;;  %v3165_v11 = vrot.slane %v9556_v5, 2  ;;  %v4101_v62 = vrot.slane %v9556_v5, 6  ;;  %v3331_v51 = vsel %vm2304_vm4, %v3328_v16, %v3330_v9  ;;  %v8331_v22 = vld [vmem:[%s11262_s5 + $0x78] sm:$0xff]  }
 0x332   : > { %v2536_v12 = vadd.f32 %v2502_v3, %v9421_v32  ;;  %v7650_v60 = vpop.f32.mrb[138].mxu1  ;;  %v2981_v29 = vrot.slane %v9558_v44, 2  ;;  %v2645_v0 = vrot.slane %v9558_v44, 1 }
 0x333   : > { %v2568_v54 = vadd.f32 %v9428_v39, %v2538_v10  ;;  %v2505_v30 = vpop.f32.mrb[139].mxu1  ;;  %v3334_v10 = vrot.slane %v9503_v40, 3 }
 0x334   : > { %v2566_v14 = vadd.f32 %v9428_v39, %v2536_v12  ;;  %v2537_v8 = vadd.f32 %v2505_v30, %v9423_v37  ;;  %v9584_v37 = vsel %vm2052_vm3, %v2981_v29, %v3165_v11  ;;  %v2646_v15 = vsel %vm1646_vm2, %v2643_v1, %v2645_v0 }
 0x335   : > { %v2591_v36 = vmax.f32 %v2568_v54, 0.0  ;;  %7676 = vmatmul.mubr.msk.bf16.gmra.mrb[68].mxu0 %vm1115_vm1, %v2640_v28  ;;  %7764 = vmatmul.mubr.msk.bf16.gmra.mrb[156].mxu1 %vm1115_vm1, %v9571_v17  ;;  %v9627_v13 = vsel %vm2052_vm3, %v2979_v50, %v2981_v29  ;;  %v3336_v12 = vrot.slane %v9537_v7, 3  ;;  %v3340_v30 = vrot.slane %v9558_v44, 3 }
 0x336   : > { %v2567_v32 = vadd.f32 %v9428_v39, %v2537_v8  ;;  %7679 = vmatprep.mubr.msk.bf16.mxu0 %vm8652_vm0, %v11272_v6  ;;  %7767 = vmatprep.mubr.msk.bf16.mxu1 %vm8652_vm0, %v11272_v6  ;;  %v2589_v42 = vmax.f32 %v2566_v14, 0.0  ;;  %v2642_v39 = vsel %vm1646_vm2, %v2639_v27, %v2641_v61  ;;  %v3332_v27 = vrot.slane %v9509_v35, 3 }
 0x337   : > { %v2603_v55 = vpack.c.bf16 %v2591_v36, %v2591_v36  ;;  %v3337_v60 = vsel %vm2304_vm4, %v3334_v10, %v3336_v12  ;;  %v3342_v8 = vrot.slane %v9556_v5, 3  ;;  %v3529_v36 = vrot.slane %v9461_v4, 4 }
 0x338   : > { %v2590_v46 = vmax.f32 %v2567_v32, 0.0  ;;  %v3333_v48 = vsel %vm2304_vm4, %v3330_v9, %v3332_v27  ;;  %v3335_v3 = vsel %vm2304_vm4, %v3332_v27, %v3334_v10  ;;  %v8336_v32 = vld [vmem:[%s11262_s5 + $0xa0] sm:$0xff]   ;;  %v3535_v50 = vrot.slane %v9537_v7, 4  ;;  %v8346_v10 = vld [vmem:[%s11262_s5 + $0x110] sm:$0xff]  }
 0x339   : > { %v4105_v47 = vrot.slane %v2603_v55, 6  ;;  %v3343_v28 = vsel %vm2304_vm4, %v3340_v30, %v3342_v8  ;;  %v9761_v61 = vsel %vm3525_vm5, %v3527_v18, %v3529_v36  ;;  %v9766_v55 = vld [vmem:[%s11262_s5 + $0xe0] sm:$0xff]   ;;  %v8337_v18 = vld [vmem:[%s11262_s5 + $0xa8] sm:$0xff]  }
 0x33a   : > { %v9588_v38 = vpack.c.bf16 %v2590_v46, %v2589_v42  ;;  %v3531_v42 = vrot.slane %v9509_v35, 4  ;;  %v8338_v46 = vld [vmem:[%s11262_s5 + $0xb0] sm:$0xff]  }
 0x33c   : > { %v4103_v53 = vrot.slane %v9588_v38, 6  ;;  %v9793_v34 = vsel %vm3525_vm5, %v3529_v36, %v3531_v42  ;;  %v3903_v9 = vrot.slane %v9588_v38, 5 }
 0x33d   : > { %7680 = vmatmul.mubr.msk.bf16.gmra.mrb[72].mxu0 %vm1115_vm1, %v2642_v39  ;;  %7768 = vmatmul.mubr.msk.bf16.gmra.mrb[160].mxu1 %vm1115_vm1, %v9594_v2  ;;  %v9799_v39 = vld [vmem:[%s11262_s5 + $0xf0] sm:$0xff]  }
 0x33e   : > { %v9602_v59 = vsel %vm4087_vm6, %v4101_v62, %v4103_v53  ;;  %v9605_v41 = vsel %vm4087_vm6, %v4103_v53, %v4105_v47  ;;  %7683 = vmatprep.mubr.msk.bf16.mxu0 %vm8652_vm0, %v11272_v6  ;;  %7771 = vmatprep.mubr.msk.bf16.mxu1 %vm8652_vm0, %v11272_v6  ;;  %v8339_v47 = vld [vmem:[%s11262_s5 + $0xb8] sm:$0xff]   ;;  %v3533_v53 = vrot.slane %v9503_v40, 4 }
 0x340   : > { %v9823_v1 = vsel %vm3525_vm5, %v3531_v42, %v3533_v53  ;;  %v4091_v42 = vrot.slane %v9509_v35, 6 }
 0x345   : > { %7684 = vmatmul.mubr.msk.bf16.gmra.mrb[76].mxu0 %vm1115_vm1, %v2644_v31  ;;  %7772 = vmatmul.mubr.msk.bf16.gmra.mrb[164].mxu1 %vm1115_vm1, %v9615_v56  ;;  %v9838_v31 = vsel %vm3525_vm5, %v3533_v53, %v3535_v50 }
 0x346   : > { %7687 = vmatprep.mubr.msk.bf16.mxu0 %vm8652_vm0, %v11272_v6  ;;  %7775 = vmatprep.mubr.msk.bf16.mxu1 %vm8652_vm0, %v11272_v6 }
 0x34d   : > { %7688 = vmatmul.mubr.msk.bf16.gmra.mrb[80].mxu0 %vm1115_vm1, %v2646_v15  ;;  %7776 = vmatmul.mubr.msk.bf16.gmra.mrb[168].mxu1 %vm1115_vm1, %v9627_v13 }
 0x34e   : > { %7691 = vmatprep.mubr.msk.bf16.mxu0 %vm8652_vm0, %v11272_v6  ;;  %7779 = vmatprep.mubr.msk.bf16.mxu1 %vm8652_vm0, %v11272_v6 }
 0x355   : > { %7692 = vmatmul.mubr.msk.bf16.gmra.mrb[84].mxu0 %vm1115_vm1, %v2645_v0  ;;  %7780 = vmatmul.mubr.msk.bf16.gmra.mrb[172].mxu1 %vm1115_vm1, %v2981_v29  ;;  %v3338_v29 = vrot.slane %v9534_v45, 3 }
 0x356   : > { %7703 = vmatprep.mubr.msk.bf16.mxu0 %vm8652_vm0, %v11272_v6  ;;  %7835 = vmatprep.mubr.msk.bf16.mxu1 %vm8652_vm0, %v11272_v6 }
 0x357   : > { %v3339_v54 = vsel %vm2304_vm4, %v3336_v12, %v3338_v29  ;;  %v3341_v14 = vsel %vm2304_vm4, %v3338_v29, %v3340_v30  ;;  %v4088_v30 = vrot.slane %v9466_v57, 6 }
 0x35d   : > { %7704 = vmatmul.mubr.msk.bf16.vlgmr.msra.gmra.mrb[88].mxu0 %vm1115_vm1, %v9436_v20  ;;  %7836 = vmatmul.mubr.msk.bf16.vlgmr.msra.gmra.mrb[176].mxu1 %vm1115_vm1, %v3329_v21  ;;  %v8333_v20 = vld [vmem:[%s11262_s5 + $0xc8] sm:$0xff]  }
 0x35e   : > { %7784 = vmatpush3.bf16.msra.mxu0 %v8328_v25  ;;  %7707 = vmatprep.mubr.msk.bf16.mxu0 %vm8652_vm0, %v11272_v6 }
 0x35f   : > { %7839 = vmatprep.mubr.msk.bf16.mxu1 %vm8652_vm0, %v11272_v6  ;;  %7785 = vmatprep.subr.bf16.mxu0 %v11272_v6 }
 0x360   : > { %7916 = vmatpush3.bf16.msra.mxu1 %v8332_v58 }
 0x361   : > { %7917 = vmatprep.subr.bf16.mxu1 %v11272_v6 }
 0x362   : > { %7786 = vmatpush3.bf16.msra.mxu0 %v8329_v19 }
 0x363   : > { %7787 = vmatprep.subr.bf16.mxu0 %v11272_v6 }
 0x364   : > { %7918 = vmatpush3.bf16.msra.mxu1 %v8333_v20 }
 0x365   : > { %7708 = vmatmul.mubr.msk.bf16.gmra.mrb[92].mxu0 %vm1115_vm1, %v9434_v24  ;;  %7840 = vmatmul.mubr.msk.bf16.gmra.mrb[180].mxu1 %vm1115_vm1, %v3331_v51  ;;  %v8335_v24 = vld [vmem:[%s11262_s5 + $0xd8] sm:$0xff]   ;;  %v8345_v51 = vld [vmem:[%s11262_s5 + $0x108] sm:$0xff]  }
 0x366   : > { %7711 = vmatprep.mubr.msk.bf16.mxu0 %vm8652_vm0, %v11272_v6  ;;  %7843 = vmatprep.mubr.msk.bf16.mxu1 %vm8652_vm0, %v11272_v6 }
 0x367   : > { %7788 = vmatpush3.bf16.msra.mxu0 %v8330_v26  ;;  %7919 = vmatprep.subr.bf16.mxu1 %v11272_v6 }
 0x368   : > { %7789 = vmatprep.subr.bf16.mxu0 %v11272_v6  ;;  %7920 = vmatpush3.bf16.msra.mxu1 %v8334_v63 }
 0x369   : > { %7921 = vmatprep.subr.bf16.mxu1 %v11272_v6 }
 0x36b   : > { %7790 = vmatpush3.bf16.msra.mxu0 %v8331_v22 }
 0x36c   : > { %7922 = vmatpush3.bf16.msra.mxu1 %v8335_v24  ;;  %7871 = vmatprep.subr.bf16.mxu0 %v11272_v6 }
 0x36d   : > { %7712 = vmatmul.mubr.msk.bf16.gmra.mrb[96].mxu0 %vm1115_vm1, %v9466_v57  ;;  %7844 = vmatmul.mubr.msk.bf16.gmra.mrb[184].mxu1 %vm1115_vm1, %v3333_v48 }
 0x36e   : > { %7715 = vmatprep.mubr.msk.bf16.mxu0 %vm8652_vm0, %v11272_v6  ;;  %7847 = vmatprep.mubr.msk.bf16.mxu1 %vm8652_vm0, %v11272_v6 }
 0x36f   : > { %8047 = vmatprep.subr.bf16.mxu1 %v11272_v6 }
 0x375   : > { %7716 = vmatmul.mubr.msk.bf16.gmra.mrb[100].mxu0 %vm1115_vm1, %v9461_v4  ;;  %7848 = vmatmul.mubr.msk.bf16.gmra.mrb[188].mxu1 %vm1115_vm1, %v3335_v3 }
 0x376   : > { %7719 = vmatprep.mubr.msk.bf16.mxu0 %vm8652_vm0, %v11272_v6  ;;  %7851 = vmatprep.mubr.msk.bf16.mxu1 %vm8652_vm0, %v11272_v6 }
 0x37d   : > { %7720 = vmatmul.mubr.msk.bf16.gmra.mrb[104].mxu0 %vm1115_vm1, %v9509_v35  ;;  %7852 = vmatmul.mubr.msk.bf16.gmra.mrb[192].mxu1 %vm1115_vm1, %v3337_v60  ;;  %v8347_v60 = vld [vmem:[%s11262_s5 + $0x118] sm:$0xff]  }
 0x37e   : > { %7723 = vmatprep.mubr.msk.bf16.mxu0 %vm8652_vm0, %v11272_v6  ;;  %7855 = vmatprep.mubr.msk.bf16.mxu1 %vm8652_vm0, %v11272_v6 }
 0x385   : > { %7724 = vmatmul.mubr.msk.bf16.gmra.mrb[108].mxu0 %vm1115_vm1, %v9503_v40  ;;  %7856 = vmatmul.mubr.msk.bf16.gmra.mrb[196].mxu1 %vm1115_vm1, %v3339_v54 }
 0x386   : > { %7727 = vmatprep.mubr.msk.bf16.mxu0 %vm8652_vm0, %v11272_v6  ;;  %7859 = vmatprep.mubr.msk.bf16.mxu1 %vm8652_vm0, %v11272_v6 }
 0x38d   : > { %7728 = vmatmul.mubr.msk.bf16.gmra.mrb[112].mxu0 %vm1115_vm1, %v9537_v7  ;;  %7860 = vmatmul.mubr.msk.bf16.gmra.mrb[200].mxu1 %vm1115_vm1, %v3341_v14  ;;  %v4089_v14 = vrot.slane %v9461_v4, 6 }
 0x38e   : > { %7731 = vmatprep.mubr.msk.bf16.mxu0 %vm8652_vm0, %v11272_v6  ;;  %7863 = vmatprep.mubr.msk.bf16.mxu1 %vm8652_vm0, %v11272_v6 }
 0x395   : > { %7732 = vmatmul.mubr.msk.bf16.gmra.mrb[116].mxu0 %vm1115_vm1, %v9534_v45  ;;  %7864 = vmatmul.mubr.msk.bf16.gmra.mrb[204].mxu1 %vm1115_vm1, %v3343_v28 }
 0x396   : > { %7735 = vmatprep.mubr.msk.bf16.mxu0 %vm8652_vm0, %v11272_v6  ;;  %7867 = vmatprep.mubr.msk.bf16.mxu1 %vm8652_vm0, %v11272_v6 }
 0x39d   : > { %7736 = vmatmul.mubr.msk.bf16.gmra.mrb[120].mxu0 %vm1115_vm1, %v9558_v44  ;;  %7868 = vmatmul.mubr.msk.bf16.gmra.mrb[208].mxu1 %vm1115_vm1, %v3342_v8 }
 0x39e   : > { %7791 = vmatprep.mubr.msk.bf16.mxu0 %vm8652_vm0, %v11272_v6  ;;  %7923 = vmatprep.mubr.msk.bf16.mxu1 %vm8652_vm0, %v11272_v6 }
 0x3a5   : > { %7792 = vmatmul.mubr.msk.bf16.vlgmr.msra.gmra.mrb[124].mxu0 %vm1115_vm1, %v9485_v23  ;;  %7924 = vmatmul.mubr.msk.bf16.vlgmr.msra.gmra.mrb[212].mxu1 %vm1115_vm1, %v9761_v61  ;;  %v9785_v23 = vld [vmem:[%s11262_s5 + $0xe8] sm:$0xff]  }
 0x3a6   : > { %7872 = vmatpush3.bf16.msra.mxu0 %v8336_v32  ;;  %7795 = vmatprep.mubr.msk.bf16.mxu0 %vm8652_vm0, %v11272_v6 }
 0x3a7   : > { %7927 = vmatprep.mubr.msk.bf16.mxu1 %vm8652_vm0, %v11272_v6  ;;  %7873 = vmatprep.subr.bf16.mxu0 %v11272_v6 }
 0x3a8   : > { %8051 = vmatpush3.bf16.msra.mxu1 %v9766_v55 }
 0x3a9   : > { %8048 = vmatprep.subr.bf16.mxu1 %v11272_v6 }
 0x3aa   : > { %7874 = vmatpush3.bf16.msra.mxu0 %v8337_v18  ;;  %v4090_v18 = vsel %vm4087_vm6, %v4088_v30, %v4089_v14 }
 0x3ab   : > { %7875 = vmatprep.subr.bf16.mxu0 %v11272_v6 }
 0x3ac   : > { %8052 = vmatpush3.bf16.msra.mxu1 %v9785_v23 }
 0x3ad   : > { %7796 = vmatmul.mubr.msk.bf16.gmra.mrb[128].mxu0 %vm1115_vm1, %v9524_v49  ;;  %7928 = vmatmul.mubr.msk.bf16.gmra.mrb[216].mxu1 %vm1115_vm1, %v9793_v34  ;;  %v9819_v49 = vld [vmem:[%s11262_s5 + $0xf8] sm:$0xff]  }
 0x3ae   : > { %7799 = vmatprep.mubr.msk.bf16.mxu0 %vm8652_vm0, %v11272_v6  ;;  %7931 = vmatprep.mubr.msk.bf16.mxu1 %vm8652_vm0, %v11272_v6 }
 0x3af   : > { %7876 = vmatpush3.bf16.msra.mxu0 %v8338_v46  ;;  %8049 = vmatprep.subr.bf16.mxu1 %v11272_v6 }
 0x3b0   : > { %7877 = vmatprep.subr.bf16.mxu0 %v11272_v6  ;;  %8053 = vmatpush3.bf16.msra.mxu1 %v9799_v39 }
 0x3b1   : > { %8050 = vmatprep.subr.bf16.mxu1 %v11272_v6 }
 0x3b3   : > { %7878 = vmatpush3.bf16.msra.mxu0 %v8339_v47 }
 0x3b4   : > { %8054 = vmatpush3.bf16.msra.mxu1 %v9819_v49  ;;  %7959 = vmatprep.subr.bf16.mxu0 %v11272_v6 }
 0x3b5   : > { %7800 = vmatmul.mubr.msk.bf16.gmra.mrb[132].mxu0 %vm1115_vm1, %v9547_v33  ;;  %7932 = vmatmul.mubr.msk.bf16.gmra.mrb[220].mxu1 %vm1115_vm1, %v9823_v1  ;;  %v3537_v33 = vrot.slane %v9534_v45, 4 }
 0x3b6   : > { %7803 = vmatprep.mubr.msk.bf16.mxu0 %vm8652_vm0, %v11272_v6  ;;  %7935 = vmatprep.mubr.msk.bf16.mxu1 %vm8652_vm0, %v11272_v6 }
 0x3b7   : > { %8003 = vmatprep.subr.bf16.mxu1 %v11272_v6  ;;  %v9850_v0 = vsel %vm3525_vm5, %v3535_v50, %v3537_v33 }
 0x3bd   : > { %7804 = vmatmul.mubr.msk.bf16.gmra.mrb[136].mxu0 %vm1115_vm1, %v9571_v17  ;;  %7936 = vmatmul.mubr.msk.bf16.gmra.mrb[224].mxu1 %vm1115_vm1, %v9838_v31  ;;  %v3539_v17 = vrot.slane %v9558_v44, 4 }
 0x3be   : > { %7807 = vmatprep.mubr.msk.bf16.mxu0 %vm8652_vm0, %v11272_v6  ;;  %7939 = vmatprep.mubr.msk.bf16.mxu1 %vm8652_vm0, %v11272_v6 }
 0x3bf   : > { %v9862_v15 = vsel %vm3525_vm5, %v3537_v33, %v3539_v17  ;;  %v4092_v33 = vsel %vm4087_vm6, %v4089_v14, %v4091_v42 }
 0x3c5   : > { %7808 = vmatmul.mubr.msk.bf16.gmra.mrb[140].mxu0 %vm1115_vm1, %v9594_v2  ;;  %7940 = vmatmul.mubr.msk.bf16.gmra.mrb[228].mxu1 %vm1115_vm1, %v9850_v0  ;;  %v9873_v2 = vrot.slane %v9556_v5, 4 }
 0x3c6   : > { %7811 = vmatprep.mubr.msk.bf16.mxu0 %vm8652_vm0, %v11272_v6  ;;  %7943 = vmatprep.mubr.msk.bf16.mxu1 %vm8652_vm0, %v11272_v6 }
 0x3c7   : > { %v9877_v16 = vsel %vm3525_vm5, %v3539_v17, %v9873_v2 }
 0x3cd   : > { %7812 = vmatmul.mubr.msk.bf16.gmra.mrb[144].mxu0 %vm1115_vm1, %v9615_v56  ;;  %7944 = vmatmul.mubr.msk.bf16.gmra.mrb[232].mxu1 %vm1115_vm1, %v9862_v15  ;;  %v3725_v56 = vrot.slane %v9588_v38, 4 }
 0x3ce   : > { %7815 = vmatprep.mubr.msk.bf16.mxu0 %vm8652_vm0, %v11272_v6  ;;  %7947 = vmatprep.mubr.msk.bf16.mxu1 %vm8652_vm0, %v11272_v6 }
 0x3cf   : > { %v3726_v43 = vsel %vm3525_vm5, %v9873_v2, %v3725_v56 }
 0x3d5   : > { %7816 = vmatmul.mubr.msk.bf16.gmra.mrb[148].mxu0 %vm1115_vm1, %v9627_v13  ;;  %7948 = vmatmul.mubr.msk.bf16.gmra.mrb[236].mxu1 %vm1115_vm1, %v9877_v16 }
 0x3d6   : > { %7819 = vmatprep.mubr.msk.bf16.mxu0 %vm8652_vm0, %v11272_v6  ;;  %7951 = vmatprep.mubr.msk.bf16.mxu1 %vm8652_vm0, %v11272_v6 }
 0x3dd   : > { %7820 = vmatmul.mubr.msk.bf16.gmra.mrb[152].mxu0 %vm1115_vm1, %v9584_v37  ;;  %7952 = vmatmul.mubr.msk.bf16.gmra.mrb[240].mxu1 %vm1115_vm1, %v3726_v43  ;;  %v4093_v43 = vrot.slane %v9503_v40, 6 }
 0x3de   : > { %7823 = vmatprep.mubr.msk.bf16.mxu0 %vm8652_vm0, %v11272_v6  ;;  %7955 = vmatprep.mubr.msk.bf16.mxu1 %vm8652_vm0, %v11272_v6 }
 0x3e5   : > { %7824 = vmatmul.mubr.msk.bf16.gmra.mrb[156].mxu0 %vm1115_vm1, %v3165_v11  ;;  %7956 = vmatmul.mubr.msk.bf16.gmra.mrb[244].mxu1 %vm1115_vm1, %v3725_v56  ;;  %v8344_v11 = vld [vmem:[%s11262_s5 + $0x100] sm:$0xff]  }
 0x3e6   : > { %7879 = vmatprep.mubr.msk.bf16.mxu0 %vm8652_vm0, %v11272_v6  ;;  %7999 = vmatprep.mubr.msk.bf16.mxu1 %vm8652_vm0, %v11272_v6 }
 0x3e8   : > { %v9905_v37 = vpop.f32.mrb[52].mxu0  ;;  %v9907_v13 = vpop.f32.mrb[140].mxu1 }
 0x3e9   : > { %v7661_v25 = vpop.f32.mrb[53].mxu0  ;;  %v7749_v21 = vpop.f32.mrb[141].mxu1 }
 0x3ea   : > { %v9909_v58 = vpop.f32.mrb[54].mxu0  ;;  %v9911_v19 = vpop.f32.mrb[142].mxu1 }
 0x3eb   : > { %v7662_v20 = vpop.f32.mrb[55].mxu0  ;;  %v7750_v26 = vpop.f32.mrb[143].mxu1 }
 0x3ed   : > { %7880 = vmatmul.mubr.msk.bf16.vlgmr.msra.gmra.mrb[160].mxu0 %vm1115_vm1, %v9501_v52  ;;  %8000 = vmatmul.mubr.msk.bf16.vlgmr.msra.gmra.mrb[248].mxu1 %vm1115_vm1, %v3903_v9 }
 0x3ee   : > { %8004 = vmatpush3.bf16.msra.mxu1 %v8344_v11  ;;  %7960 = vmatpush3.bf16.msra.mxu0 %v9766_v55 }
 0x3ef   : > { %8005 = vmatprep.subr.bf16.mxu1 %v11272_v6  ;;  %7883 = vmatprep.mubr.msk.bf16.mxu0 %vm8652_vm0, %v11272_v6 }
 0x3f0   : > { %v9929_v63 = vpop.f32.mrb[56].mxu0  ;;  %v9931_v22 = vpop.f32.mrb[144].mxu1  ;;  %8011 = vmatprep.mubr.msk.bf16.mxu1 %vm8652_vm0, %v11272_v6  ;;  %7961 = vmatprep.subr.bf16.mxu0 %v11272_v6 }
 0x3f1   : > { %v7665_v52 = vpop.f32.mrb[57].mxu0  ;;  %v7753_v27 = vpop.f32.mrb[145].mxu1 }
 0x3f2   : > { %8006 = vmatpush3.bf16.msra.mxu1 %v8345_v51  ;;  %v9936_v24 = vpop.f32.mrb[58].mxu0  ;;  %v9938_v48 = vpop.f32.mrb[146].mxu1  ;;  %7962 = vmatpush3.bf16.msra.mxu0 %v9785_v23  ;;  %v4094_v51 = vsel %vm4087_vm6, %v4091_v42, %v4093_v43 }
 0x3f3   : > { %v7666_v3 = vpop.f32.mrb[59].mxu0  ;;  %v7754_v12 = vpop.f32.mrb[147].mxu1  ;;  %8007 = vmatprep.subr.bf16.mxu1 %v11272_v6  ;;  %7963 = vmatprep.subr.bf16.mxu0 %v11272_v6 }
 0x3f5   : > { %7884 = vmatmul.mubr.msk.bf16.gmra.mrb[164].mxu0 %vm1115_vm1, %v9761_v61 }
 0x3f6   : > { %8008 = vmatpush3.bf16.msra.mxu1 %v8346_v10  ;;  %7887 = vmatprep.mubr.msk.bf16.mxu0 %vm8652_vm0, %v11272_v6  ;;  %v4095_v10 = vrot.slane %v9537_v7, 6 }
 0x3f7   : > { %8009 = vmatprep.subr.bf16.mxu1 %v11272_v6  ;;  %7964 = vmatpush3.bf16.msra.mxu0 %v9799_v39 }
 0x3f8   : > { %v9955_v29 = vpop.f32.mrb[60].mxu0  ;;  %v9957_v54 = vpop.f32.mrb[148].mxu1  ;;  %7965 = vmatprep.subr.bf16.mxu0 %v11272_v6 }
 0x3f9   : > { %v7669_v8 = vpop.f32.mrb[61].mxu0  ;;  %v7757_v28 = vpop.f32.mrb[149].mxu1 }
 0x3fa   : > { %8010 = vmatpush3.bf16.msra.mxu1 %v8347_v60  ;;  %v9962_v36 = vpop.f32.mrb[62].mxu0  ;;  %v9964_v32 = vpop.f32.mrb[150].mxu1  ;;  %v4096_v8 = vsel %vm4087_vm6, %v4093_v43, %v4095_v10 }
 0x3fb   : > { %v7670_v61 = vpop.f32.mrb[63].mxu0  ;;  %v7758_v55 = vpop.f32.mrb[151].mxu1  ;;  %7966 = vmatpush3.bf16.msra.mxu0 %v9819_v49 }
 0x3fc   : > { %v4097_v55 = vrot.slane %v9534_v45, 6 }
 0x3fd   : > { %8012 = vmatmul.mubr.msk.bf16.vlgmr.msra.gmra.mrb[252].mxu1 %vm1115_vm1, %v4090_v18  ;;  %7888 = vmatmul.mubr.msk.bf16.gmra.mrb[168].mxu0 %vm1115_vm1, %v9793_v34 }
 0x3fe   : > { %8015 = vmatprep.mubr.msk.bf16.mxu1 %vm8652_vm0, %v11272_v6  ;;  %7891 = vmatprep.mubr.msk.bf16.mxu0 %vm8652_vm0, %v11272_v6 }
 0x400   : > { %v9976_v23 = vpop.f32.mrb[64].mxu0  ;;  %v9978_v46 = vpop.f32.mrb[152].mxu1 }
 0x401   : > { %v7673_v39 = vpop.f32.mrb[65].mxu0  ;;  %v7761_v47 = vpop.f32.mrb[153].mxu1 }
 0x402   : > { %v9980_v53 = vpop.f32.mrb[66].mxu0  ;;  %v9982_v49 = vpop.f32.mrb[154].mxu1 }
 0x403   : > { %v7674_v50 = vpop.f32.mrb[67].mxu0  ;;  %v7762_v34 = vpop.f32.mrb[155].mxu1 }
 0x404   : > { %v4098_v34 = vsel %vm4087_vm6, %v4095_v10, %v4097_v55 }
 0x405   : > { %8016 = vmatmul.mubr.msk.bf16.gmra.mrb[0].mxu1 %vm1115_vm1, %v4092_v33  ;;  %7892 = vmatmul.mubr.msk.bf16.gmra.mrb[172].mxu0 %vm1115_vm1, %v9823_v1 }
 0x406   : > { %8019 = vmatprep.mubr.msk.bf16.mxu1 %vm8652_vm0, %v11272_v6  ;;  %7895 = vmatprep.mubr.msk.bf16.mxu0 %vm8652_vm0, %v11272_v6 }
 0x408   : > { %v9992_v17 = vpop.f32.mrb[68].mxu0  ;;  %v9994_v56 = vpop.f32.mrb[156].mxu1 }
 0x409   : > { %v7677_v25 = vpop.f32.mrb[69].mxu0  ;;  %v7765_v21 = vpop.f32.mrb[157].mxu1 }
 0x40a   : > { %v9997_v11 = vpop.f32.mrb[70].mxu0  ;;  %v9999_v20 = vpop.f32.mrb[158].mxu1  ;;  %v4099_v25 = vrot.slane %v9558_v44, 6 }
 0x40b   : > { %v7678_v26 = vpop.f32.mrb[71].mxu0  ;;  %v7766_v1 = vpop.f32.mrb[159].mxu1 }
 0x40d   : > { %8020 = vmatmul.mubr.msk.bf16.gmra.mrb[4].mxu1 %vm1115_vm1, %v4094_v51  ;;  %7896 = vmatmul.mubr.msk.bf16.gmra.mrb[176].mxu0 %vm1115_vm1, %v9838_v31 }
 0x40e   : > { %8023 = vmatprep.mubr.msk.bf16.mxu1 %vm8652_vm0, %v11272_v6  ;;  %7899 = vmatprep.mubr.msk.bf16.mxu0 %vm8652_vm0, %v11272_v6 }
 0x410   : > { %v10009_v52 = vpop.f32.mrb[72].mxu0  ;;  %v10011_v27 = vpop.f32.mrb[160].mxu1 }
 0x411   : > { %v7681_v3 = vpop.f32.mrb[73].mxu0  ;;  %v7769_v12 = vpop.f32.mrb[161].mxu1 }
 0x412   : > { %v10014_v60 = vpop.f32.mrb[74].mxu0  ;;  %v10016_v30 = vpop.f32.mrb[162].mxu1  ;;  %v4100_v3 = vsel %vm4087_vm6, %v4097_v55, %v4099_v25 }
 0x413   : > { %v7682_v14 = vpop.f32.mrb[75].mxu0  ;;  %v7770_v31 = vpop.f32.mrb[163].mxu1 }
 0x415   : > { %8024 = vmatmul.mubr.msk.bf16.gmra.mrb[8].mxu1 %vm1115_vm1, %v4096_v8  ;;  %7900 = vmatmul.mubr.msk.bf16.gmra.mrb[180].mxu0 %vm1115_vm1, %v9850_v0 }
 0x416   : > { %8027 = vmatprep.mubr.msk.bf16.mxu1 %vm8652_vm0, %v11272_v6  ;;  %7903 = vmatprep.mubr.msk.bf16.mxu0 %vm8652_vm0, %v11272_v6 }
 0x418   : > { %v10026_v28 = vpop.f32.mrb[76].mxu0  ;;  %v10028_v61 = vpop.f32.mrb[164].mxu1 }
 0x419   : > { %v7685_v18 = vpop.f32.mrb[77].mxu0  ;;  %v7773_v42 = vpop.f32.mrb[165].mxu1 }
 0x41a   : > { %v10031_v39 = vpop.f32.mrb[78].mxu0  ;;  %v10033_v47 = vpop.f32.mrb[166].mxu1 }
 0x41b   : > { %v7686_v50 = vpop.f32.mrb[79].mxu0  ;;  %v7774_v0 = vpop.f32.mrb[167].mxu1 }
 0x41d   : > { %8028 = vmatmul.mubr.msk.bf16.gmra.mrb[12].mxu1 %vm1115_vm1, %v4098_v34  ;;  %7904 = vmatmul.mubr.msk.bf16.gmra.mrb[184].mxu0 %vm1115_vm1, %v9862_v15 }
 0x41e   : > { %8031 = vmatprep.mubr.msk.bf16.mxu1 %vm8652_vm0, %v11272_v6  ;;  %7907 = vmatprep.mubr.msk.bf16.mxu0 %vm8652_vm0, %v11272_v6 }
 0x420   : > { %v10043_v33 = vpop.f32.mrb[80].mxu0  ;;  %v10045_v43 = vpop.f32.mrb[168].mxu1 }
 0x421   : > { %v7689_v21 = vpop.f32.mrb[81].mxu0  ;;  %v7777_v26 = vpop.f32.mrb[169].mxu1 }
 0x422   : > { %v10048_v1 = vpop.f32.mrb[82].mxu0  ;;  %v10050_v51 = vpop.f32.mrb[170].mxu1  ;;  %v3888_v21 = vrot.slane %v9466_v57, 5  ;;  %v3889_v26 = vrot.slane %v9461_v4, 5 }
 0x423   : > { %v7690_v10 = vpop.f32.mrb[83].mxu0  ;;  %v7778_v15 = vpop.f32.mrb[171].mxu1 }
 0x425   : > { %8032 = vmatmul.mubr.msk.bf16.gmra.mrb[16].mxu1 %vm1115_vm1, %v4100_v3  ;;  %7908 = vmatmul.mubr.msk.bf16.gmra.mrb[188].mxu0 %vm1115_vm1, %v9877_v16  ;;  %v4102_v16 = vsel %vm4087_vm6, %v4099_v25, %v4101_v62 }
 0x426   : > { %8035 = vmatprep.mubr.msk.bf16.mxu1 %vm8652_vm0, %v11272_v6  ;;  %7911 = vmatprep.mubr.msk.bf16.mxu0 %vm8652_vm0, %v11272_v6 }
 0x428   : > { %v10060_v12 = vpop.f32.mrb[84].mxu0  ;;  %v10062_v14 = vpop.f32.mrb[172].mxu1 }
 0x429   : > { %v7693_v31 = vpop.f32.mrb[85].mxu0  ;;  %v7781_v8 = vpop.f32.mrb[173].mxu1 }
 0x42a   : > { %v2799_v18 = vpop.f32.mrb[86].mxu0  ;;  %v3135_v42 = vpop.f32.mrb[174].mxu1 }
 0x42b   : > { %v7694_v55 = vpop.f32.mrb[87].mxu0  ;;  %v7782_v50 = vpop.f32.mrb[175].mxu1  ;;  %v3890_v42 = vsel %vm3887_vm7, %v3888_v21, %v3889_v26 }
 0x42d   : > { %8036 = vmatmul.mubr.msk.bf16.gmra.mrb[20].mxu1 %vm1115_vm1, %v4102_v16  ;;  %7912 = vmatmul.mubr.msk.bf16.gmra.mrb[192].mxu0 %vm1115_vm1, %v9873_v2 }
 0x42e   : > { %8039 = vmatprep.mubr.msk.bf16.mxu1 %vm8652_vm0, %v11272_v6  ;;  %7967 = vmatprep.mubr.msk.bf16.mxu0 %vm8652_vm0, %v11272_v6 }
 0x430   : > { %v2887_v0 = vpop.f32.mrb[88].mxu0  ;;  %v10074_v34 = vpop.f32.mrb[176].mxu1 }
 0x431   : > { %v2888_v62 = vadd.f32 %v2887_v0, %v9905_v37  ;;  %v7705_v25 = vpop.f32.mrb[89].mxu0  ;;  %v7837_v10 = vpop.f32.mrb[177].mxu1 }
 0x432   : > { %v2890_v15 = vpop.f32.mrb[90].mxu0  ;;  %v10079_v2 = vpop.f32.mrb[178].mxu1  ;;  %v3893_v10 = vrot.slane %v9503_v40, 5 }
 0x433   : > { %v2891_v3 = vadd.f32 %v2890_v15, %v9909_v58  ;;  %v7706_v31 = vpop.f32.mrb[91].mxu0  ;;  %v7838_v8 = vpop.f32.mrb[179].mxu1  ;;  %v10083_v18 = vadd.f32 %v9907_v13, %v2888_v62  ;;  %v3891_v13 = vrot.slane %v9509_v35, 5 }
 0x435   : > { %8040 = vmatmul.mubr.msk.bf16.gmra.mrb[24].mxu1 %vm1115_vm1, %v9602_v59  ;;  %7968 = vmatmul.mubr.msk.bf16.vlgmr.msra.gmra.mrb[196].mxu0 %vm1115_vm1, %v3890_v42  ;;  %v10090_v4 = vadd.f32 %v9911_v19, %v2891_v3  ;;  %v3892_v25 = vsel %vm3887_vm7, %v3889_v26, %v3891_v13 }
 0x436   : > { %8043 = vmatprep.mubr.msk.bf16.mxu1 %vm8652_vm0, %v11272_v6  ;;  %7971 = vmatprep.mubr.msk.bf16.mxu0 %vm8652_vm0, %v11272_v6 }
 0x438   : > { %v2895_v57 = vpop.f32.mrb[92].mxu0  ;;  %v10096_v37 = vpop.f32.mrb[180].mxu1 }
 0x439   : > { %v2896_v58 = vadd.f32 %v2895_v57, %v9929_v63  ;;  %v7709_v55 = vpop.f32.mrb[93].mxu0  ;;  %v7841_v59 = vpop.f32.mrb[181].mxu1  ;;  %v3894_v57 = vsel %vm3887_vm7, %v3891_v13, %v3893_v10 }
 0x43a   : > { %v2898_v50 = vpop.f32.mrb[94].mxu0  ;;  %v10100_v16 = vpop.f32.mrb[182].mxu1 }
 0x43b   : > { %v2899_v19 = vadd.f32 %v2898_v50, %v9936_v24  ;;  %v7710_v0 = vpop.f32.mrb[95].mxu0  ;;  %v7842_v21 = vpop.f32.mrb[183].mxu1  ;;  %v10104_v62 = vadd.f32 %v9931_v22, %v2896_v58 }
 0x43d   : > { %8044 = vmatmul.mubr.msk.bf16.gmra.mrb[28].mxu1 %vm1115_vm1, %v9605_v41  ;;  %7972 = vmatmul.mubr.msk.bf16.gmra.mrb[200].mxu0 %vm1115_vm1, %v3892_v25  ;;  %v10111_v35 = vadd.f32 %v9938_v48, %v2899_v19 }
 0x43e   : > { %7975 = vmatprep.mubr.msk.bf16.mxu0 %vm8652_vm0, %v11272_v6 }
 0x440   : > { %v2903_v63 = vpop.f32.mrb[96].mxu0  ;;  %v10115_v24 = vpop.f32.mrb[184].mxu1 }
 0x441   : > { %v2904_v22 = vadd.f32 %v2903_v63, %v9955_v29  ;;  %v7713_v15 = vpop.f32.mrb[97].mxu0  ;;  %v7845_v26 = vpop.f32.mrb[185].mxu1 }
 0x442   : > { %v2906_v3 = vpop.f32.mrb[98].mxu0  ;;  %v10119_v31 = vpop.f32.mrb[186].mxu1 }
 0x443   : > { %v2907_v41 = vadd.f32 %v2906_v3, %v9962_v36  ;;  %v7714_v8 = vpop.f32.mrb[99].mxu0  ;;  %v7846_v48 = vpop.f32.mrb[187].mxu1  ;;  %v10123_v42 = vadd.f32 %v9957_v54, %v2904_v22  ;;  %v3895_v36 = vrot.slane %v9537_v7, 5 }
 0x445   : > { %7976 = vmatmul.mubr.msk.bf16.gmra.mrb[204].mxu0 %vm1115_vm1, %v3894_v57  ;;  %v10128_v40 = vadd.f32 %v9964_v32, %v2907_v41  ;;  %v3896_v25 = vsel %vm3887_vm7, %v3893_v10, %v3895_v36 }
 0x446   : > { %7979 = vmatprep.mubr.msk.bf16.mxu0 %vm8652_vm0, %v11272_v6 }
 0x448   : > { %v2911_v29 = vpop.f32.mrb[100].mxu0  ;;  %v10132_v58 = vpop.f32.mrb[188].mxu1 }
 0x449   : > { %v2912_v55 = vadd.f32 %v2911_v29, %v9976_v23  ;;  %v7717_v59 = vpop.f32.mrb[101].mxu0  ;;  %v7849_v54 = vpop.f32.mrb[189].mxu1 }
 0x44a   : > { %v2914_v50 = vpop.f32.mrb[102].mxu0  ;;  %v10136_v19 = vpop.f32.mrb[190].mxu1 }
 0x44b   : > { %v2915_v13 = vadd.f32 %v2914_v50, %v9980_v53  ;;  %v7718_v0 = vpop.f32.mrb[103].mxu0  ;;  %v7850_v32 = vpop.f32.mrb[191].mxu1  ;;  %v10140_v21 = vadd.f32 %v9978_v46, %v2912_v55  ;;  %v3897_v53 = vrot.slane %v9534_v45, 5 }
 0x44d   : > { %7980 = vmatmul.mubr.msk.bf16.gmra.mrb[208].mxu0 %vm1115_vm1, %v3896_v25  ;;  %v10145_v7 = vadd.f32 %v9982_v49, %v2915_v13  ;;  %v3898_v48 = vsel %vm3887_vm7, %v3895_v36, %v3897_v53 }
 0x44e   : > { %7983 = vmatprep.mubr.msk.bf16.mxu0 %vm8652_vm0, %v11272_v6 }
 0x450   : > { %v2919_v23 = vpop.f32.mrb[104].mxu0  ;;  %v10149_v63 = vpop.f32.mrb[192].mxu1 }
 0x451   : > { %v2920_v22 = vadd.f32 %v2919_v23, %v9992_v17  ;;  %v7721_v15 = vpop.f32.mrb[105].mxu0  ;;  %v7853_v46 = vpop.f32.mrb[193].mxu1 }
 0x452   : > { %v2922_v26 = vpop.f32.mrb[106].mxu0  ;;  %v10153_v3 = vpop.f32.mrb[194].mxu1 }
 0x453   : > { %v2923_v10 = vadd.f32 %v2922_v26, %v9997_v11  ;;  %v7722_v41 = vpop.f32.mrb[107].mxu0  ;;  %v7854_v49 = vpop.f32.mrb[195].mxu1  ;;  %v10157_v8 = vadd.f32 %v9994_v56, %v2920_v22  ;;  %v3899_v11 = vrot.slane %v9558_v44, 5 }
 0x455   : > { %7984 = vmatmul.mubr.msk.bf16.gmra.mrb[212].mxu0 %vm1115_vm1, %v3898_v48  ;;  %v10162_v45 = vadd.f32 %v9999_v20, %v2923_v10  ;;  %v3900_v0 = vsel %vm3887_vm7, %v3897_v53, %v3899_v11 }
 0x456   : > { %7987 = vmatprep.mubr.msk.bf16.mxu0 %vm8652_vm0, %v11272_v6 }
 0x458   : > { %v2927_v17 = vpop.f32.mrb[108].mxu0  ;;  %v10166_v57 = vpop.f32.mrb[196].mxu1 }
 0x459   : > { %v2928_v29 = vadd.f32 %v2927_v17, %v10009_v52  ;;  %v7725_v55 = vpop.f32.mrb[109].mxu0  ;;  %v7857_v56 = vpop.f32.mrb[197].mxu1 }
 0x45a   : > { %v2930_v59 = vpop.f32.mrb[110].mxu0  ;;  %v10170_v54 = vpop.f32.mrb[198].mxu1 }
 0x45b   : > { %v2931_v36 = vadd.f32 %v2930_v59, %v10014_v60  ;;  %v7726_v50 = vpop.f32.mrb[111].mxu0  ;;  %v7858_v20 = vpop.f32.mrb[199].mxu1  ;;  %v10174_v13 = vadd.f32 %v10011_v27, %v2928_v29  ;;  %v3901_v60 = vrot.slane %v9556_v5, 5 }
 0x45d   : > { %7988 = vmatmul.mubr.msk.bf16.gmra.mrb[216].mxu0 %vm1115_vm1, %v3900_v0  ;;  %v10179_v44 = vadd.f32 %v10016_v30, %v2931_v36  ;;  %v3902_v10 = vsel %vm3887_vm7, %v3899_v11, %v3901_v60 }
 0x45e   : > { %7991 = vmatprep.mubr.msk.bf16.mxu0 %vm8652_vm0, %v11272_v6 }
 0x460   : > { %v2935_v52 = vpop.f32.mrb[112].mxu0  ;;  %v10183_v32 = vpop.f32.mrb[200].mxu1 }
 0x461   : > { %v2936_v25 = vadd.f32 %v2935_v52, %v10026_v28  ;;  %v7729_v23 = vpop.f32.mrb[113].mxu0  ;;  %v7861_v27 = vpop.f32.mrb[201].mxu1 }
 0x462   : > { %v2938_v22 = vpop.f32.mrb[114].mxu0  ;;  %v10187_v15 = vpop.f32.mrb[202].mxu1 }
 0x463   : > { %v2939_v53 = vadd.f32 %v2938_v22, %v10031_v39  ;;  %v7730_v46 = vpop.f32.mrb[115].mxu0  ;;  %v7862_v30 = vpop.f32.mrb[203].mxu1  ;;  %v10191_v26 = vadd.f32 %v10028_v61, %v2936_v25 }
 0x465   : > { %7992 = vmatmul.mubr.msk.bf16.gmra.mrb[220].mxu0 %vm1115_vm1, %v3902_v10  ;;  %v10196_v5 = vadd.f32 %v10033_v47, %v2939_v53 }
 0x466   : > { %7995 = vmatprep.mubr.msk.bf16.mxu0 %vm8652_vm0, %v11272_v6  ;;  %v3904_v6 = vsel %vm3887_vm7, %v3901_v60, %v3903_v9 }
 0x468   : > { %v2943_v28 = vpop.f32.mrb[116].mxu0  ;;  %v10200_v41 = vpop.f32.mrb[204].mxu1 }
 0x469   : > { %v2944_v39 = vadd.f32 %v2943_v28, %v10043_v33  ;;  %v7733_v49 = vpop.f32.mrb[117].mxu0  ;;  %v7865_v48 = vpop.f32.mrb[205].mxu1 }
 0x46a   : > { %v2946_v17 = vpop.f32.mrb[118].mxu0  ;;  %v10203_v61 = vpop.f32.mrb[206].mxu1 }
 0x46b   : > { %v2947_v11 = vadd.f32 %v2946_v17, %v10048_v1  ;;  %v7734_v29 = vpop.f32.mrb[119].mxu0  ;;  %v7866_v55 = vpop.f32.mrb[207].mxu1  ;;  %v10207_v47 = vadd.f32 %v10045_v43, %v2944_v39 }
 0x46d   : > { %7996 = vmatmul.mubr.msk.bf16.gmra.mrb[224].mxu0 %vm1115_vm1, %v3904_v6  ;;  %v10214_v33 = vadd.f32 %v10050_v51, %v2947_v11 }
 0x470   : > { %v2951_v56 = vpop.f32.mrb[120].mxu0  ;;  %v10216_v59 = vpop.f32.mrb[208].mxu1 }
 0x471   : > { %v2952_v36 = vadd.f32 %v2951_v56, %v10060_v12  ;;  %v7737_v1 = vpop.f32.mrb[121].mxu0  ;;  %v7869_v50 = vpop.f32.mrb[209].mxu1 }
 0x472   : > { %v2954_v20 = vpop.f32.mrb[122].mxu0  ;;  %v3496_v0 = vpop.f32.mrb[210].mxu1 }
 0x473   : > { %v7738_v43 = vpop.f32.mrb[123].mxu0  ;;  %v7870_v52 = vpop.f32.mrb[211].mxu1  ;;  %v10220_v38 = vadd.f32 %v10062_v14, %v2952_v36 }
 0x478   : > { %v3231_v9 = vpop.f32.mrb[124].mxu0  ;;  %v10222_v60 = vpop.f32.mrb[212].mxu1 }
 0x479   : > { %v3301_v51 = vadd.f32 %v3231_v9, %v10083_v18  ;;  %v7793_v25 = vpop.f32.mrb[125].mxu0  ;;  %v7925_v23 = vpop.f32.mrb[213].mxu1 }
 0x47a   : > { %v3234_v27 = vpop.f32.mrb[126].mxu0  ;;  %v10225_v22 = vpop.f32.mrb[214].mxu1 }
 0x47b   : > { %v3302_v12 = vadd.f32 %v3234_v27, %v10090_v4  ;;  %v7794_v53 = vpop.f32.mrb[127].mxu0  ;;  %v7926_v46 = vpop.f32.mrb[215].mxu1  ;;  %v10229_v30 = vadd.f32 %v10074_v34, %v3301_v51 }
 0x47d   : > { %v10232_v14 = vadd.f32 %v10079_v2, %v3302_v12 }
 0x480   : > { %v3239_v10 = vpop.f32.mrb[128].mxu0  ;;  %v10234_v28 = vpop.f32.mrb[216].mxu1 }
 0x481   : > { %v3303_v18 = vadd.f32 %v3239_v10, %v10104_v62  ;;  %v7797_v39 = vpop.f32.mrb[129].mxu0  ;;  %v7929_v49 = vpop.f32.mrb[217].mxu1 }
 0x482   : > { %v3242_v48 = vpop.f32.mrb[130].mxu0  ;;  %v10237_v17 = vpop.f32.mrb[218].mxu1 }
 0x483   : > { %v3304_v4 = vadd.f32 %v3242_v48, %v10111_v35  ;;  %v7798_v11 = vpop.f32.mrb[131].mxu0  ;;  %v7930_v29 = vpop.f32.mrb[219].mxu1  ;;  %v10241_v34 = vadd.f32 %v10096_v37, %v3303_v18 }
 0x485   : > { %v10244_v2 = vadd.f32 %v10100_v16, %v3304_v4 }
 0x488   : > { %v3247_v55 = vpop.f32.mrb[132].mxu0  ;;  %v10246_v6 = vpop.f32.mrb[220].mxu1 }
 0x489   : > { %v3305_v62 = vadd.f32 %v3247_v55, %v10123_v42  ;;  %v7801_v56 = vpop.f32.mrb[133].mxu0  ;;  %v7933_v36 = vpop.f32.mrb[221].mxu1 }
 0x48a   : > { %v3250_v1 = vpop.f32.mrb[134].mxu0  ;;  %v10249_v50 = vpop.f32.mrb[222].mxu1 }
 0x48b   : > { %v3306_v35 = vadd.f32 %v3250_v1, %v10128_v40  ;;  %v7802_v20 = vpop.f32.mrb[135].mxu0  ;;  %v7934_v0 = vpop.f32.mrb[223].mxu1  ;;  %v10253_v37 = vadd.f32 %v10115_v24, %v3305_v62 }
 0x48d   : > { %v10256_v16 = vadd.f32 %v10119_v31, %v3306_v35 }
 0x490   : > { %v3255_v43 = vpop.f32.mrb[136].mxu0  ;;  %v10258_v52 = vpop.f32.mrb[224].mxu1 }
 0x491   : > { %v3307_v42 = vadd.f32 %v3255_v43, %v10140_v21  ;;  %v7805_v9 = vpop.f32.mrb[137].mxu0  ;;  %v7937_v51 = vpop.f32.mrb[225].mxu1 }
 0x492   : > { %v3258_v25 = vpop.f32.mrb[138].mxu0  ;;  %v10261_v23 = vpop.f32.mrb[226].mxu1 }
 0x493   : > { %v3308_v40 = vadd.f32 %v3258_v25, %v10145_v7  ;;  %v7806_v27 = vpop.f32.mrb[139].mxu0  ;;  %v7938_v12 = vpop.f32.mrb[227].mxu1  ;;  %v10265_v24 = vadd.f32 %v10132_v58, %v3307_v42 }
 0x495   : > { %v10268_v31 = vadd.f32 %v10136_v19, %v3308_v40 }
 0x498   : > { %v3263_v53 = vpop.f32.mrb[140].mxu0  ;;  %v10270_v46 = vpop.f32.mrb[228].mxu1 }
 0x499   : > { %v3309_v21 = vadd.f32 %v3263_v53, %v10157_v8  ;;  %v7809_v10 = vpop.f32.mrb[141].mxu0  ;;  %v7941_v18 = vpop.f32.mrb[229].mxu1 }
 0x49a   : > { %v3266_v39 = vpop.f32.mrb[142].mxu0  ;;  %v10273_v49 = vpop.f32.mrb[230].mxu1 }
 0x49b   : > { %v3310_v7 = vadd.f32 %v3266_v39, %v10162_v45  ;;  %v7810_v48 = vpop.f32.mrb[143].mxu0  ;;  %v7942_v4 = vpop.f32.mrb[231].mxu1  ;;  %v10277_v58 = vadd.f32 %v10149_v63, %v3309_v21 }
 0x49d   : > { %v10280_v19 = vadd.f32 %v10153_v3, %v3310_v7 }
 0x4a0   : > { %v3271_v11 = vpop.f32.mrb[144].mxu0  ;;  %v10282_v29 = vpop.f32.mrb[232].mxu1 }
 0x4a1   : > { %v3311_v8 = vadd.f32 %v3271_v11, %v10174_v13  ;;  %v7813_v55 = vpop.f32.mrb[145].mxu0  ;;  %v7945_v62 = vpop.f32.mrb[233].mxu1 }
 0x4a2   : > { %v3274_v56 = vpop.f32.mrb[146].mxu0  ;;  %v10285_v36 = vpop.f32.mrb[234].mxu1 }
 0x4a3   : > { %v3312_v45 = vadd.f32 %v3274_v56, %v10179_v44  ;;  %v7814_v1 = vpop.f32.mrb[147].mxu0  ;;  %v7946_v35 = vpop.f32.mrb[235].mxu1  ;;  %v10289_v63 = vadd.f32 %v10166_v57, %v3311_v8 }
 0x4a5   : > { %v10292_v3 = vadd.f32 %v10170_v54, %v3312_v45 }
 0x4a8   : > { %v3279_v20 = vpop.f32.mrb[148].mxu0  ;;  %v10294_v0 = vpop.f32.mrb[236].mxu1 }
 0x4a9   : > { %v3313_v13 = vadd.f32 %v3279_v20, %v10191_v26  ;;  %v7817_v43 = vpop.f32.mrb[149].mxu0  ;;  %v7949_v42 = vpop.f32.mrb[237].mxu1 }
 0x4aa   : > { %v3282_v9 = vpop.f32.mrb[150].mxu0  ;;  %v10297_v51 = vpop.f32.mrb[238].mxu1 }
 0x4ab   : > { %v3314_v44 = vadd.f32 %v3282_v9, %v10196_v5  ;;  %v7818_v25 = vpop.f32.mrb[151].mxu0  ;;  %v7950_v40 = vpop.f32.mrb[239].mxu1  ;;  %v10301_v57 = vadd.f32 %v10183_v32, %v3313_v13 }
 0x4ad   : > { %v10304_v54 = vadd.f32 %v10187_v15, %v3314_v44 }
 0x4b0   : > { %v3287_v27 = vpop.f32.mrb[152].mxu0  ;;  %v10306_v12 = vpop.f32.mrb[240].mxu1 }
 0x4b1   : > { %v3315_v26 = vadd.f32 %v3287_v27, %v10207_v47  ;;  %v7821_v53 = vpop.f32.mrb[153].mxu0  ;;  %v7953_v21 = vpop.f32.mrb[241].mxu1 }
 0x4b2   : > { %v3290_v10 = vpop.f32.mrb[154].mxu0  ;;  %v10309_v18 = vpop.f32.mrb[242].mxu1 }
 0x4b3   : > { %v3316_v5 = vadd.f32 %v3290_v10, %v10214_v33  ;;  %v7822_v39 = vpop.f32.mrb[155].mxu0  ;;  %v7954_v7 = vpop.f32.mrb[243].mxu1  ;;  %v10313_v32 = vadd.f32 %v10200_v41, %v3315_v26 }
 0x4b5   : > { %v10316_v15 = vadd.f32 %v10203_v61, %v3316_v5 }
 0x4b8   : > { %v3295_v48 = vpop.f32.mrb[156].mxu0  ;;  %v10318_v4 = vpop.f32.mrb[244].mxu1 }
 0x4b9   : > { %v3317_v47 = vadd.f32 %v3295_v48, %v10220_v38  ;;  %v7825_v11 = vpop.f32.mrb[157].mxu0  ;;  %v7957_v8 = vpop.f32.mrb[245].mxu1 }
 0x4ba   : > { %v3298_v55 = vpop.f32.mrb[158].mxu0  ;;  %v3858_v62 = vpop.f32.mrb[246].mxu1 }
 0x4bb   : > { %v7826_v56 = vpop.f32.mrb[159].mxu0  ;;  %v7958_v45 = vpop.f32.mrb[247].mxu1  ;;  %v10322_v33 = vadd.f32 %v10216_v59, %v3317_v47 }
 0x4c0   : > { %v3628_v1 = vpop.f32.mrb[160].mxu0  ;;  %v10324_v41 = vpop.f32.mrb[248].mxu1 }
 0x4c1   : > { %v3698_v61 = vadd.f32 %v3628_v1, %v10229_v30  ;;  %v7881_v35 = vpop.f32.mrb[161].mxu0  ;;  %v8001_v20 = vpop.f32.mrb[249].mxu1 }
 0x4c2   : > { %v3631_v13 = vpop.f32.mrb[162].mxu0  ;;  %v4057_v43 = vpop.f32.mrb[250].mxu1  ;;  %v8348_v35 = vld [vmem:[%s11264_s7] ss:$8 sps:$4 sm:$0xff]   ;;  %v8359_v20 = vld [vmem:[%s11264_s7 + $0x114] ss:$8 sps:$4 sm:$0xff]  }
 0x4c3   : > { %v3699_v38 = vadd.f32 %v3631_v13, %v10232_v14  ;;  %v7882_v42 = vpop.f32.mrb[163].mxu0  ;;  %v8002_v9 = vpop.f32.mrb[251].mxu1  ;;  %v10329_v44 = vadd.f32 %v10222_v60, %v3698_v61 }
 0x4c5   : > { %v10332_v25 = vadd.f32 %v10225_v22, %v3699_v38  ;;  %v8354_v38 = vld [vmem:[%s11264_s7 + $0x10] ss:$8 sps:$4 sm:$0xff]  }
 0x4c8   : > { %v3636_v59 = vpop.f32.mrb[164].mxu0 }
 0x4c9   : > { %v3700_v40 = vadd.f32 %v3636_v59, %v10241_v34  ;;  %v7885_v27 = vpop.f32.mrb[165].mxu0 }
 0x4ca   : > { %v3639_v26 = vpop.f32.mrb[166].mxu0  ;;  %v8362_v27 = vld [vmem:[%s11264_s7 + $0x24] ss:$8 sps:$4 sm:$0xff]  }
 0x4cb   : > { %v3701_v30 = vadd.f32 %v3639_v26, %v10244_v2  ;;  %v7886_v53 = vpop.f32.mrb[167].mxu0  ;;  %v10337_v21 = vadd.f32 %v10234_v28, %v3700_v40  ;;  %v8357_v40 = vld [vmem:[%s11264_s7 + $0x110] ss:$8 sps:$4 sm:$0xff]  }
 0x4cd   : > { %v10340_v14 = vadd.f32 %v10237_v17, %v3701_v30 }
 0x4d0   : > { %v10342_v10 = vpop.f32.mrb[252].mxu1  ;;  %v3644_v60 = vpop.f32.mrb[168].mxu0 }
 0x4d1   : > { %v3702_v22 = vadd.f32 %v3644_v60, %v10253_v37  ;;  %v8013_v5 = vpop.f32.mrb[253].mxu1  ;;  %v7889_v39 = vpop.f32.mrb[169].mxu0 }
 0x4d2   : > { %v10345_v7 = vpop.f32.mrb[254].mxu1  ;;  %v3647_v34 = vpop.f32.mrb[170].mxu0  ;;  %v8360_v39 = vld [vmem:[%s11264_s7 + $0x20] ss:$8 sps:$4 sm:$0xff]  }
 0x4d3   : > { %v3703_v48 = vadd.f32 %v3647_v34, %v10256_v16  ;;  %v8014_v2 = vpop.f32.mrb[255].mxu1  ;;  %v7890_v47 = vpop.f32.mrb[171].mxu0  ;;  %v10349_v28 = vadd.f32 %v10246_v6, %v3702_v22 }
 0x4d5   : > { %v10352_v17 = vadd.f32 %v10249_v50, %v3703_v48  ;;  %v8363_v48 = vld [vmem:[%s11264_s7 + $0x120] ss:$8 sps:$4 sm:$0xff]  }
 0x4d8   : > { %v10354_v11 = vpop.f32.mrb[0].mxu1  ;;  %v3652_v8 = vpop.f32.mrb[172].mxu0 }
 0x4d9   : > { %v3704_v37 = vadd.f32 %v3652_v8, %v10265_v24  ;;  %v8017_v55 = vpop.f32.mrb[1].mxu1  ;;  %v7893_v62 = vpop.f32.mrb[173].mxu0  ;;  %v8350_v24 = vld [vmem:[%s11264_s7 + $0x4] ss:$8 sps:$4 sm:$0xff]  }
 0x4da   : > { %v10357_v56 = vpop.f32.mrb[2].mxu1  ;;  %v3655_v45 = vpop.f32.mrb[174].mxu0  ;;  %6022 = vmatprep.subr.bf16.mxu1 %v8350_v24  ;;  %v8369_v62 = vld [vmem:[%s11264_s7 + $0x130] ss:$8 sps:$4 sm:$0xff]  }
 0x4db   : > { %v3705_v16 = vadd.f32 %v3655_v45, %v10268_v31  ;;  %v8018_v1 = vpop.f32.mrb[3].mxu1  ;;  %v7894_v61 = vpop.f32.mrb[175].mxu0  ;;  %v10361_v6 = vadd.f32 %v10258_v52, %v3704_v37  ;;  %v8351_v31 = vld [vmem:[%s11264_s7 + $0x100] ss:$8 sps:$4 sm:$0xff]   ;;  %v8353_v52 = vld [vmem:[%s11264_s7 + $0x104] ss:$8 sps:$4 sm:$0xff]   ;;  %6023 = vmatpush1.bf16.msra.mxu1 %v8348_v35 }
 0x4dc   : > { %6063 = vmatprep.subr.bf16.mxu0 %v8353_v52  ;;  %v8374_v45 = vld [vmem:[%s11264_s7 + $0x44] ss:$8 sps:$4 sm:$0xff]   ;;  %v8372_v52 = vld [vmem:[%s11264_s7 + $0x40] ss:$8 sps:$4 sm:$0xff]  }
 0x4dd   : > { %v10364_v50 = vadd.f32 %v10261_v23, %v3705_v16  ;;  %v8356_v23 = vld [vmem:[%s11264_s7 + $0x14] ss:$8 sps:$4 sm:$0xff]   ;;  %6064 = vmatpush1.bf16.msra.mxu0 %v8351_v31 }
 0x4de   : > { %6024 = vmatprep.subr.bf16.mxu1 %v8356_v23  ;;  %6065 = vmatprep.subr.bf16.mxu0 %v8359_v20  ;;  %v8375_v20 = vld [vmem:[%s11264_s7 + $0x140] ss:$8 sps:$4 sm:$0xff]  }
 0x4df   : > { %6025 = vmatpush1.bf16.msra.mxu1 %v8354_v38 }
 0x4e0   : > { %v10384_v13 = vpop.f32.mrb[4].mxu1  ;;  %v3660_v43 = vpop.f32.mrb[176].mxu0  ;;  %6026 = vmatprep.subr.bf16.mxu1 %v8362_v27  ;;  %v8386_v27 = vld [vmem:[%s11264_s7 + $0x64] ss:$8 sps:$4 sm:$0xff]  }
 0x4e1   : > { %v3706_v42 = vadd.f32 %v3660_v43, %v10277_v58  ;;  %v8021_v9 = vpop.f32.mrb[5].mxu1  ;;  %v7897_v59 = vpop.f32.mrb[177].mxu0  ;;  %v8365_v58 = vld [vmem:[%s11264_s7 + $0x124] ss:$8 sps:$4 sm:$0xff]   ;;  %6066 = vmatpush1.bf16.msra.mxu0 %v8357_v40  ;;  %v8381_v40 = vld [vmem:[%s11264_s7 + $0x150] ss:$8 sps:$4 sm:$0xff]  }
 0x4e2   : > { %v10396_v26 = vpop.f32.mrb[6].mxu1  ;;  %v3663_v30 = vpop.f32.mrb[178].mxu0  ;;  %6067 = vmatprep.subr.bf16.mxu0 %v8365_v58 }
 0x4e3   : > { %v3707_v53 = vadd.f32 %v3663_v30, %v10280_v19  ;;  %v8022_v60 = vpop.f32.mrb[7].mxu1  ;;  %v7898_v22 = vpop.f32.mrb[179].mxu0  ;;  %v10403_v5 = vadd.f32 %v10270_v46, %v3706_v42  ;;  %v8368_v19 = vld [vmem:[%s11264_s7 + $0x34] ss:$8 sps:$4 sm:$0xff]   ;;  %6027 = vmatpush1.bf16.msra.mxu1 %v8360_v39  ;;  %v8384_v39 = vld [vmem:[%s11264_s7 + $0x60] ss:$8 sps:$4 sm:$0xff]  }
 0x4e4   : > { %v8371_v46 = vld [vmem:[%s11264_s7 + $0x134] ss:$8 sps:$4 sm:$0xff]   ;;  %6028 = vmatprep.subr.bf16.mxu1 %v8368_v19 }
 0x4e5   : > { %v10409_v34 = vadd.f32 %v10273_v49, %v3707_v53  ;;  %v8366_v49 = vld [vmem:[%s11264_s7 + $0x30] ss:$8 sps:$4 sm:$0xff]   ;;  %6068 = vmatpush1.bf16.msra.mxu0 %v8363_v48 }
 0x4e6   : > { %6069 = vmatprep.subr.bf16.mxu0 %v8371_v46 }
 0x4e7   : > { %6029 = vmatpush1.bf16.msra.mxu1 %v8366_v49 }
 0x4e8   : > { %v10420_v2 = vpop.f32.mrb[8].mxu1  ;;  %v3668_v47 = vpop.f32.mrb[180].mxu0  ;;  %6030 = vmatprep.subr.bf16.mxu1 %v8374_v45 }
 0x4e9   : > { %v3708_v8 = vadd.f32 %v3668_v47, %v10289_v63  ;;  %v8025_v37 = vpop.f32.mrb[9].mxu1  ;;  %v7901_v55 = vpop.f32.mrb[181].mxu0  ;;  %v8377_v63 = vld [vmem:[%s11264_s7 + $0x144] ss:$8 sps:$4 sm:$0xff]   ;;  %6070 = vmatpush1.bf16.msra.mxu0 %v8369_v62 }
 0x4ea   : > { %v10432_v16 = vpop.f32.mrb[10].mxu1  ;;  %v3671_v1 = vpop.f32.mrb[182].mxu0  ;;  %6071 = vmatprep.subr.bf16.mxu0 %v8377_v63 }
 0x4eb   : > { %v3709_v61 = vadd.f32 %v3671_v1, %v10292_v3  ;;  %v8026_v35 = vpop.f32.mrb[11].mxu1  ;;  %v7902_v24 = vpop.f32.mrb[183].mxu0  ;;  %v10439_v31 = vadd.f32 %v10282_v29, %v3708_v8  ;;  %v8380_v3 = vld [vmem:[%s11264_s7 + $0x54] ss:$8 sps:$4 sm:$0xff]   ;;  %6031 = vmatpush1.bf16.msra.mxu1 %v8372_v52 }
 0x4ec   : > { %v8383_v29 = vld [vmem:[%s11264_s7 + $0x154] ss:$8 sps:$4 sm:$0xff]   ;;  %6032 = vmatprep.subr.bf16.mxu1 %v8380_v3 }
 0x4ed   : > { %v10445_v23 = vadd.f32 %v10285_v36, %v3709_v61  ;;  %v8378_v36 = vld [vmem:[%s11264_s7 + $0x50] ss:$8 sps:$4 sm:$0xff]   ;;  %6072 = vmatpush1.bf16.msra.mxu0 %v8375_v20 }
 0x4ee   : > { %6073 = vmatprep.subr.bf16.mxu0 %v8383_v29  ;;  %v8653_v29 = vmov 1983009808  }
 0x4ef   : > { %6033 = vmatpush1.bf16.msra.mxu1 %v8378_v36 }
 0x4f0   : > { %v10456_v43 = vpop.f32.mrb[12].mxu1  ;;  %v3676_v38 = vpop.f32.mrb[184].mxu0  ;;  %6034 = vmatprep.subr.bf16.mxu1 %v8386_v27 }
 0x4f1   : > { %v3710_v42 = vadd.f32 %v3676_v38, %v10301_v57  ;;  %v8029_v9 = vpop.f32.mrb[13].mxu1  ;;  %v7905_v59 = vpop.f32.mrb[185].mxu0  ;;  %6074 = vmatpush1.bf16.msra.mxu0 %v8381_v40  ;;  %v4324_v38 = vunpack.c.l.s4 %v8653_v29 }
 0x4f2   : > { %v10468_v30 = vpop.f32.mrb[14].mxu1  ;;  %v3679_v58 = vpop.f32.mrb[186].mxu0  ;;  %v8389_v9 = vld [vmem:[%s11264_s7 + $0x164] ss:$8 sps:$4 sm:$0xff]  }
 0x4f3   : > { %v3711_v53 = vadd.f32 %v3679_v58, %v10304_v54  ;;  %v8030_v60 = vpop.f32.mrb[15].mxu1  ;;  %v7906_v57 = vpop.f32.mrb[187].mxu0  ;;  %v10472_v22 = vadd.f32 %v10294_v0, %v3710_v42  ;;  %6035 = vmatpush1.bf16.msra.mxu1 %v8384_v39  ;;  %v4325_v27 = vunpack.c.0.s8 %v4324_v38  ;;  %6075 = vmatprep.subr.bf16.mxu0 %v8389_v9  ;;  %v8399_v38 = vld [vmem:[%s11264_s7 + $0x180] ss:$8 sps:$4 sm:$0xff]  }
 0x4f4   : > { %v8390_v57 = vld [vmem:[%s11264_s7 + $0x70] ss:$8 sps:$4 sm:$0xff]  }
 0x4f5   : > { %v10478_v48 = vadd.f32 %v10297_v51, %v3711_v53 }
 0x4f8   : > { %v10480_v19 = vpop.f32.mrb[16].mxu1  ;;  %v3684_v46 = vpop.f32.mrb[188].mxu0 }
 0x4f9   : > { %v3712_v54 = vadd.f32 %v3684_v46, %v10313_v32  ;;  %v8033_v47 = vpop.f32.mrb[17].mxu1  ;;  %v7909_v49 = vpop.f32.mrb[189].mxu0 }
 0x4fa   : > { %v10483_v0 = vpop.f32.mrb[18].mxu1  ;;  %v3687_v8 = vpop.f32.mrb[190].mxu0  ;;  %v8393_v49 = vld [vmem:[%s11264_s7 + $0x170] ss:$8 sps:$4 sm:$0xff]  }
 0x4fb   : > { %v3713_v37 = vadd.f32 %v3687_v8, %v10316_v15  ;;  %v8034_v55 = vpop.f32.mrb[19].mxu1  ;;  %v7910_v62 = vpop.f32.mrb[191].mxu0  ;;  %v10487_v51 = vadd.f32 %v10306_v12, %v3712_v54  ;;  %v8395_v8 = vld [vmem:[%s11264_s7 + $0x174] ss:$8 sps:$4 sm:$0xff]  }
 0x4fc   : > { %v8398_v62 = vld [vmem:[%s11264_s7 + $0x84] ss:$8 sps:$4 sm:$0xff]  }
 0x4fd   : > { %v10490_v45 = vadd.f32 %v10309_v18, %v3713_v37  ;;  %v4326_v18 = vlaneseq }
 0x4ff   : > { %v10513_v58 = vshrl.u32 %v4326_v18, 7 }
 0x500   : > { %v10492_v1 = vpop.f32.mrb[20].mxu1  ;;  %v3692_v63 = vpop.f32.mrb[192].mxu0 }
 0x501   : > { %v3714_v32 = vadd.f32 %v3692_v63, %v10322_v33  ;;  %v8037_v61 = vpop.f32.mrb[21].mxu1  ;;  %v7913_v35 = vpop.f32.mrb[193].mxu0  ;;  %v8387_v33 = vld [vmem:[%s11264_s7 + $0x160] ss:$8 sps:$4 sm:$0xff]  }
 0x502   : > { %v10495_v24 = vpop.f32.mrb[22].mxu1  ;;  %v3695_v52 = vpop.f32.mrb[194].mxu0  ;;  %6076 = vmatpush1.bf16.msra.mxu0 %v8387_v33 }
 0x503   : > { %v3877_v15 = vadd.f32 %v10318_v4, %v3714_v32  ;;  %v8038_v20 = vpop.f32.mrb[23].mxu1  ;;  %v7914_v3 = vpop.f32.mrb[195].mxu0  ;;  %6077 = vmatprep.subr.bf16.mxu0 %v8395_v8 }
 0x505   : > { %v4076_v12 = vadd.f32 %v10324_v41, %v3877_v15  ;;  %v10511_v41 = vld [vmem:[%s11263_s6] ss:$0 sm:$0xff] }
 0x506   : > { %6078 = vmatpush1.bf16.msra.mxu0 %v8393_v49 }
 0x508   : > { %v10499_v36 = vpop.f32.mrb[24].mxu1  ;;  %v3990_v42 = vpop.f32.mrb[196].mxu0 }
 0x509   : > { %v4060_v4 = vadd.f32 %v3990_v42, %v10329_v44  ;;  %v8041_v59 = vpop.f32.mrb[25].mxu1  ;;  %v7969_v40 = vpop.f32.mrb[197].mxu0  ;;  %v8392_v44 = vld [vmem:[%s11264_s7 + $0x74] ss:$8 sps:$4 sm:$0xff]  }
 0x50a   : > { %v10515_v53 = vpop.f32.mrb[26].mxu1  ;;  %v3993_v60 = vpop.f32.mrb[198].mxu0  ;;  %6036 = vmatprep.subr.bf16.mxu1 %v8392_v44 }
 0x50b   : > { %v4262_v39 = vadd.f32 %v10342_v10, %v4060_v4  ;;  %v4061_v46 = vadd.f32 %v3993_v60, %v10332_v25  ;;  %v8042_v54 = vpop.f32.mrb[27].mxu1  ;;  %v7970_v47 = vpop.f32.mrb[199].mxu0  ;;  %v10534_v10 = vsub.s32 %v4325_v27, %v10513_v58  ;;  %6037 = vmatpush1.bf16.msra.mxu1 %v8390_v57  ;;  %v8396_v25 = vld [vmem:[%s11264_s7 + $0x80] ss:$8 sps:$4 sm:$0xff]   ;;  %v8402_v60 = vld [vmem:[%s11264_s7 + $0x90] ss:$8 sps:$4 sm:$0xff]  }
 0x50c   : > { %6038 = vmatprep.subr.bf16.mxu1 %v8398_v62  ;;  %v8404_v57 = vld [vmem:[%s11264_s7 + $0x94] ss:$8 sps:$4 sm:$0xff]   ;;  %v8405_v54 = vld [vmem:[%s11264_s7 + $0x190] ss:$8 sps:$4 sm:$0xff]   ;;  %v8410_v47 = vld [vmem:[%s11264_s7 + $0xa4] ss:$8 sps:$4 sm:$0xff]  }
 0x50d   : > { %v4286_v37 = vadd.f32 %v10511_v41, %v4262_v39  ;;  %v4263_v55 = vadd.f32 %v10345_v7, %v4061_v46  ;;  %v8407_v39 = vld [vmem:[%s11264_s7 + $0x194] ss:$8 sps:$4 sm:$0xff]   ;;  %v8408_v62 = vld [vmem:[%s11264_s7 + $0xa0] ss:$8 sps:$4 sm:$0xff]  }
 0x50f   : > { %v4303_v63 = vmax.f32 %v4286_v37, 0.0  ;;  %v4287_v32 = vadd.f32 %v10511_v41, %v4263_v55  ;;  %6039 = vmatpush1.bf16.msra.mxu1 %v8396_v25 }
 0x510   : > { %v4256_v7 = vpop.f32.mrb[28].mxu1  ;;  %v3998_v61 = vpop.f32.mrb[200].mxu0  ;;  %6040 = vmatprep.subr.bf16.mxu1 %v8404_v57 }
 0x511   : > { %v4304_v35 = vmax.f32 %v4287_v32, 0.0  ;;  %v4278_v52 = vadd.f32 %v4256_v7, %v4076_v12  ;;  %4321 = vst.msk [vmem:[#allocation2] sm:$0x3] %vm4320_vm8, %v4303_v63  ;;  %v4062_v15 = vadd.f32 %v3998_v61, %v10337_v21  ;;  %v8045_v20 = vpop.f32.mrb[29].mxu1  ;;  %v7973_v3 = vpop.f32.mrb[201].mxu0  ;;  %v4329_v29 = vrot.slane %v4303_v63, %v10534_v10 }
 0x512   : > { %v4259_v18 = vpop.f32.mrb[30].mxu1  ;;  %v4001_v42 = vpop.f32.mrb[202].mxu0  ;;  %v4336_v33 = vcombine.high %v4303_v63, %v4303_v63  ;;  %v8401_v12 = vld [vmem:[%s11264_s7 + $0x184] ss:$8 sps:$4 sm:$0xff]   ;;  %v8416_v20 = vld [vmem:[%s11264_s7 + $0xb4] ss:$8 sps:$4 sm:$0xff]  }
 0x513   : > { %v4302_v9 = vadd.f32 %v10511_v41, %v4278_v52  ;;  %4355 = vst.msk [vmem:[#allocation2 + $0x2] sm:$0x3] %vm4320_vm8, %v4304_v35  ;;  %v4264_v21 = vadd.f32 %v10354_v11, %v4062_v15  ;;  %v4063_v4 = vadd.f32 %v4001_v42, %v10340_v14  ;;  %v8046_v59 = vpop.f32.mrb[31].mxu1  ;;  %v7974_v40 = vpop.f32.mrb[203].mxu0  ;;  %v4330_v27 = vcombine.high %v4329_v29, %v4329_v29  ;;  %v8413_v32 = vld [vmem:[%s11264_s7 + $0x1a4] ss:$8 sps:$4 sm:$0xff]  }
 0x514   : > { %v4369_v44 = vcombine.high %v4304_v35, %v4304_v35  ;;  %6079 = vmatprep.subr.bf16.mxu0 %v8401_v12  ;;  %v4363_v8 = vrot.slane %v4304_v35, %v10534_v10  ;;  %v4343_v25 = vrot.slane %v4336_v33, %v10534_v10  ;;  %6041 = vmatpush1.bf16.msra.mxu1 %v8402_v60  ;;  %v8422_v59 = vld [vmem:[%s11264_s7 + $0xc4] ss:$8 sps:$4 sm:$0xff]   ;;  %v8417_v60 = vld [vmem:[%s11264_s7 + $0x1b0] ss:$8 sps:$4 sm:$0xff]  }
 0x515   : > { %v10565_v11 = vmax.f32 %v4302_v9, 0.0  ;;  %v4288_v14 = vadd.f32 %v10511_v41, %v4264_v21  ;;  %v4265_v46 = vadd.f32 %v10357_v56, %v4063_v4  ;;  %4331 = vrot.lane.b32.xlu0 %v4330_v27, %s8654_s16  ;;  %6080 = vmatpush1.bf16.msra.mxu0 %v8399_v38  ;;  %v8411_v38 = vld [vmem:[%s11264_s7 + $0x1a0] ss:$8 sps:$4 sm:$0xff]   ;;  %v8414_v9 = vld [vmem:[%s11264_s7 + $0xb0] ss:$8 sps:$4 sm:$0xff]  }
 0x516   : > { %v4376_v49 = vrot.slane %v4369_v44, %v10534_v10  ;;  %6081 = vmatprep.subr.bf16.mxu0 %v8407_v39  ;;  %6042 = vmatprep.subr.bf16.mxu1 %v8410_v47  ;;  %v4364_v29 = vcombine.high %v4363_v8, %v4363_v8  ;;  %v8419_v4 = vld [vmem:[%s11264_s7 + $0x1b4] ss:$8 sps:$4 sm:$0xff]   ;;  %v8420_v39 = vld [vmem:[%s11264_s7 + $0xc0] ss:$8 sps:$4 sm:$0xff]  }
 0x517   : > { %v4728_v56 = vcombine.high %v10565_v11, %v10565_v11  ;;  %v4305_v37 = vmax.f32 %v4288_v14, 0.0  ;;  %v4289_v55 = vadd.f32 %v10511_v41, %v4265_v46 }
 0x518   : > { %4377 = vrot.lane.b32.xlu1 %v4376_v49, %s8655_s25  ;;  %v4006_v63 = vpop.f32.mrb[204].mxu0  ;;  %6043 = vmatpush1.bf16.msra.mxu1 %v8408_v62 }
 0x519   : > { %v4735_v7 = vrot.slane %v4728_v56, %v10534_v10  ;;  %v4382_v61 = vcombine.high %v4305_v37, %v4305_v37  ;;  %v4306_v35 = vmax.f32 %v4289_v55, 0.0  ;;  %v4064_v52 = vadd.f32 %v4006_v63, %v10349_v28  ;;  %v7977_v15 = vpop.f32.mrb[205].mxu0  ;;  %4344 = vrot.lane.b32.xlu0 %v4343_v25, %s8655_s25  ;;  %6082 = vmatpush1.bf16.msra.mxu0 %v8405_v54  ;;  %v8425_v54 = vld [vmem:[%s11264_s7 + $0x1c4] ss:$8 sps:$4 sm:$0xff]   ;;  %v8428_v56 = vld [vmem:[%s11264_s7 + $0xd4] ss:$8 sps:$4 sm:$0xff]  }
 0x51a   : > { %v4009_v3 = vpop.f32.mrb[206].mxu0  ;;  %6083 = vmatprep.subr.bf16.mxu0 %v8413_v32  ;;  %6044 = vmatprep.subr.bf16.mxu1 %v8416_v20  ;;  %v8434_v15 = vld [vmem:[%s11264_s7 + $0xe4] ss:$8 sps:$4 sm:$0xff]  }
 0x51b   : > { %4737 = vst.msk [vmem:[#allocation2 + $0x18] sm:$0x3] %vm4320_vm8, %v4735_v7  ;;  %v4266_v18 = vadd.f32 %v10384_v13, %v4064_v52  ;;  %v4065_v28 = vadd.f32 %v4009_v3, %v10352_v17  ;;  %v7978_v42 = vpop.f32.mrb[207].mxu0  ;;  %v4404_v33 = vrot.slane %v4306_v35, %v10534_v10  ;;  %v4389_v12 = vrot.slane %v4382_v61, %v10534_v10  ;;  %v8426_v61 = vld [vmem:[%s11264_s7 + $0xd0] ss:$8 sps:$4 sm:$0xff]  }
 0x51c   : > { %v4414_v21 = vcombine.high %v4306_v35, %v4306_v35  ;;  %6045 = vmatpush1.bf16.msra.mxu1 %v8414_v9  ;;  %v8431_v35 = vld [vmem:[%s11264_s7 + $0x1d4] ss:$8 sps:$4 sm:$0xff]   ;;  %v8429_v3 = vld [vmem:[%s11264_s7 + $0x1d0] ss:$8 sps:$4 sm:$0xff]  }
 0x51d   : > { %v4290_v13 = vadd.f32 %v10511_v41, %v4266_v18  ;;  %v4267_v17 = vadd.f32 %v10396_v26, %v4065_v28  ;;  %4365 = vrot.lane.b32.xlu0 %v4364_v29, %s8654_s16  ;;  %4405 = vrot.lane.b32.xlu1 %v4404_v33, %s8654_s16  ;;  %v4394_v27 = vcombine.high %v4389_v12, %v4389_v12  ;;  %v8437_v28 = vld [vmem:[%s11264_s7 + $0x1e4] ss:$8 sps:$4 sm:$0xff]  }
 0x51e   : > { %v4421_v40 = vrot.slane %v4414_v21, %v10534_v10  ;;  %6084 = vmatpush1.bf16.msra.mxu0 %v8411_v38  ;;  %v4349_v26 = vcombine.high %v4343_v25, %v4343_v25  ;;  %6046 = vmatprep.subr.bf16.mxu1 %v8422_v59  ;;  %v4409_v55 = vcombine.high %v4404_v33, %v4404_v33  ;;  %v8423_v25 = vld [vmem:[%s11264_s7 + $0x1c0] ss:$8 sps:$4 sm:$0xff]   ;;  %v8440_v21 = vld [vmem:[%s11264_s7 + $0xf4] ss:$8 sps:$4 sm:$0xff]  }
 0x51f   : > { %v4307_v57 = vmax.f32 %v4290_v13, 0.0  ;;  %v4291_v44 = vadd.f32 %v10511_v41, %v4267_v17  ;;  %6085 = vmatprep.subr.bf16.mxu0 %v8419_v4  ;;  %4396 = vst.msk [vmem:[#allocation2 + $0x4] sm:$0x3] %vm4320_vm8, %v4394_v27  ;;  %v8432_v38 = vld [vmem:[%s11264_s7 + $0xe0] ss:$8 sps:$4 sm:$0xff]  }
 0x520   : > { %v4014_v14 = vpop.f32.mrb[208].mxu0  ;;  %v4426_v46 = vcombine.high %v4421_v40, %v4421_v40  ;;  %6047 = vmatpush1.bf16.msra.mxu1 %v8420_v39  ;;  %v8435_v17 = vld [vmem:[%s11264_s7 + $0x1e0] ss:$8 sps:$4 sm:$0xff]  }
 0x521   : > { %v4308_v47 = vmax.f32 %v4291_v44, 0.0  ;;  %v4066_v49 = vadd.f32 %v4014_v14, %v10361_v6  ;;  %v7981_v8 = vpop.f32.mrb[209].mxu0  ;;  %4350 = vrot.lane.b32.xlu0 %v4349_v26, %s8656_s29  ;;  %4390 = vrot.lane.b32.xlu1 %v4389_v12, %s8656_s29  ;;  %v4436_v7 = vrot.slane %v4307_v57, %v10534_v10  ;;  %v8438_v57 = vld [vmem:[%s11264_s7 + $0xf0] ss:$8 sps:$4 sm:$0xff]   ;;  %v8443_v26 = vld [vmem:[%s11264_s7 + $0x1f4] ss:$8 sps:$4 sm:$0xff]  }
 0x522   : > { %v4017_v37 = vpop.f32.mrb[210].mxu0  ;;  %4428 = vst.msk [vmem:[#allocation2 + $0x6] sm:$0x3] %vm4320_vm8, %v4426_v46  ;;  %6086 = vmatpush1.bf16.msra.mxu0 %v8417_v60  ;;  %6048 = vmatprep.subr.bf16.mxu1 %v8428_v56  ;;  %v8441_v14 = vld [vmem:[%s11264_s7 + $0x1f0] ss:$8 sps:$4 sm:$0xff]  }
 0x523   : > { %v4458_v6 = vcombine.high %v4308_v47, %v4308_v47  ;;  %v4268_v62 = vadd.f32 %v10420_v2, %v4066_v49  ;;  %v4067_v63 = vadd.f32 %v4017_v37, %v10364_v50  ;;  %v7982_v32 = vpop.f32.mrb[211].mxu0  ;;  %6087 = vmatprep.subr.bf16.mxu0 %v8425_v54  ;;  %v4448_v20 = vrot.slane %v4308_v47, %v10534_v10 }
 0x524   : > { %6049 = vmatpush1.bf16.msra.mxu1 %v8426_v61 }
 0x525   : > { %v4292_v52 = vadd.f32 %v10511_v41, %v4268_v62  ;;  %v4269_v2 = vadd.f32 %v10432_v16, %v4067_v63  ;;  %4410 = vrot.lane.b32.xlu0 %v4409_v55, %s8655_s25  ;;  %4437 = vrot.lane.b32.xlu1 %v4436_v7, %s8654_s16  ;;  %v4465_v50 = vrot.slane %v4458_v6, %v10534_v10 }
 0x526   : > { %6088 = vmatpush1.bf16.msra.mxu0 %v8423_v25  ;;  %6050 = vmatprep.subr.bf16.mxu1 %v8434_v15  ;;  %v4453_v13 = vcombine.high %v4448_v20, %v4448_v20 }
 0x527   : > { %v4309_v29 = vmax.f32 %v4292_v52, 0.0  ;;  %v4293_v16 = vadd.f32 %v10511_v41, %v4269_v2  ;;  %4467 = vst.msk [vmem:[#allocation2 + $0x8] sm:$0x3] %vm4320_vm8, %v4465_v50  ;;  %6089 = vmatprep.subr.bf16.mxu0 %v8431_v35 }
 0x528   : > { %v4022_v18 = vpop.f32.mrb[212].mxu0  ;;  %6051 = vmatpush1.bf16.msra.mxu1 %v8432_v38 }
 0x529   : > { %v4490_v42 = vcombine.high %v4309_v29, %v4309_v29  ;;  %v4310_v33 = vmax.f32 %v4293_v16, 0.0  ;;  %v4068_v12 = vadd.f32 %v4022_v18, %v10403_v5  ;;  %v7985_v9 = vpop.f32.mrb[213].mxu0  ;;  %4422 = vrot.lane.b32.xlu0 %v4421_v40, %s8656_s29  ;;  %4449 = vrot.lane.b32.xlu1 %v4448_v20, %s8655_s25  ;;  %v4468_v40 = vcombine.high %v4465_v50, %v4465_v50 }
 0x52a   : > { %v4025_v4 = vpop.f32.mrb[214].mxu0  ;;  %6090 = vmatpush1.bf16.msra.mxu0 %v8429_v3  ;;  %6052 = vmatprep.subr.bf16.mxu1 %v8440_v21 }
 0x52b   : > { %v4501_v59 = vcombine.high %v4310_v33, %v4310_v33  ;;  %v4270_v27 = vadd.f32 %v10456_v43, %v4068_v12  ;;  %v4069_v5 = vadd.f32 %v4025_v4, %v10409_v34  ;;  %v7986_v60 = vpop.f32.mrb[215].mxu0  ;;  %v4497_v44 = vrot.slane %v4490_v42, %v10534_v10  ;;  %6091 = vmatprep.subr.bf16.mxu0 %v8437_v28 }
 0x52c   : > { %v4480_v34 = vrot.slane %v4309_v29, %v10534_v10  ;;  %6053 = vmatpush1.bf16.msra.mxu1 %v8438_v57 }
 0x52d   : > { %v4294_v39 = vadd.f32 %v10511_v41, %v4270_v27  ;;  %v4271_v43 = vadd.f32 %v10468_v30, %v4069_v5  ;;  %4469 = vrot.lane.b32.xlu0 %v4468_v40, %s8654_s16  ;;  %4454 = vrot.lane.b32.xlu1 %v4453_v13, %s8656_s29  ;;  %4499 = vst.msk [vmem:[#allocation2 + $0xa] sm:$0x3] %vm4320_vm8, %v4497_v44  ;;  %v8446_v30 = vld [vmem:[%s11264_s7 + $0x204] ss:$8 sps:$4 sm:$0xff]  }
 0x52e   : > { %6092 = vmatpush1.bf16.msra.mxu0 %v8435_v17  ;;  %v4508_v54 = vrot.slane %v4501_v59, %v10534_v10  ;;  %v4485_v55 = vcombine.high %v4480_v34, %v4480_v34 }
 0x52f   : > { %v4311_v46 = vmax.f32 %v4294_v39, 0.0  ;;  %6093 = vmatprep.subr.bf16.mxu0 %v8443_v26  ;;  %v4295_v35 = vadd.f32 %v10511_v41, %v4271_v43 }
 0x530   : > { %v4030_v47 = vpop.f32.mrb[216].mxu0  ;;  %v4513_v63 = vcombine.high %v4508_v54, %v4508_v54 }
 0x531   : > { %v4070_v49 = vadd.f32 %v4030_v47, %v10439_v31  ;;  %v7989_v8 = vpop.f32.mrb[217].mxu0  ;;  %4481 = vrot.lane.b32.xlu0 %v4480_v34, %s8655_s25  ;;  %4509 = vrot.lane.b32.xlu1 %v4508_v54, %s8654_s16  ;;  %v4525_v56 = vrot.slane %v4311_v46, %v10534_v10  ;;  %v4533_v32 = vcombine.high %v4311_v46, %v4311_v46  ;;  %v4312_v3 = vmax.f32 %v4295_v35, 0.0 }
 0x532   : > { %v4033_v37 = vpop.f32.mrb[218].mxu0  ;;  %6094 = vmatpush1.bf16.msra.mxu0 %v8441_v14  ;;  %v4718_v47 = vrot.slane %v10565_v11, %v10534_v10 }
 0x533   : > { %v4272_v25 = vadd.f32 %v10480_v19, %v4070_v49  ;;  %v4071_v6 = vadd.f32 %v4033_v37, %v10445_v23  ;;  %v7990_v62 = vpop.f32.mrb[219].mxu0  ;;  %6104 = vmatprep.subr.bf16.mxu0 %v8446_v30  ;;  %v4530_v7 = vcombine.high %v4525_v56, %v4525_v56  ;;  %v4540_v52 = vrot.slane %v4533_v32, %v10534_v10 }
 0x534   : > { %v4723_v62 = vcombine.high %v4718_v47, %v4718_v47 }
 0x535   : > { %v4296_v31 = vadd.f32 %v10511_v41, %v4272_v25  ;;  %v4273_v61 = vadd.f32 %v10483_v0, %v4071_v6  ;;  %4486 = vrot.lane.b32.xlu0 %v4485_v55, %s8656_s29  ;;  %4514 = vrot.lane.b32.xlu1 %v4513_v63, %s8655_s25  ;;  %4532 = vst.msk [vmem:[#allocation2 + $0xc] sm:$0x3] %vm4320_vm8, %v4530_v7 }
 0x536   : > { %v4545_v42 = vcombine.high %v4540_v52, %v4540_v52 }
 0x537   : > { %v4313_v19 = vmax.f32 %v4296_v31, 0.0  ;;  %v4297_v23 = vadd.f32 %v10511_v41, %v4273_v61 }
 0x538   : > { %v4038_v2 = vpop.f32.mrb[220].mxu0 }
 0x539   : > { %4562 = vst.msk [vmem:[#allocation2 + $0xe] sm:$0x3] %vm4320_vm8, %v4313_v19  ;;  %v4314_v50 = vmax.f32 %v4297_v23, 0.0  ;;  %v4072_v15 = vadd.f32 %v4038_v2, %v10472_v22  ;;  %v7993_v0 = vpop.f32.mrb[221].mxu0  ;;  %4541 = vrot.lane.b32.xlu0 %v4540_v52, %s8654_s16  ;;  %4526 = vrot.lane.b32.xlu1 %v4525_v56, %s8656_s29  ;;  %v4570_v20 = vrot.slane %v4313_v19, %v10534_v10 }
 0x53a   : > { %v4041_v29 = vpop.f32.mrb[222].mxu0  ;;  %v4576_v16 = vcombine.high %v4313_v19, %v4313_v19 }
 0x53b   : > { %4593 = vst.msk [vmem:[#allocation2 + $0x10] sm:$0x3] %vm4320_vm8, %v4314_v50  ;;  %v4274_v38 = vadd.f32 %v10492_v1, %v4072_v15  ;;  %v4073_v18 = vadd.f32 %v4041_v29, %v10478_v48  ;;  %v7994_v28 = vpop.f32.mrb[223].mxu0  ;;  %v4571_v33 = vcombine.high %v4570_v20, %v4570_v20  ;;  %v4557_v1 = vrot.slane %v4312_v3, %v10534_v10 }
 0x53c   : > { %v4583_v9 = vrot.slane %v4576_v16, %v10534_v10  ;;  %v4601_v48 = vrot.slane %v4314_v50, %v10534_v10  ;;  %v4607_v40 = vcombine.high %v4314_v50, %v4314_v50 }
 0x53d   : > { %v4298_v22 = vadd.f32 %v10511_v41, %v4274_v38  ;;  %v4275_v12 = vadd.f32 %v10495_v24, %v4073_v18  ;;  %4546 = vrot.lane.b32.xlu0 %v4545_v42, %s8655_s25  ;;  %4572 = vrot.lane.b32.xlu1 %v4571_v33, %s8654_s16 }
 0x53e   : > { %v4588_v60 = vcombine.high %v4583_v9, %v4583_v9  ;;  %v4602_v39 = vcombine.high %v4601_v48, %v4601_v48  ;;  %v8444_v48 = vld [vmem:[%s11264_s7 + $0x200] ss:$8 sps:$4 sm:$0xff]  }
 0x53f   : > { %v4315_v21 = vmax.f32 %v4298_v22, 0.0  ;;  %v4299_v4 = vadd.f32 %v10511_v41, %v4275_v12 }
 0x540   : > { %v4046_v13 = vpop.f32.mrb[224].mxu0 }
 0x541   : > { %v4620_v17 = vcombine.high %v4315_v21, %v4315_v21  ;;  %v4316_v59 = vmax.f32 %v4299_v4, 0.0  ;;  %v4074_v27 = vadd.f32 %v4046_v13, %v10487_v51  ;;  %v7997_v5 = vpop.f32.mrb[225].mxu0  ;;  %4558 = vrot.lane.b32.xlu0 %v4557_v1, %s8656_s29  ;;  %4584 = vrot.lane.b32.xlu1 %v4583_v9, %s8655_s25 }
 0x542   : > { %v4049_v24 = vpop.f32.mrb[226].mxu0  ;;  %v8447_v5 = vld [vmem:[%s11264_s7 + $0x210] ss:$8 sps:$4 sm:$0xff]  }
 0x543   : > { %v4276_v57 = vadd.f32 %v10499_v36, %v4074_v27  ;;  %v4075_v44 = vadd.f32 %v4049_v24, %v10490_v45  ;;  %v7998_v26 = vpop.f32.mrb[227].mxu0  ;;  %v4627_v43 = vrot.slane %v4620_v17, %v10534_v10  ;;  %v4652_v34 = vcombine.high %v4316_v59, %v4316_v59  ;;  %v8449_v27 = vld [vmem:[%s11264_s7 + $0x214] ss:$8 sps:$4 sm:$0xff]  }
 0x544   : > { %v4614_v45 = vrot.slane %v4607_v40, %v10534_v10  ;;  %v4642_v56 = vrot.slane %v4316_v59, %v10534_v10  ;;  %v8452_v40 = vld [vmem:[%s11264_s7 + $0x224] ss:$8 sps:$4 sm:$0xff]  }
 0x545   : > { %v4277_v14 = vadd.f32 %v10515_v53, %v4075_v44  ;;  %4589 = vrot.lane.b32.xlu1 %v4588_v60, %s8656_s29  ;;  %4603 = vrot.lane.b32.xlu0 %v4602_v39, %s8654_s16  ;;  %v4659_v51 = vrot.slane %v4652_v34, %v10534_v10  ;;  %v4632_v46 = vcombine.high %v4627_v43, %v4627_v43  ;;  %v8455_v39 = vld [vmem:[%s11264_s7 + $0x234] ss:$8 sps:$4 sm:$0xff]  }
 0x546   : > { %v4300_v54 = vadd.f32 %v10511_v41, %v4276_v57  ;;  %v4647_v37 = vcombine.high %v4642_v56, %v4642_v56  ;;  %v8450_v57 = vld [vmem:[%s11264_s7 + $0x220] ss:$8 sps:$4 sm:$0xff]  }
 0x547   : > { %v4301_v36 = vadd.f32 %v10511_v41, %v4277_v14  ;;  %4634 = vst.msk [vmem:[#allocation2 + $0x12] sm:$0x3] %vm4320_vm8, %v4632_v46  ;;  %v4664_v30 = vcombine.high %v4659_v51, %v4659_v51  ;;  %v8456_v46 = vld [vmem:[%s11264_s7 + $0x240] ss:$8 sps:$4 sm:$0xff]  }
 0x548   : > { %v4317_v49 = vmax.f32 %v4300_v54, 0.0 }
 0x549   : > { %v4318_v53 = vmax.f32 %v4301_v36, 0.0  ;;  %4615 = vrot.lane.b32.xlu0 %v4614_v45, %s8655_s25  ;;  %4719 = vrot.lane.b32.xlu1 %v4718_v47, %s8655_s25  ;;  %4666 = vst.msk [vmem:[#allocation2 + $0x14] sm:$0x3] %vm4320_vm8, %v4664_v30  ;;  %v8461_v45 = vld [vmem:[%s11264_s7 + $0x254] ss:$8 sps:$4 sm:$0xff]  }
 0x54a   : > { %v4674_v11 = vrot.slane %v4317_v49, %v10534_v10 }
 0x54b   : > { %v4696_v8 = vcombine.high %v4318_v53, %v4318_v53  ;;  %v4686_v55 = vrot.slane %v4318_v53, %v10534_v10  ;;  %v8459_v53 = vld [vmem:[%s11264_s7 + $0x250] ss:$8 sps:$4 sm:$0xff]  }
 0x54d   : > { %4628 = vrot.lane.b32.xlu0 %v4627_v43, %s8656_s29  ;;  %4643 = vrot.lane.b32.xlu1 %v4642_v56, %s8654_s16  ;;  %v4703_v41 = vrot.slane %v4696_v8, %v10534_v10  ;;  %v4691_v25 = vcombine.high %v4686_v55, %v4686_v55  ;;  %v8453_v43 = vld [vmem:[%s11264_s7 + $0x230] ss:$8 sps:$4 sm:$0xff]  }
 0x54f   : > { %4705 = vst.msk [vmem:[#allocation2 + $0x16] sm:$0x3] %vm4320_vm8, %v4703_v41  ;;  %v4706_v6 = vcombine.high %v4703_v41, %v4703_v41  ;;  %v8464_v41 = vld [vmem:[%s11264_s7 + $0x264] ss:$8 sps:$4 sm:$0xff]  }
 0x551   : > { %4675 = vrot.lane.b32.xlu0 %v4674_v11, %s8654_s16  ;;  %4648 = vrot.lane.b32.xlu1 %v4647_v37, %s8655_s25  ;;  %v8462_v37 = vld [vmem:[%s11264_s7 + $0x260] ss:$8 sps:$4 sm:$0xff]  }
 0x555   : > { %4687 = vrot.lane.b32.xlu0 %v4686_v55, %s8655_s25  ;;  %4660 = vrot.lane.b32.xlu1 %v4659_v51, %s8656_s29  ;;  %v8458_v51 = vld [vmem:[%s11264_s7 + $0x244] ss:$8 sps:$4 sm:$0xff]   ;;  %s426_s25 = scalar_lea.vmem %s11269_s12, %s6447_s10 }
 0x559   : > { %4692 = vrot.lane.b32.xlu0 %v4691_v25, %s8656_s29  ;;  %4707 = vrot.lane.b32.xlu1 %v4706_v6, %s8654_s16  ;;  %v8467_v6 = vld [vmem:[%s11264_s7 + $0x274] ss:$8 sps:$4 sm:$0xff]  }
 0x55d   : > { %4724 = vrot.lane.b32.xlu1 %v4723_v62, %s8656_s29  ;;  %v8465_v62 = vld [vmem:[%s11264_s7 + $0x270] ss:$8 sps:$4 sm:$0xff]  }
 0x587   : > { %v4332_v63 = vpop.permute.xlu0 %4331 }
 0x588   : > { %4335 = vst.msk [vmem:[#allocation2] sm:$0x3] %vm4334_vm9, %v4332_v63 }
 0x58a   : > { %v4378_v32 = vpop.permute.xlu1 %4377 }
 0x58b   : > { %v4345_v7 = vpop.permute.xlu0 %4344 }
 0x58c   : > { %4348 = vst.msk [vmem:[#allocation2] sm:$0x3] %vm4347_vm10, %v4345_v7  ;;  %v8470_v7 = vld [vmem:[%s11264_s7 + $0x284] ss:$8 sps:$4 sm:$0xff]  }
 0x58f   : > { %v4366_v31 = vpop.permute.xlu0 %4365  ;;  %v4406_v61 = vpop.permute.xlu1 %4405 }
 0x590   : > { %4368 = vst.msk [vmem:[#allocation2 + $0x2] sm:$0x3] %vm4334_vm9, %v4366_v31  ;;  %4408 = vst.msk [vmem:[#allocation2 + $0x4] sm:$0x3] %vm4334_vm9, %v4406_v61  ;;  %v8468_v31 = vld [vmem:[%s11264_s7 + $0x280] ss:$8 sps:$4 sm:$0xff]  }
 0x591   : > { %4380 = vst.msk [vmem:[#allocation2 + $0x2] sm:$0x3] %vm4347_vm10, %v4378_v32 }
 0x593   : > { %v4351_v35 = vpop.permute.xlu0 %4350  ;;  %v4391_v19 = vpop.permute.xlu1 %4390 }
 0x594   : > { %4354 = vst.msk [vmem:[#allocation2] sm:$0x3] %vm4353_vm11, %v4351_v35  ;;  %4393 = vst.msk [vmem:[#allocation2 + $0x2] sm:$0x3] %vm4353_vm11, %v4391_v19  ;;  %v8473_v35 = vld [vmem:[%s11264_s7 + $0x294] ss:$8 sps:$4 sm:$0xff]  }
 0x595   : > { %v8471_v19 = vld [vmem:[%s11264_s7 + $0x290] ss:$8 sps:$4 sm:$0xff]  }
 0x597   : > { %v4411_v23 = vpop.permute.xlu0 %4410  ;;  %v4438_v52 = vpop.permute.xlu1 %4437 }
 0x598   : > { %4413 = vst.msk [vmem:[#allocation2 + $0x4] sm:$0x3] %vm4347_vm10, %v4411_v23  ;;  %v8476_v23 = vld [vmem:[%s11264_s7 + $0x2a4] ss:$8 sps:$4 sm:$0xff]  }
 0x599   : > { %4440 = vst.msk [vmem:[#allocation2 + $0x6] sm:$0x3] %vm4334_vm9, %v4438_v52  ;;  %v8474_v52 = vld [vmem:[%s11264_s7 + $0x2a0] ss:$8 sps:$4 sm:$0xff]  }
 0x59b   : > { %v4423_v2 = vpop.permute.xlu0 %4422  ;;  %v4450_v50 = vpop.permute.xlu1 %4449 }
 0x59c   : > { %4425 = vst.msk [vmem:[#allocation2 + $0x4] sm:$0x3] %vm4353_vm11, %v4423_v2  ;;  %v8479_v2 = vld [vmem:[%s11264_s7 + $0x2b4] ss:$8 sps:$4 sm:$0xff]  }
 0x59d   : > { %4452 = vst.msk [vmem:[#allocation2 + $0x6] sm:$0x3] %vm4347_vm10, %v4450_v50  ;;  %v8477_v50 = vld [vmem:[%s11264_s7 + $0x2b0] ss:$8 sps:$4 sm:$0xff]  }
 0x59f   : > { %v4470_v15 = vpop.permute.xlu0 %4469  ;;  %v4455_v0 = vpop.permute.xlu1 %4454 }
 0x5a0   : > { %4472 = vst.msk [vmem:[#allocation2 + $0x8] sm:$0x3] %vm4334_vm9, %v4470_v15  ;;  %v8482_v15 = vld [vmem:[%s11264_s7 + $0x2c4] ss:$8 sps:$4 sm:$0xff]  }
 0x5a1   : > { %4457 = vst.msk [vmem:[#allocation2 + $0x6] sm:$0x3] %vm4353_vm11, %v4455_v0  ;;  %v8480_v0 = vld [vmem:[%s11264_s7 + $0x2c0] ss:$8 sps:$4 sm:$0xff]  }
 0x5a3   : > { %v4482_v20 = vpop.permute.xlu0 %4481  ;;  %v4510_v3 = vpop.permute.xlu1 %4509 }
 0x5a4   : > { %4484 = vst.msk [vmem:[#allocation2 + $0x8] sm:$0x3] %vm4347_vm10, %v4482_v20  ;;  %v8485_v20 = vld [vmem:[%s11264_s7 + $0x2d4] ss:$8 sps:$4 sm:$0xff]  }
 0x5a5   : > { %4512 = vst.msk [vmem:[#allocation2 + $0xa] sm:$0x3] %vm4334_vm9, %v4510_v3  ;;  %v8483_v3 = vld [vmem:[%s11264_s7 + $0x2d0] ss:$8 sps:$4 sm:$0xff]  }
 0x5a7   : > { %v4487_v29 = vpop.permute.xlu0 %4486  ;;  %v4515_v16 = vpop.permute.xlu1 %4514 }
 0x5a8   : > { %v4738_v38 = vld [vmem:[#allocation2] sm:$0xff]  ;;  %4489 = vst.msk [vmem:[#allocation2 + $0x8] sm:$0x3] %vm4353_vm11, %v4487_v29 }
 0x5a9   : > { %4517 = vst.msk [vmem:[#allocation2 + $0xa] sm:$0x3] %vm4347_vm10, %v4515_v16  ;;  %v4753_v18 = vrot.slane %v4738_v38, %v10534_v10  ;;  %v4746_v28 = vcombine.high %v4738_v38, %v4738_v38  ;;  %v8488_v29 = vld [vmem:[%s11264_s7 + $0x2e4] ss:$8 sps:$4 sm:$0xff]   ;;  %v8486_v38 = vld [vmem:[%s11264_s7 + $0x2e0] ss:$8 sps:$4 sm:$0xff]  }
 0x5ab   : > { %v4761_v42 = vcombine.high %v4753_v18, %v4753_v18  ;;  %v4760_v33 = vrot.slane %v4746_v28, %v10534_v10  ;;  %v4542_v22 = vpop.permute.xlu0 %4541  ;;  %v4527_v12 = vpop.permute.xlu1 %4526  ;;  %v4817_v4 = vpack.c.bf16 %v4753_v18, %v4753_v18  ;;  %v8491_v18 = vld [vmem:[%s11264_s7 + $0x2f4] ss:$8 sps:$4 sm:$0xff]  }
 0x5ac   : > { %4544 = vst.msk [vmem:[#allocation2 + $0xc] sm:$0x3] %vm4334_vm9, %v4542_v22 }
 0x5ad   : > { %4529 = vst.msk [vmem:[#allocation2 + $0xa] sm:$0x3] %vm4353_vm11, %v4527_v12  ;;  %v4818_v9 = vpack.c.bf16 %v4761_v42, %v4761_v42  ;;  %v4762_v21 = vcombine.high %v4760_v33, %v4760_v33  ;;  %v4819_v59 = vpack.c.bf16 %v4760_v33, %v4760_v33  ;;  %v8489_v42 = vld [vmem:[%s11264_s7 + $0x2f0] ss:$8 sps:$4 sm:$0xff]   ;;  %v8494_v33 = vld [vmem:[%s11264_s7 + $0x304] ss:$8 sps:$4 sm:$0xff]  }
 0x5ae   : > { %v8492_v12 = vld [vmem:[%s11264_s7 + $0x300] ss:$8 sps:$4 sm:$0xff]  }
 0x5af   : > { %6054 = vmatprep.mubr.bf16.mxu1 %v4818_v9  ;;  %v4820_v1 = vpack.c.bf16 %v4762_v21, %v4762_v21  ;;  %v4547_v13 = vpop.permute.xlu0 %4546  ;;  %v4573_v17 = vpop.permute.xlu1 %4572  ;;  %v8497_v21 = vld [vmem:[%s11264_s7 + $0x314] ss:$8 sps:$4 sm:$0xff]  }
 0x5b0   : > { %6055 = vmatmul.mubr.bf16.vlgmr.msra.gmra.mrb[32].mxu1 %v4817_v4  ;;  %4549 = vst.msk [vmem:[#allocation2 + $0xc] sm:$0x3] %vm4347_vm10, %v4547_v13  ;;  %v8498_v13 = vld [vmem:[%s11264_s7 + $0x320] ss:$8 sps:$4 sm:$0xff]  }
 0x5b1   : > { %4575 = vst.msk [vmem:[#allocation2 + $0xe] sm:$0x3] %vm4334_vm9, %v4573_v17  ;;  %6095 = vmatprep.mubr.bf16.mxu0 %v4820_v1  ;;  %v8495_v1 = vld [vmem:[%s11264_s7 + $0x310] ss:$8 sps:$4 sm:$0xff]   ;;  %v8503_v17 = vld [vmem:[%s11264_s7 + $0x334] ss:$8 sps:$4 sm:$0xff]  }
 0x5b2   : > { %6096 = vmatmul.mubr.bf16.vlgmr.msra.gmra.mrb[228].mxu0 %v4819_v59  ;;  %v8501_v59 = vld [vmem:[%s11264_s7 + $0x330] ss:$8 sps:$4 sm:$0xff]  }
 0x5b3   : > { %6105 = vmatpush1.bf16.msra.mxu0 %v8444_v48  ;;  %v4559_v24 = vpop.permute.xlu0 %4558  ;;  %v4585_v60 = vpop.permute.xlu1 %4584  ;;  %v8500_v48 = vld [vmem:[%s11264_s7 + $0x324] ss:$8 sps:$4 sm:$0xff]  }
 0x5b4   : > { %6106 = vmatprep.subr.bf16.mxu0 %v8449_v27  ;;  %4561 = vst.msk [vmem:[#allocation2 + $0xc] sm:$0x3] %vm4353_vm11, %v4559_v24  ;;  %v8506_v27 = vld [vmem:[%s11264_s7 + $0x344] ss:$8 sps:$4 sm:$0xff]   ;;  %v8509_v24 = vld [vmem:[%s11264_s7 + $0x354] ss:$8 sps:$4 sm:$0xff]  }
 0x5b5   : > { %4587 = vst.msk [vmem:[#allocation2 + $0xe] sm:$0x3] %vm4347_vm10, %v4585_v60  ;;  %v8507_v60 = vld [vmem:[%s11264_s7 + $0x350] ss:$8 sps:$4 sm:$0xff]  }
 0x5b7   : > { %6107 = vmatpush1.bf16.msra.mxu0 %v8447_v5  ;;  %v4590_v44 = vpop.permute.xlu1 %4589  ;;  %v4604_v26 = vpop.permute.xlu0 %4603  ;;  %v8504_v5 = vld [vmem:[%s11264_s7 + $0x340] ss:$8 sps:$4 sm:$0xff]  }
 0x5b8   : > { %6108 = vmatprep.subr.bf16.mxu0 %v8452_v40  ;;  %4592 = vst.msk [vmem:[#allocation2 + $0xe] sm:$0x3] %vm4353_vm11, %v4590_v44  ;;  %v8512_v40 = vld [vmem:[%s11264_s7 + $0x364] ss:$8 sps:$4 sm:$0xff]   ;;  %v8515_v44 = vld [vmem:[%s11264_s7 + $0x374] ss:$8 sps:$4 sm:$0xff]  }
 0x5b9   : > { %4606 = vst.msk [vmem:[#allocation2 + $0x10] sm:$0x3] %vm4334_vm9, %v4604_v26  ;;  %v8513_v26 = vld [vmem:[%s11264_s7 + $0x370] ss:$8 sps:$4 sm:$0xff]  }
 0x5bb   : > { %6109 = vmatpush1.bf16.msra.mxu0 %v8450_v57  ;;  %v4616_v34 = vpop.permute.xlu0 %4615  ;;  %v4720_v14 = vpop.permute.xlu1 %4719  ;;  %v8510_v57 = vld [vmem:[%s11264_s7 + $0x360] ss:$8 sps:$4 sm:$0xff]  }
 0x5bc   : > { %6110 = vmatprep.subr.bf16.mxu0 %v8455_v39  ;;  %4618 = vst.msk [vmem:[#allocation2 + $0x10] sm:$0x3] %vm4347_vm10, %v4616_v34  ;;  %v8518_v39 = vld [vmem:[%s11264_s7 + $0x384] ss:$8 sps:$4 sm:$0xff]   ;;  %v8521_v34 = vld [vmem:[%s11264_s7 + $0x394] ss:$8 sps:$4 sm:$0xff]  }
 0x5bf   : > { %6111 = vmatpush1.bf16.msra.mxu0 %v8453_v43  ;;  %v4629_v54 = vpop.permute.xlu0 %4628  ;;  %v4644_v36 = vpop.permute.xlu1 %4643  ;;  %v10819_v47 = vld [vmem:[#allocation2 + $0x8] sm:$0xff] }
 0x5c0   : > { %6112 = vmatprep.subr.bf16.mxu0 %v8458_v51  ;;  %4631 = vst.msk [vmem:[#allocation2 + $0x10] sm:$0x3] %vm4353_vm11, %v4629_v54  ;;  %v10825_v30 = vrot.slane %v10819_v47, %v10534_v10  ;;  %v4763_v16 = vcombine.high %v10819_v47, %v10819_v47  ;;  %v8516_v43 = vld [vmem:[%s11264_s7 + $0x380] ss:$8 sps:$4 sm:$0xff]   ;;  %v8524_v51 = vld [vmem:[%s11264_s7 + $0x3a4] ss:$8 sps:$4 sm:$0xff]  }
 0x5c1   : > { %4646 = vst.msk [vmem:[#allocation2 + $0x12] sm:$0x3] %vm4334_vm9, %v4644_v36  ;;  %v8527_v54 = vld [vmem:[%s11264_s7 + $0x3b4] ss:$8 sps:$4 sm:$0xff]   ;;  %v8525_v36 = vld [vmem:[%s11264_s7 + $0x3b0] ss:$8 sps:$4 sm:$0xff]  }
 0x5c2   : > { %v4778_v49 = vcombine.high %v10825_v30, %v10825_v30  ;;  %v10900_v28 = vrot.slane %v4763_v16, %v10534_v10  ;;  %v4821_v9 = vpack.c.bf16 %v10825_v30, %v10825_v30  ;;  %v8528_v47 = vld [vmem:[%s11264_s7 + $0x3c0] ss:$8 sps:$4 sm:$0xff]   ;;  %v8533_v30 = vld [vmem:[%s11264_s7 + $0x3d4] ss:$8 sps:$4 sm:$0xff]  }
 0x5c3   : > { %6113 = vmatpush1.bf16.msra.mxu0 %v8456_v46  ;;  %v4676_v8 = vpop.permute.xlu0 %4675  ;;  %v4649_v56 = vpop.permute.xlu1 %4648  ;;  %v8522_v46 = vld [vmem:[%s11264_s7 + $0x3a0] ss:$8 sps:$4 sm:$0xff]  }
 0x5c4   : > { %6114 = vmatprep.subr.bf16.mxu0 %v8461_v45  ;;  %4678 = vst.msk [vmem:[#allocation2 + $0x14] sm:$0x3] %vm4334_vm9, %v4676_v8  ;;  %v4822_v11 = vpack.c.bf16 %v4778_v49, %v4778_v49  ;;  %v4779_v22 = vcombine.high %v10900_v28, %v10900_v28  ;;  %v8530_v45 = vld [vmem:[%s11264_s7 + $0x3c4] ss:$8 sps:$4 sm:$0xff]   ;;  %v8564_v16 = vld [vmem:[%s11264_s7 + $0x480] ss:$8 sps:$4 sm:$0xff]  }
 0x5c5   : > { %4651 = vst.msk [vmem:[#allocation2 + $0x12] sm:$0x3] %vm4347_vm10, %v4649_v56  ;;  %v8536_v49 = vld [vmem:[%s11264_s7 + $0x3e4] ss:$8 sps:$4 sm:$0xff]   ;;  %v8534_v56 = vld [vmem:[%s11264_s7 + $0x3e0] ss:$8 sps:$4 sm:$0xff]  }
 0x5c6   : > { %6136 = vmatprep.mubr.bf16.mxu0 %v4822_v11  ;;  %v4824_v4 = vpack.c.bf16 %v4779_v22, %v4779_v22  ;;  %v8573_v22 = vld [vmem:[%s11264_s7 + $0x4b0] ss:$8 sps:$4 sm:$0xff]  }
 0x5c7   : > { %6115 = vmatpush1.bf16.msra.mxu0 %v8459_v53  ;;  %v4688_v55 = vpop.permute.xlu0 %4687  ;;  %v4661_v25 = vpop.permute.xlu1 %4660  ;;  %v8531_v53 = vld [vmem:[%s11264_s7 + $0x3d0] ss:$8 sps:$4 sm:$0xff]  }
 0x5c8   : > { %6116 = vmatprep.subr.bf16.mxu0 %v8464_v41  ;;  %4690 = vst.msk [vmem:[#allocation2 + $0x14] sm:$0x3] %vm4347_vm10, %v4688_v55  ;;  %v8539_v41 = vld [vmem:[%s11264_s7 + $0x3f4] ss:$8 sps:$4 sm:$0xff]   ;;  %v8542_v55 = vld [vmem:[%s11264_s7 + $0x404] ss:$8 sps:$4 sm:$0xff]  }
 0x5c9   : > { %4663 = vst.msk [vmem:[#allocation2 + $0x12] sm:$0x3] %vm4353_vm11, %v4661_v25 }
 0x5cb   : > { %6117 = vmatpush1.bf16.msra.mxu0 %v8462_v37  ;;  %v4693_v63 = vpop.permute.xlu0 %4692  ;;  %v4708_v32 = vpop.permute.xlu1 %4707  ;;  %v8537_v37 = vld [vmem:[%s11264_s7 + $0x3f0] ss:$8 sps:$4 sm:$0xff]  }
 0x5cc   : > { %6118 = vmatprep.subr.bf16.mxu0 %v8467_v6  ;;  %4695 = vst.msk [vmem:[#allocation2 + $0x14] sm:$0x3] %vm4353_vm11, %v4693_v63  ;;  %v8540_v6 = vld [vmem:[%s11264_s7 + $0x400] ss:$8 sps:$4 sm:$0xff]   ;;  %v8545_v63 = vld [vmem:[%s11264_s7 + $0x414] ss:$8 sps:$4 sm:$0xff]  }
 0x5cd   : > { %4710 = vst.msk [vmem:[#allocation2 + $0x16] sm:$0x3] %vm4334_vm9, %v4708_v32 }
 0x5ce   : > { %4722 = vst.msk [vmem:[#allocation2 + $0x16] sm:$0x3] %vm4347_vm10, %v4720_v14  ;;  %v8519_v14 = vld [vmem:[%s11264_s7 + $0x390] ss:$8 sps:$4 sm:$0xff]  }
 0x5cf   : > { %6119 = vmatpush1.bf16.msra.mxu0 %v8465_v62  ;;  %v4725_v61 = vpop.permute.xlu1 %4724  ;;  %v4823_v62 = vpack.c.bf16 %v10900_v28, %v10900_v28  ;;  %v8572_v28 = vld [vmem:[%s11264_s7 + $0x4a4] ss:$8 sps:$4 sm:$0xff]  }
 0x5d0   : > { %6120 = vmatprep.subr.bf16.mxu0 %v8470_v7  ;;  %4727 = vst.msk [vmem:[#allocation2 + $0x16] sm:$0x3] %vm4353_vm11, %v4725_v61  ;;  %v8543_v7 = vld [vmem:[%s11264_s7 + $0x410] ss:$8 sps:$4 sm:$0xff]   ;;  %v8546_v61 = vld [vmem:[%s11264_s7 + $0x420] ss:$8 sps:$4 sm:$0xff]  }
 0x5d3   : > { %6121 = vmatpush1.bf16.msra.mxu0 %v8468_v31  ;;  %v8548_v31 = vld [vmem:[%s11264_s7 + $0x424] ss:$8 sps:$4 sm:$0xff]  }
 0x5d4   : > { %6122 = vmatprep.subr.bf16.mxu0 %v8473_v35  ;;  %v8551_v35 = vld [vmem:[%s11264_s7 + $0x434] ss:$8 sps:$4 sm:$0xff]  }
 0x5d7   : > { %6123 = vmatpush1.bf16.msra.mxu0 %v8471_v19  ;;  %v10996_v8 = vld [vmem:[#allocation2 + $0x10] sm:$0xff] }
 0x5d8   : > { %6124 = vmatprep.subr.bf16.mxu0 %v8476_v23  ;;  %v11006_v11 = vrot.slane %v10996_v8, %v10534_v10  ;;  %v8549_v19 = vld [vmem:[%s11264_s7 + $0x430] ss:$8 sps:$4 sm:$0xff]   ;;  %v8554_v23 = vld [vmem:[%s11264_s7 + $0x444] ss:$8 sps:$4 sm:$0xff]  }
 0x5da   : > { %v4795_v25 = vcombine.high %v11006_v11, %v11006_v11 }
 0x5db   : > { %6125 = vmatpush1.bf16.msra.mxu0 %v8474_v52  ;;  %v8552_v52 = vld [vmem:[%s11264_s7 + $0x440] ss:$8 sps:$4 sm:$0xff]  }
 0x5dc   : > { %6126 = vmatprep.subr.bf16.mxu0 %v8479_v2  ;;  %v4826_v32 = vpack.c.bf16 %v4795_v25, %v4795_v25  ;;  %v8557_v2 = vld [vmem:[%s11264_s7 + $0x454] ss:$8 sps:$4 sm:$0xff]   ;;  %v8621_v25 = vld [vmem:[%s11264_s7 + $0x5a4] ss:$8 sps:$4 sm:$0xff]  }
 0x5df   : > { %6127 = vmatpush1.bf16.msra.mxu0 %v8477_v50  ;;  %v8555_v50 = vld [vmem:[%s11264_s7 + $0x450] ss:$8 sps:$4 sm:$0xff]  }
 0x5e0   : > { %6128 = vmatprep.subr.bf16.mxu0 %v8482_v15  ;;  %v8560_v15 = vld [vmem:[%s11264_s7 + $0x464] ss:$8 sps:$4 sm:$0xff]  }
 0x5e3   : > { %6129 = vmatpush1.bf16.msra.mxu0 %v8480_v0  ;;  %v8558_v0 = vld [vmem:[%s11264_s7 + $0x460] ss:$8 sps:$4 sm:$0xff]  }
 0x5e4   : > { %6130 = vmatprep.subr.bf16.mxu0 %v8485_v20  ;;  %v8563_v20 = vld [vmem:[%s11264_s7 + $0x474] ss:$8 sps:$4 sm:$0xff]  }
 0x5e7   : > { %6131 = vmatpush1.bf16.msra.mxu0 %v8483_v3  ;;  %v8561_v3 = vld [vmem:[%s11264_s7 + $0x470] ss:$8 sps:$4 sm:$0xff]  }
 0x5e8   : > { %6132 = vmatprep.subr.bf16.mxu0 %v8488_v29  ;;  %v8566_v29 = vld [vmem:[%s11264_s7 + $0x484] ss:$8 sps:$4 sm:$0xff]  }
 0x5eb   : > { %6133 = vmatpush1.bf16.msra.mxu0 %v8486_v38  ;;  %v8569_v38 = vld [vmem:[%s11264_s7 + $0x494] ss:$8 sps:$4 sm:$0xff]  }
 0x5ec   : > { %6134 = vmatprep.subr.bf16.mxu0 %v8491_v18  ;;  %v8567_v18 = vld [vmem:[%s11264_s7 + $0x490] ss:$8 sps:$4 sm:$0xff]  }
 0x5ef   : > { %6135 = vmatpush1.bf16.msra.mxu0 %v8489_v42  ;;  %v8570_v42 = vld [vmem:[%s11264_s7 + $0x4a0] ss:$8 sps:$4 sm:$0xff]  }
 0x5f0   : > { %6145 = vmatprep.subr.bf16.mxu0 %v8494_v33  ;;  %v8575_v33 = vld [vmem:[%s11264_s7 + $0x4b4] ss:$8 sps:$4 sm:$0xff]  }
 0x5f2   : > { %6137 = vmatmul.mubr.bf16.vlgmr.msra.gmra.mrb[228].mxu0 %v4821_v9  ;;  %v8576_v9 = vld [vmem:[%s11264_s7 + $0x4c0] ss:$8 sps:$4 sm:$0xff]  }
 0x5f3   : > { %6146 = vmatpush1.bf16.msra.mxu0 %v8492_v12  ;;  %6177 = vmatprep.mubr.bf16.mxu0 %v4824_v4  ;;  %v8578_v12 = vld [vmem:[%s11264_s7 + $0x4c4] ss:$8 sps:$4 sm:$0xff]   ;;  %v8579_v4 = vld [vmem:[%s11264_s7 + $0x4d0] ss:$8 sps:$4 sm:$0xff]  }
 0x5f4   : > { %6147 = vmatprep.subr.bf16.mxu0 %v8497_v21  ;;  %v8581_v21 = vld [vmem:[%s11264_s7 + $0x4d4] ss:$8 sps:$4 sm:$0xff]  }
 0x5f7   : > { %6148 = vmatpush1.bf16.msra.mxu0 %v8495_v1  ;;  %v8584_v1 = vld [vmem:[%s11264_s7 + $0x4e4] ss:$8 sps:$4 sm:$0xff]  }
 0x5f8   : > { %6149 = vmatprep.subr.bf16.mxu0 %v8500_v48  ;;  %v4780_v48 = vcombine.high %v10996_v8, %v10996_v8  ;;  %v8612_v8 = vld [vmem:[%s11264_s7 + $0x574] ss:$8 sps:$4 sm:$0xff]  }
 0x5fb   : > { %6150 = vmatpush1.bf16.msra.mxu0 %v8498_v13  ;;  %v8582_v13 = vld [vmem:[%s11264_s7 + $0x4e0] ss:$8 sps:$4 sm:$0xff]  }
 0x5fc   : > { %6151 = vmatprep.subr.bf16.mxu0 %v8503_v17  ;;  %v8587_v17 = vld [vmem:[%s11264_s7 + $0x4f4] ss:$8 sps:$4 sm:$0xff]  }
 0x5ff   : > { %6152 = vmatpush1.bf16.msra.mxu0 %v8501_v59  ;;  %v11111_v59 = vrot.slane %v4780_v48, %v10534_v10  ;;  %v4825_v10 = vpack.c.bf16 %v11006_v11, %v11006_v11  ;;  %v8613_v11 = vld [vmem:[%s11264_s7 + $0x580] ss:$8 sps:$4 sm:$0xff]  }
 0x600   : > { %6153 = vmatprep.subr.bf16.mxu0 %v8506_v27  ;;  %v8585_v27 = vld [vmem:[%s11264_s7 + $0x4f0] ss:$8 sps:$4 sm:$0xff]  }
 0x603   : > { %6154 = vmatpush1.bf16.msra.mxu0 %v8504_v5  ;;  %v8590_v5 = vld [vmem:[%s11264_s7 + $0x504] ss:$8 sps:$4 sm:$0xff]  }
 0x604   : > { %6155 = vmatprep.subr.bf16.mxu0 %v8509_v24  ;;  %v4796_v24 = vcombine.high %v11111_v59, %v11111_v59 }
 0x607   : > { %6156 = vmatpush1.bf16.msra.mxu0 %v8507_v60  ;;  %v8588_v60 = vld [vmem:[%s11264_s7 + $0x500] ss:$8 sps:$4 sm:$0xff]  }
 0x608   : > { %6157 = vmatprep.subr.bf16.mxu0 %v8512_v40  ;;  %v8594_v40 = vld [vmem:[%s11264_s7 + $0x514] ss:$8 sps:$4 sm:$0xff]  }
 0x60b   : > { %6158 = vmatpush1.bf16.msra.mxu0 %v8510_v57  ;;  %v4828_v57 = vpack.c.bf16 %v4796_v24, %v4796_v24 }
 0x60c   : > { %6159 = vmatprep.subr.bf16.mxu0 %v8515_v44  ;;  %v8592_v44 = vld [vmem:[%s11264_s7 + $0x510] ss:$8 sps:$4 sm:$0xff]  }
 0x60f   : > { %6160 = vmatpush1.bf16.msra.mxu0 %v8513_v26  ;;  %v8597_v26 = vld [vmem:[%s11264_s7 + $0x524] ss:$8 sps:$4 sm:$0xff]  }
 0x610   : > { %6161 = vmatprep.subr.bf16.mxu0 %v8518_v39  ;;  %v8595_v39 = vld [vmem:[%s11264_s7 + $0x520] ss:$8 sps:$4 sm:$0xff]  }
 0x613   : > { %6162 = vmatpush1.bf16.msra.mxu0 %v8516_v43  ;;  %v8600_v43 = vld [vmem:[%s11264_s7 + $0x534] ss:$8 sps:$4 sm:$0xff]  }
 0x614   : > { %6163 = vmatprep.subr.bf16.mxu0 %v8521_v34  ;;  %v8598_v34 = vld [vmem:[%s11264_s7 + $0x530] ss:$8 sps:$4 sm:$0xff]  }
 0x617   : > { %6164 = vmatpush1.bf16.msra.mxu0 %v8519_v14  ;;  %v8603_v14 = vld [vmem:[%s11264_s7 + $0x544] ss:$8 sps:$4 sm:$0xff]  }
 0x618   : > { %6165 = vmatprep.subr.bf16.mxu0 %v8524_v51  ;;  %v8601_v51 = vld [vmem:[%s11264_s7 + $0x540] ss:$8 sps:$4 sm:$0xff]  }
 0x61b   : > { %6166 = vmatpush1.bf16.msra.mxu0 %v8522_v46  ;;  %v8606_v46 = vld [vmem:[%s11264_s7 + $0x554] ss:$8 sps:$4 sm:$0xff]  }
 0x61c   : > { %6167 = vmatprep.subr.bf16.mxu0 %v8527_v54 }
 0x61f   : > { %6168 = vmatpush1.bf16.msra.mxu0 %v8525_v36  ;;  %v8604_v36 = vld [vmem:[%s11264_s7 + $0x550] ss:$8 sps:$4 sm:$0xff]  }
 0x620   : > { %6169 = vmatprep.subr.bf16.mxu0 %v8530_v45 }
 0x623   : > { %6170 = vmatpush1.bf16.msra.mxu0 %v8528_v47  ;;  %v8609_v47 = vld [vmem:[%s11264_s7 + $0x564] ss:$8 sps:$4 sm:$0xff]  }
 0x624   : > { %6171 = vmatprep.subr.bf16.mxu0 %v8533_v30 }
 0x627   : > { %6172 = vmatpush1.bf16.msra.mxu0 %v8531_v53 }
 0x628   : > { %6173 = vmatprep.subr.bf16.mxu0 %v8536_v49  ;;  %v8607_v49 = vld [vmem:[%s11264_s7 + $0x560] ss:$8 sps:$4 sm:$0xff]  }
 0x62b   : > { %6174 = vmatpush1.bf16.msra.mxu0 %v8534_v56  ;;  %v8610_v56 = vld [vmem:[%s11264_s7 + $0x570] ss:$8 sps:$4 sm:$0xff]  }
 0x62c   : > { %6175 = vmatprep.subr.bf16.mxu0 %v8539_v41  ;;  %v8615_v41 = vld [vmem:[%s11264_s7 + $0x584] ss:$8 sps:$4 sm:$0xff]  }
 0x62f   : > { %6176 = vmatpush1.bf16.msra.mxu0 %v8537_v37  ;;  %v8618_v37 = vld [vmem:[%s11264_s7 + $0x594] ss:$8 sps:$4 sm:$0xff]  }
 0x630   : > { %6186 = vmatprep.subr.bf16.mxu0 %v8542_v55  ;;  %v8616_v55 = vld [vmem:[%s11264_s7 + $0x590] ss:$8 sps:$4 sm:$0xff]  }
 0x632   : > { %6178 = vmatmul.mubr.bf16.vlgmr.msra.gmra.mrb[228].mxu0 %v4823_v62  ;;  %v8624_v62 = vld [vmem:[%s11264_s7 + $0x5b4] ss:$8 sps:$4 sm:$0xff]  }
 0x633   : > { %6187 = vmatpush1.bf16.msra.mxu0 %v8540_v6  ;;  %6218 = vmatprep.mubr.bf16.mxu0 %v4826_v32  ;;  %v8619_v6 = vld [vmem:[%s11264_s7 + $0x5a0] ss:$8 sps:$4 sm:$0xff]   ;;  %v8627_v32 = vld [vmem:[%s11264_s7 + $0x5c4] ss:$8 sps:$4 sm:$0xff]  }
 0x634   : > { %6188 = vmatprep.subr.bf16.mxu0 %v8545_v63  ;;  %v8622_v63 = vld [vmem:[%s11264_s7 + $0x5b0] ss:$8 sps:$4 sm:$0xff]  }
 0x637   : > { %6189 = vmatpush1.bf16.msra.mxu0 %v8543_v7  ;;  %v8625_v7 = vld [vmem:[%s11264_s7 + $0x5c0] ss:$8 sps:$4 sm:$0xff]  }
 0x638   : > { %6190 = vmatprep.subr.bf16.mxu0 %v8548_v31  ;;  %v8630_v31 = vld [vmem:[%s11264_s7 + $0x5d4] ss:$8 sps:$4 sm:$0xff]  }
 0x63b   : > { %6191 = vmatpush1.bf16.msra.mxu0 %v8546_v61  ;;  %v8628_v61 = vld [vmem:[%s11264_s7 + $0x5d0] ss:$8 sps:$4 sm:$0xff]  }
 0x63c   : > { %6192 = vmatprep.subr.bf16.mxu0 %v8551_v35  ;;  %v8633_v35 = vld [vmem:[%s11264_s7 + $0x5e4] ss:$8 sps:$4 sm:$0xff]  }
 0x63f   : > { %6193 = vmatpush1.bf16.msra.mxu0 %v8549_v19  ;;  %v8631_v19 = vld [vmem:[%s11264_s7 + $0x5e0] ss:$8 sps:$4 sm:$0xff]  }
 0x640   : > { %6194 = vmatprep.subr.bf16.mxu0 %v8554_v23  ;;  %v8636_v23 = vld [vmem:[%s11264_s7 + $0x5f4] ss:$8 sps:$4 sm:$0xff]  }
 0x643   : > { %6195 = vmatpush1.bf16.msra.mxu0 %v8552_v52  ;;  %v8634_v52 = vld [vmem:[%s11264_s7 + $0x5f0] ss:$8 sps:$4 sm:$0xff]  }
 0x644   : > { %6196 = vmatprep.subr.bf16.mxu0 %v8557_v2  ;;  %v8639_v2 = vld [vmem:[%s11264_s7 + $0x604] ss:$8 sps:$4 sm:$0xff]  }
 0x647   : > { %6197 = vmatpush1.bf16.msra.mxu0 %v8555_v50  ;;  %v8637_v50 = vld [vmem:[%s11264_s7 + $0x600] ss:$8 sps:$4 sm:$0xff]  }
 0x648   : > { %6198 = vmatprep.subr.bf16.mxu0 %v8560_v15  ;;  %v4827_v15 = vpack.c.bf16 %v11111_v59, %v11111_v59 }
 0x64b   : > { %6199 = vmatpush1.bf16.msra.mxu0 %v8558_v0  ;;  %v8642_v0 = vld [vmem:[%s11264_s7 + $0x614] ss:$8 sps:$4 sm:$0xff]  }
 0x64c   : > { %6200 = vmatprep.subr.bf16.mxu0 %v8563_v20  ;;  %v8640_v20 = vld [vmem:[%s11264_s7 + $0x610] ss:$8 sps:$4 sm:$0xff]  }
 0x64f   : > { %6201 = vmatpush1.bf16.msra.mxu0 %v8561_v3  ;;  %v8657_v3 = vmov 0  }
 0x650   : > { %6202 = vmatprep.subr.bf16.mxu0 %v8566_v29  ;;  %v6826_v29 = vld.sshfl [vmem:[#allocation2 + $0x18] sm:$0x3 pattern:$0x76325410] }
 0x653   : > { %6203 = vmatpush1.bf16.msra.mxu0 %v8564_v16  ;;  %v4829_v16 = vpack.c.bf16 %v6826_v29, %v6826_v29 }
 0x654   : > { %6204 = vmatprep.subr.bf16.mxu0 %v8569_v38  ;;  %v5030_v38 = vsub.s32 0, %v10513_v58 }
 0x657   : > { %6205 = vmatpush1.bf16.msra.mxu0 %v8567_v18  ;;  %v5026_v18 = vld [vmem:[%s11265_s8] sm:$0x3] }
 0x658   : > { %6206 = vmatprep.subr.bf16.mxu0 %v8572_v28  ;;  %v5034_v28 = vsub.s32 1, %v10513_v58 }
 0x65b   : > { %6207 = vmatpush1.bf16.msra.mxu0 %v8570_v42  ;;  %v5031_v42 = vrot.slane %v5026_v18, %v5030_v38 }
 0x65c   : > { %6208 = vmatprep.subr.bf16.mxu0 %v8575_v33  ;;  %v5035_v33 = vrot.slane %v5026_v18, %v5034_v28 }
 0x65f   : > { %6209 = vmatpush1.bf16.msra.mxu0 %v8573_v22  ;;  %v6323_v22 = vld [vmem:[%s11266_s9] sm:$0x3] }
 0x660   : > { %6210 = vmatprep.subr.bf16.mxu0 %v8578_v12 }
 0x663   : > { %6211 = vmatpush1.bf16.msra.mxu0 %v8576_v9 }
 0x664   : > { %6212 = vmatprep.subr.bf16.mxu0 %v8581_v21 }
 0x667   : > { %6213 = vmatpush1.bf16.msra.mxu0 %v8579_v4 }
 0x668   : > { %6214 = vmatprep.subr.bf16.mxu0 %v8584_v1  ;;  %v6328_v1 = vrot.slane %v6323_v22, %v5030_v38 }
 0x66b   : > { %6215 = vmatpush1.bf16.msra.mxu0 %v8582_v13 }
 0x66c   : > { %6216 = vmatprep.subr.bf16.mxu0 %v8587_v17  ;;  %v6332_v17 = vrot.slane %v6323_v22, %v5034_v28 }
 0x66f   : > { %6217 = vmatpush1.bf16.msra.mxu0 %v8585_v27 }
 0x670   : > { %6227 = vmatprep.subr.bf16.mxu0 %v8590_v5 }
 0x672   : > { %6219 = vmatmul.mubr.bf16.vlgmr.msra.gmra.mrb[228].mxu0 %v4825_v10 }
 0x673   : > { %6228 = vmatpush1.bf16.msra.mxu0 %v8588_v60  ;;  %6259 = vmatprep.mubr.bf16.mxu0 %v4828_v57 }
 0x674   : > { %6229 = vmatprep.subr.bf16.mxu0 %v8594_v40 }
 0x677   : > { %6230 = vmatpush1.bf16.msra.mxu0 %v8592_v44 }
 0x678   : > { %6231 = vmatprep.subr.bf16.mxu0 %v8597_v26  ;;  %v7025_v26 = vld [vmem:[#allocation3] ss:$0 sm:$0xff] }
 0x67b   : > { %6232 = vmatpush1.bf16.msra.mxu0 %v8595_v39 }
 0x67c   : > { %6233 = vmatprep.subr.bf16.mxu0 %v8600_v43 }
 0x67f   : > { %6234 = vmatpush1.bf16.msra.mxu0 %v8598_v34 }
 0x680   : > { %6235 = vmatprep.subr.bf16.mxu0 %v8603_v14 }
 0x683   : > { %6236 = vmatpush1.bf16.msra.mxu0 %v8601_v51  ;;  %v11153_v54 = vpop.f32.mrb[32].mxu1 }
 0x684   : > { %v11158_v45 = vpop.f32.mrb[33].mxu1  ;;  %6237 = vmatprep.subr.bf16.mxu0 %v8606_v46  ;;  %v6057_v12 = vadd.f32 %v11153_v54, %v5031_v42 }
 0x685   : > { %v6060_v30 = vpop.f32.mrb[34].mxu1  ;;  %v6059_v9 = vadd.f32 %v11158_v45, %v5035_v33 }
 0x686   : > { %v6061_v53 = vpop.f32.mrb[35].mxu1 }
 0x687   : > { %6238 = vmatpush1.bf16.msra.mxu0 %v8604_v36 }
 0x688   : > { %6239 = vmatprep.subr.bf16.mxu0 %v8609_v47 }
 0x68b   : > { %6240 = vmatpush1.bf16.msra.mxu0 %v8607_v49 }
 0x68c   : > { %6241 = vmatprep.subr.bf16.mxu0 %v8612_v8 }
 0x68f   : > { %6242 = vmatpush1.bf16.msra.mxu0 %v8610_v56 }
 0x690   : > { %6243 = vmatprep.subr.bf16.mxu0 %v8615_v41 }
 0x693   : > { %6244 = vmatpush1.bf16.msra.mxu0 %v8613_v11 }
 0x694   : > { %6245 = vmatprep.subr.bf16.mxu0 %v8618_v37 }
 0x697   : > { %6246 = vmatpush1.bf16.msra.mxu0 %v8616_v55 }
 0x698   : > { %6247 = vmatprep.subr.bf16.mxu0 %v8621_v25 }
 0x69b   : > { %6248 = vmatpush1.bf16.msra.mxu0 %v8619_v6 }
 0x69c   : > { %6249 = vmatprep.subr.bf16.mxu0 %v8624_v62 }
 0x69f   : > { %6250 = vmatpush1.bf16.msra.mxu0 %v8622_v63 }
 0x6a0   : > { %6251 = vmatprep.subr.bf16.mxu0 %v8627_v32 }
 0x6a3   : > { %6252 = vmatpush1.bf16.msra.mxu0 %v8625_v7 }
 0x6a4   : > { %6253 = vmatprep.subr.bf16.mxu0 %v8630_v31 }
 0x6a7   : > { %6254 = vmatpush1.bf16.msra.mxu0 %v8628_v61 }
 0x6a8   : > { %6255 = vmatprep.subr.bf16.mxu0 %v8633_v35 }
 0x6ab   : > { %6256 = vmatpush1.bf16.msra.mxu0 %v8631_v19 }
 0x6ac   : > { %6257 = vmatprep.subr.bf16.mxu0 %v8636_v23 }
 0x6af   : > { %6258 = vmatpush1.bf16.msra.mxu0 %v8634_v52 }
 0x6b0   : > { %6268 = vmatprep.subr.bf16.mxu0 %v8639_v2 }
 0x6b2   : > { %6260 = vmatmul.mubr.bf16.vlgmr.msra.gmra.mrb[228].mxu0 %v4827_v15 }
 0x6b3   : > { %6269 = vmatpush1.bf16.msra.mxu0 %v8637_v50  ;;  %6300 = vmatprep.mubr.bf16.mxu0 %v8657_v3 }
 0x6b4   : > { %6270 = vmatprep.subr.bf16.mxu0 %v8642_v0 }
 0x6b7   : > { %6271 = vmatpush1.bf16.msra.mxu0 %v8640_v20 }
 0x6be   : > { %7023 = vmatmul.mubr.msk.bf16.vlgmr.msra.gmra.mrb[228].mxu0 %vm6018_vm12, %v4829_v16 }
 0x791   : > { %v6302_v21 = vpop.f32.mrb[228].mxu0 }
 0x792   : > { %v8056_v4 = vadd.f32 %v6302_v21, %v6057_v12  ;;  %v6304_v48 = vpop.f32.mrb[229].mxu0 }
 0x793   : > { %v8058_v13 = vadd.f32 %v6304_v48, %v6059_v9  ;;  %v6306_v59 = vpop.f32.mrb[230].mxu0 }
 0x794   : > { %v6309_v58 = vmax.f32 %v8056_v4, 0.0  ;;  %v6307_v27 = vpop.f32.mrb[231].mxu0 }
 0x795   : > { %v6310_v5 = vmax.f32 %v8058_v13, 0.0 }
 0x796   : > { %v6335_v24 = vmul.f32 %v6328_v1, %v6309_v58 }
 0x797   : > { %v6313_v60 = vcombine.low %v6309_v58, %v6310_v5  ;;  %v6336_v10 = vmul.f32 %v6332_v17, %v6310_v5 }
 0x798   : > { %v6338_v40 = vsel %vm4087_vm6, %v6335_v24, 0.0 }
 0x799   : > { %7024 = vst.sshfl [vmem:[%s422_s26] sm:$0x33 pattern:$0x76325410] %v6313_v60  ;;  %v6339_v57 = vsel %vm4087_vm6, %v6336_v10, 0.0 }
 0x79a   : > { %v6340_v44 = vadd.f32 %v6339_v57, %v6338_v40 }
 0x79c   : > { %6341 = vadd.xlane.f32.xlu0 %v6340_v44 }
 0x829   : > { %v6342_v39 = vpop.xlane.xlu0 %6341 }
 0x82a   : > { %v6350_v43 = vadd.f32 %v7025_v26, %v6342_v39 }
 0x82c   : > { %6352 = vst.msk [vmem:[%s426_s25] sm:$0x3] %vm6351_vm13, %v6350_v43 }
 0x82d PF: > { %s25_s23 = sadd.s32 1, %s8649_s23  }
 0x82e   : > { %p22_p4 = scmp.ge.s32.totalorder %s25_s23, 4  }
 0x830   :  { %24 = sbr.rel (!%p22_p4) target bundleno = 3 (0x3), region = 117 }

</bundles_post_ra>
